<compile_context>
chip_gen: v7x
topology: tpu7x:2x2x1
jax: 0.10.0
libtpu: 0.0.40
codegen_flags: <defaults>
</compile_context>

<pallas_src>
import functools
import math

import jax
import jax.numpy as jnp
from jax.experimental import pallas as pl
from jax.experimental.pallas import tpu as pltpu

# ---------------- configuration (small, consistent with the module) ----------
BATCH = 2
SEQ = 8
VOCAB = 64
EMBED_DIM = 32      # transformer_args.embedding_dim
HIDDEN = 32         # transformer_args.hidden_size (d_model)
NUM_HEADS = 4       # transformer_args.num_heads
HEAD_DIM = HIDDEN // NUM_HEADS
FFN = 64            # transformer_args.feedforward_size
NUM_LAYERS = 2      # transformer_args.num_layers
NUM_CATEGORIES = 5
OUT_PAD = 128       # lane-dense logits slab; sliced to NUM_CATEGORIES in wrapper
LN_EPS = 1e-5


# ---------------- helpers used inside the kernel -----------------------------
def _layer_norm(x, gamma, beta, eps=LN_EPS):
    mu = jnp.mean(x, axis=-1, keepdims=True)
    var = jnp.mean((x - mu) ** 2, axis=-1, keepdims=True)
    return (x - mu) * jax.lax.rsqrt(var + eps) * gamma + beta


# ---------------- the single fused forward kernel ----------------------------
def _fused_forward_kernel(
    ids_ref,                      # (B*S, 1) int32
    embed_ref,                    # (V, E)
    trans_w_ref, trans_b_ref,     # (E, H), (1, H)
    wqkv_ref, bqkv_ref,           # (L, 3*NH, H, DH), (L, 3*NH, 1, DH)
    wo_ref, bo_ref,               # (L, NH, DH, H), (L, 1, H)
    lng_ref, lnb_ref,             # (L, 2, 1, H) each
    w1_ref, b1_ref,               # (L, H, FFN), (L, 1, FFN)
    w2_ref, b2_ref,               # (L, FFN, H), (L, 1, H)
    fg_ref, fb_ref,               # (1, H) each (final encoder norm)
    hw1_ref, hb1_ref,             # (H, FFN), (1, FFN)
    hw2_ref, hb2_ref,             # (FFN, OUT_PAD), (1, OUT_PAD)  (zero-padded)
    out_ref,                      # (B, OUT_PAD)
    *, batch, seq, num_heads, num_layers,
):
    bs = batch * seq
    scale = 1.0 / math.sqrt(HEAD_DIM)

    # --- embedding lookup as one-hot matmul (no XLA gather, uses idle MXU) ---
    ids = ids_ref[...]                                            # (BS, 1) int32
    vocab = embed_ref.shape[0]
    iota = jax.lax.broadcasted_iota(jnp.int32, (bs, vocab), 1)
    one_hot = (iota == ids).astype(jnp.float32)                   # (BS, V)
    emb = jnp.dot(one_hot, embed_ref[...], preferred_element_type=jnp.float32)

    # --- transition Linear (embedding dropout is identity at inference) ------
    x = jnp.dot(emb, trans_w_ref[...],
                preferred_element_type=jnp.float32) + trans_b_ref[...]   # (BS, H)

    # --- pre-norm encoder layers (statically unrolled; all data in VMEM) -----
    for l in range(num_layers):
        # ---- self-attention sub-block (pre-norm) ----
        xn = _layer_norm(x, lng_ref[l, 0], lnb_ref[l, 0])
        attn_rows = []
        for b in range(batch):
            xb = xn[b * seq:(b + 1) * seq, :]                     # (S, H) aligned rows
            acc = None
            for n in range(num_heads):
                q = jnp.dot(xb, wqkv_ref[l, n],
                            preferred_element_type=jnp.float32) + bqkv_ref[l, n]
                k = jnp.dot(xb, wqkv_ref[l, num_heads + n],
                            preferred_element_type=jnp.float32) + bqkv_ref[l, num_heads + n]
                v = jnp.dot(xb, wqkv_ref[l, 2 * num_heads + n],
                            preferred_element_type=jnp.float32) + bqkv_ref[l, 2 * num_heads + n]
                s = jax.lax.dot_general(
                    q, k, (((1,), (1,)), ((), ())),
                    preferred_element_type=jnp.float32) * scale    # (S, S)
                s = s - jnp.max(s, axis=-1, keepdims=True)
                p = jnp.exp(s)
                p = p * pl.reciprocal(jnp.sum(p, axis=-1, keepdims=True), approx=True)
                ctx = jnp.dot(p, v, preferred_element_type=jnp.float32)          # (S, DH)
                contrib = jnp.dot(ctx, wo_ref[l, n],
                                  preferred_element_type=jnp.float32)            # (S, H)
                acc = contrib if acc is None else acc + contrib
            attn_rows.append(acc + bo_ref[l])
        attn = jnp.concatenate(attn_rows, axis=0)                 # (BS, H) sublane concat
        x = x + attn                                              # dropout1 identity (eval)

        # ---- feed-forward sub-block (pre-norm) ----
        xn2 = _layer_norm(x, lng_ref[l, 1], lnb_ref[l, 1])
        hmid = jnp.maximum(
            jnp.dot(xn2, w1_ref[l], preferred_element_type=jnp.float32) + b1_ref[l],
            0.0)
        ff = jnp.dot(hmid, w2_ref[l], preferred_element_type=jnp.float32) + b2_ref[l]
        x = x + ff                                                # dropout2 identity (eval)

    # --- final encoder LayerNorm -> mean pool over sequence -> head MLP ------
    xn = _layer_norm(x, fg_ref[...], fb_ref[...])
    pooled = jnp.concatenate(
        [jnp.mean(xn[b * seq:(b + 1) * seq, :], axis=0, keepdims=True)
         for b in range(batch)],
        axis=0)                                                   # (B, H)
    h = jnp.maximum(
        jnp.dot(pooled, hw1_ref[...], preferred_element_type=jnp.float32) + hb1_ref[...],
        0.0)
    out_ref[...] = jnp.dot(h, hw2_ref[...],
                           preferred_element_type=jnp.float32) + hb2_ref[...]


def _full_spec(shape):
    nd = len(shape)
    return pl.BlockSpec(shape, lambda i, _nd=nd: (0,) * _nd)


# ---------------- wrapper: one pallas_call for the whole forward -------------
def forward(input_ids, kp):
    B, S = input_ids.shape
    ids = input_ids.reshape(B * S, 1).astype(jnp.int32)

    operands = (
        ids, kp["embed"], kp["trans_w"], kp["trans_b"],
        kp["wqkv"], kp["bqkv"], kp["wo"], kp["bo"],
        kp["ln_g"], kp["ln_b"],
        kp["w1"], kp["b1"], kp["w2"], kp["b2"],
        kp["final_g"], kp["final_b"],
        kp["head_w1"], kp["head_b1"], kp["head_w2"], kp["head_b2"],
    )
    kernel = functools.partial(
        _fused_forward_kernel,
        batch=B, seq=S, num_heads=NUM_HEADS, num_layers=NUM_LAYERS)
    logits_padded = pl.pallas_call(
        kernel,
        out_shape=jax.ShapeDtypeStruct((B, OUT_PAD), jnp.float32),
        grid=(1,),
        in_specs=[_full_spec(op.shape) for op in operands],
        out_specs=pl.BlockSpec((B, OUT_PAD), lambda i: (0, 0)),
        compiler_params=pltpu.CompilerParams(dimension_semantics=("arbitrary",)),
    )(*operands)
    return logits_padded[:, :NUM_CATEGORIES]


# ---------------- parameter init (deterministic, synthetic) ------------------
def init_params(key):
    keys = iter(jax.random.split(key, 8 + NUM_LAYERS * 16))
    nk = lambda: next(keys)

    def lin(k, fan_in, fan_out):
        bound = 1.0 / math.sqrt(fan_in)
        return jax.random.uniform(k, (fan_in, fan_out), jnp.float32, -bound, bound)

    def bias(k, n, fan_in):
        bound = 1.0 / math.sqrt(fan_in)
        return jax.random.uniform(k, (n,), jnp.float32, -bound, bound)

    params = {
        "embed": jax.random.uniform(nk(), (VOCAB, EMBED_DIM), jnp.float32, -0.1, 0.1),
        "trans_w": lin(nk(), EMBED_DIM, HIDDEN),
        "trans_b": bias(nk(), HIDDEN, EMBED_DIM),
        "final_ln_g": jnp.ones((HIDDEN,), jnp.float32),
        "final_ln_b": jnp.zeros((HIDDEN,), jnp.float32),
        "head_w1": lin(nk(), HIDDEN, FFN),
        "head_b1": bias(nk(), FFN, HIDDEN),
        "head_w2": lin(nk(), FFN, NUM_CATEGORIES),
        "head_b2": bias(nk(), NUM_CATEGORIES, FFN),
        "layers": [],
    }
    for _ in range(NUM_LAYERS):
        params["layers"].append({
            "ln1_g": jnp.ones((HIDDEN,), jnp.float32),
            "ln1_b": jnp.zeros((HIDDEN,), jnp.float32),
            "wq": lin(nk(), HIDDEN, HIDDEN), "bq": bias(nk(), HIDDEN, HIDDEN),
            "wk": lin(nk(), HIDDEN, HIDDEN), "bk": bias(nk(), HIDDEN, HIDDEN),
            "wv": lin(nk(), HIDDEN, HIDDEN), "bv": bias(nk(), HIDDEN, HIDDEN),
            "wo": lin(nk(), HIDDEN, HIDDEN), "bo": bias(nk(), HIDDEN, HIDDEN),
            "ln2_g": jnp.ones((HIDDEN,), jnp.float32),
            "ln2_b": jnp.zeros((HIDDEN,), jnp.float32),
            "w1": lin(nk(), HIDDEN, FFN), "b1": bias(nk(), FFN, HIDDEN),
            "w2": lin(nk(), FFN, HIDDEN), "b2": bias(nk(), HIDDEN, FFN),
        })
    return params


# ---------------- one-time parameter re-layout for the fused kernel ----------
def pack_params(p):
    NH, DH = NUM_HEADS, HEAD_DIM
    heads_w = lambda w: w.reshape(HIDDEN, NH, DH).transpose(1, 0, 2)   # (NH, H, DH)
    heads_b = lambda v: v.reshape(NH, 1, DH)                           # (NH, 1, DH)

    wqkv, bqkv, wo, bo, lng, lnb, w1, b1, w2, b2 = ([] for _ in range(10))
    for lp in p["layers"]:
        wqkv.append(jnp.concatenate(
            [heads_w(lp["wq"]), heads_w(lp["wk"]), heads_w(lp["wv"])], axis=0))
        bqkv.append(jnp.concatenate(
            [heads_b(lp["bq"]), heads_b(lp["bk"]), heads_b(lp["bv"])], axis=0))
        wo.append(lp["wo"].reshape(NH, DH, HIDDEN))
        bo.append(lp["bo"].reshape(1, HIDDEN))
        lng.append(jnp.stack([lp["ln1_g"], lp["ln2_g"]]).reshape(2, 1, HIDDEN))
        lnb.append(jnp.stack([lp["ln1_b"], lp["ln2_b"]]).reshape(2, 1, HIDDEN))
        w1.append(lp["w1"])
        b1.append(lp["b1"].reshape(1, FFN))
        w2.append(lp["w2"])
        b2.append(lp["b2"].reshape(1, HIDDEN))

    # Zero-pad the head output projection to a lane-dense 128-wide slab.
    head_w2 = jnp.zeros((FFN, OUT_PAD), jnp.float32).at[:, :NUM_CATEGORIES].set(p["head_w2"])
    head_b2 = jnp.zeros((1, OUT_PAD), jnp.float32).at[0, :NUM_CATEGORIES].set(p["head_b2"])

    return {
        "embed": p["embed"],
        "trans_w": p["trans_w"], "trans_b": p["trans_b"].reshape(1, HIDDEN),
        "wqkv": jnp.stack(wqkv), "bqkv": jnp.stack(bqkv),
        "wo": jnp.stack(wo), "bo": jnp.stack(bo),
        "ln_g": jnp.stack(lng), "ln_b": jnp.stack(lnb),
        "w1": jnp.stack(w1), "b1": jnp.stack(b1),
        "w2": jnp.stack(w2), "b2": jnp.stack(b2),
        "final_g": p["final_ln_g"].reshape(1, HIDDEN),
        "final_b": p["final_ln_b"].reshape(1, HIDDEN),
        "head_w1": p["head_w1"], "head_b1": p["head_b1"].reshape(1, FFN),
        "head_w2": head_w2, "head_b2": head_b2,
    }


if __name__ == "__main__":
    key = jax.random.PRNGKey(0)
    pkey, dkey = jax.random.split(key)
    params = init_params(pkey)
    packed = pack_params(params)          # one-time layout plumbing (outside jit)
    input_ids = jax.random.randint(dkey, (BATCH, SEQ), 0, VOCAB, dtype=jnp.int32)

    logits = jax.jit(forward)(input_ids, packed)
    logits = jax.block_until_ready(logits)
    assert logits.shape == (BATCH, NUM_CATEGORIES)
    assert bool(jnp.all(jnp.isfinite(logits)))
    print("KERNEL_OK")
</pallas_src>

<mosaic_0001>
module attributes {stable_mosaic.version = 11 : i64} {
  func.func @_fused_forward_kernel(%arg0: i32, %arg1: memref<16x1xi32, #tpu.memory_space<vmem>>, %arg2: memref<64x32xf32, #tpu.memory_space<vmem>>, %arg3: memref<32x32xf32, #tpu.memory_space<vmem>>, %arg4: memref<1x32xf32, #tpu.memory_space<vmem>>, %arg5: memref<2x12x32x8xf32, #tpu.memory_space<vmem>>, %arg6: memref<2x12x1x8xf32, #tpu.memory_space<vmem>>, %arg7: memref<2x4x8x32xf32, #tpu.memory_space<vmem>>, %arg8: memref<2x1x32xf32, #tpu.memory_space<vmem>>, %arg9: memref<2x2x1x32xf32, #tpu.memory_space<vmem>>, %arg10: memref<2x2x1x32xf32, #tpu.memory_space<vmem>>, %arg11: memref<2x32x64xf32, #tpu.memory_space<vmem>>, %arg12: memref<2x1x64xf32, #tpu.memory_space<vmem>>, %arg13: memref<2x64x32xf32, #tpu.memory_space<vmem>>, %arg14: memref<2x1x32xf32, #tpu.memory_space<vmem>>, %arg15: memref<1x32xf32, #tpu.memory_space<vmem>>, %arg16: memref<1x32xf32, #tpu.memory_space<vmem>>, %arg17: memref<32x64xf32, #tpu.memory_space<vmem>>, %arg18: memref<1x64xf32, #tpu.memory_space<vmem>>, %arg19: memref<64x128xf32, #tpu.memory_space<vmem>>, %arg20: memref<1x128xf32, #tpu.memory_space<vmem>>, %arg21: memref<2x128xf32, #tpu.memory_space<vmem>>) attributes {dimension_semantics = [#tpu.dimension_semantics<arbitrary>], iteration_bounds = array<i64: 1>, scalar_prefetch = 0 : i64, scratch_operands = 0 : i64, tpu.core_type = #tpu.core_type<tc>, window_params = [{pipeline_mode = #tpu.pipeline_mode<synchronous>, transform_indices = @transform_0, window_bounds = array<i64: 16, 1>}, {pipeline_mode = #tpu.pipeline_mode<synchronous>, transform_indices = @transform_1, window_bounds = array<i64: 64, 32>}, {pipeline_mode = #tpu.pipeline_mode<synchronous>, transform_indices = @transform_2, window_bounds = array<i64: 32, 32>}, {pipeline_mode = #tpu.pipeline_mode<synchronous>, transform_indices = @transform_3, window_bounds = array<i64: 1, 32>}, {pipeline_mode = #tpu.pipeline_mode<synchronous>, transform_indices = @transform_4, window_bounds = array<i64: 2, 12, 32, 8>}, {pipeline_mode = #tpu.pipeline_mode<synchronous>, transform_indices = @transform_5, window_bounds = array<i64: 2, 12, 1, 8>}, {pipeline_mode = #tpu.pipeline_mode<synchronous>, transform_indices = @transform_6, window_bounds = array<i64: 2, 4, 8, 32>}, {pipeline_mode = #tpu.pipeline_mode<synchronous>, transform_indices = @transform_7, window_bounds = array<i64: 2, 1, 32>}, {pipeline_mode = #tpu.pipeline_mode<synchronous>, transform_indices = @transform_8, window_bounds = array<i64: 2, 2, 1, 32>}, {pipeline_mode = #tpu.pipeline_mode<synchronous>, transform_indices = @transform_9, window_bounds = array<i64: 2, 2, 1, 32>}, {pipeline_mode = #tpu.pipeline_mode<synchronous>, transform_indices = @transform_10, window_bounds = array<i64: 2, 32, 64>}, {pipeline_mode = #tpu.pipeline_mode<synchronous>, transform_indices = @transform_11, window_bounds = array<i64: 2, 1, 64>}, {pipeline_mode = #tpu.pipeline_mode<synchronous>, transform_indices = @transform_12, window_bounds = array<i64: 2, 64, 32>}, {pipeline_mode = #tpu.pipeline_mode<synchronous>, transform_indices = @transform_13, window_bounds = array<i64: 2, 1, 32>}, {pipeline_mode = #tpu.pipeline_mode<synchronous>, transform_indices = @transform_14, window_bounds = array<i64: 1, 32>}, {pipeline_mode = #tpu.pipeline_mode<synchronous>, transform_indices = @transform_15, window_bounds = array<i64: 1, 32>}, {pipeline_mode = #tpu.pipeline_mode<synchronous>, transform_indices = @transform_16, window_bounds = array<i64: 32, 64>}, {pipeline_mode = #tpu.pipeline_mode<synchronous>, transform_indices = @transform_17, window_bounds = array<i64: 1, 64>}, {pipeline_mode = #tpu.pipeline_mode<synchronous>, transform_indices = @transform_18, window_bounds = array<i64: 64, 128>}, {pipeline_mode = #tpu.pipeline_mode<synchronous>, transform_indices = @transform_19, window_bounds = array<i64: 1, 128>}, {pipeline_mode = #tpu.pipeline_mode<synchronous>, transform_indices = @transform_20, window_bounds = array<i64: 2, 128>}]} {
    %c0 = arith.constant 0 : index
    %c0_0 = arith.constant 0 : index
    %0 = vector.load %arg1[%c0, %c0_0] : memref<16x1xi32, #tpu.memory_space<vmem>>, vector<16x1xi32>
    %1 = tpu.iota {dimensions = array<i32: 1>} : vector<16x64xi32>
    %2 = vector.broadcast %0 : vector<16x1xi32> to vector<16x64xi32>
    %3 = arith.cmpi eq, %1, %2 : vector<16x64xi32>
    %4 = arith.extui %3 : vector<16x64xi1> to vector<16x64xi32>
    %5 = arith.sitofp %4 : vector<16x64xi32> to vector<16x64xf32>
    %c0_1 = arith.constant 0 : index
    %c0_2 = arith.constant 0 : index
    %6 = vector.load %arg2[%c0_1, %c0_2] : memref<64x32xf32, #tpu.memory_space<vmem>>, vector<64x32xf32>
    %cst = arith.constant dense<0.000000e+00> : vector<16x32xf32>
    %7 = tpu.matmul %5, %6, %cst {dimension_numbers = #tpu.dot_dimension_numbers<[1], [0], [0], [1], [0, 0, 1, 1], [], []>} : vector<16x64xf32>, vector<64x32xf32>, vector<16x32xf32> -> vector<16x32xf32>
    %c0_3 = arith.constant 0 : index
    %c0_4 = arith.constant 0 : index
    %8 = vector.load %arg3[%c0_3, %c0_4] : memref<32x32xf32, #tpu.memory_space<vmem>>, vector<32x32xf32>
    %cst_5 = arith.constant dense<0.000000e+00> : vector<16x32xf32>
    %9 = tpu.matmul %7, %8, %cst_5 {dimension_numbers = #tpu.dot_dimension_numbers<[1], [0], [0], [1], [0, 0, 1, 1], [], []>} : vector<16x32xf32>, vector<32x32xf32>, vector<16x32xf32> -> vector<16x32xf32>
    %c0_6 = arith.constant 0 : index
    %c0_7 = arith.constant 0 : index
    %10 = vector.load %arg4[%c0_6, %c0_7] : memref<1x32xf32, #tpu.memory_space<vmem>>, vector<1x32xf32>
    %11 = vector.broadcast %10 : vector<1x32xf32> to vector<16x32xf32>
    %12 = arith.addf %9, %11 : vector<16x32xf32>
    %c0_8 = arith.constant 0 : index
    %c0_9 = arith.constant 0 : index
    %c0_10 = arith.constant 0 : index
    %c0_11 = arith.constant 0 : index
    %13 = vector.load %arg9[%c0_8, %c0_9, %c0_10, %c0_11] : memref<2x2x1x32xf32, #tpu.memory_space<vmem>>, vector<1x1x1x32xf32>
    %14 = vector.shape_cast %13 : vector<1x1x1x32xf32> to vector<1x32xf32>
    %c0_12 = arith.constant 0 : index
    %c0_13 = arith.constant 0 : index
    %c0_14 = arith.constant 0 : index
    %c0_15 = arith.constant 0 : index
    %15 = vector.load %arg10[%c0_12, %c0_13, %c0_14, %c0_15] : memref<2x2x1x32xf32, #tpu.memory_space<vmem>>, vector<1x1x1x32xf32>
    %16 = vector.shape_cast %15 : vector<1x1x1x32xf32> to vector<1x32xf32>
    %cst_16 = arith.constant dense<0.000000e+00> : vector<16xf32>
    %17 = vector.multi_reduction <add>, %12, %cst_16 [1] : vector<16x32xf32> to vector<16xf32>
    %18 = vector.shape_cast %17 : vector<16xf32> to vector<16x1xf32>
    %cst_17 = arith.constant 3.200000e+01 : f32
    %19 = vector.broadcast %cst_17 : f32 to vector<16x1xf32>
    %20 = arith.divf %18, %19 : vector<16x1xf32>
    %21 = vector.broadcast %20 : vector<16x1xf32> to vector<16x32xf32>
    %22 = arith.subf %12, %21 : vector<16x32xf32>
    %23 = arith.mulf %22, %22 : vector<16x32xf32>
    %cst_18 = arith.constant dense<0.000000e+00> : vector<16xf32>
    %24 = vector.multi_reduction <add>, %23, %cst_18 [1] : vector<16x32xf32> to vector<16xf32>
    %25 = vector.shape_cast %24 : vector<16xf32> to vector<16x1xf32>
    %cst_19 = arith.constant 3.200000e+01 : f32
    %26 = vector.broadcast %cst_19 : f32 to vector<16x1xf32>
    %27 = arith.divf %25, %26 : vector<16x1xf32>
    %28 = vector.broadcast %20 : vector<16x1xf32> to vector<16x32xf32>
    %29 = arith.subf %12, %28 : vector<16x32xf32>
    %cst_20 = arith.constant 9.99999974E-6 : f32
    %30 = vector.broadcast %cst_20 : f32 to vector<16x1xf32>
    %31 = arith.addf %27, %30 : vector<16x1xf32>
    %32 = math.rsqrt %31 : vector<16x1xf32>
    %33 = vector.broadcast %32 : vector<16x1xf32> to vector<16x32xf32>
    %34 = arith.mulf %29, %33 : vector<16x32xf32>
    %35 = vector.broadcast %14 : vector<1x32xf32> to vector<16x32xf32>
    %36 = arith.mulf %34, %35 : vector<16x32xf32>
    %37 = vector.broadcast %16 : vector<1x32xf32> to vector<16x32xf32>
    %38 = arith.addf %36, %37 : vector<16x32xf32>
    %39 = vector.extract_strided_slice %38 {offsets = [0, 0], sizes = [8, 32], strides = [1, 1]} : vector<16x32xf32> to vector<8x32xf32>
    %c0_21 = arith.constant 0 : index
    %c0_22 = arith.constant 0 : index
    %c0_23 = arith.constant 0 : index
    %c0_24 = arith.constant 0 : index
    %40 = vector.load %arg5[%c0_21, %c0_22, %c0_23, %c0_24] : memref<2x12x32x8xf32, #tpu.memory_space<vmem>>, vector<1x1x32x8xf32>
    %41 = vector.shape_cast %40 : vector<1x1x32x8xf32> to vector<32x8xf32>
    %cst_25 = arith.constant dense<0.000000e+00> : vector<8x8xf32>
    %42 = tpu.matmul %39, %41, %cst_25 {dimension_numbers = #tpu.dot_dimension_numbers<[1], [0], [0], [1], [0, 0, 1, 1], [], []>} : vector<8x32xf32>, vector<32x8xf32>, vector<8x8xf32> -> vector<8x8xf32>
    %c0_26 = arith.constant 0 : index
    %c0_27 = arith.constant 0 : index
    %c0_28 = arith.constant 0 : index
    %c0_29 = arith.constant 0 : index
    %43 = vector.load %arg6[%c0_26, %c0_27, %c0_28, %c0_29] : memref<2x12x1x8xf32, #tpu.memory_space<vmem>>, vector<1x1x1x8xf32>
    %44 = vector.shape_cast %43 : vector<1x1x1x8xf32> to vector<1x8xf32>
    %45 = vector.broadcast %44 : vector<1x8xf32> to vector<8x8xf32>
    %46 = arith.addf %42, %45 : vector<8x8xf32>
    %c0_30 = arith.constant 0 : index
    %c4 = arith.constant 4 : index
    %c0_31 = arith.constant 0 : index
    %c0_32 = arith.constant 0 : index
    %47 = vector.load %arg5[%c0_30, %c4, %c0_31, %c0_32] : memref<2x12x32x8xf32, #tpu.memory_space<vmem>>, vector<1x1x32x8xf32>
    %48 = vector.shape_cast %47 : vector<1x1x32x8xf32> to vector<32x8xf32>
    %cst_33 = arith.constant dense<0.000000e+00> : vector<8x8xf32>
    %49 = tpu.matmul %39, %48, %cst_33 {dimension_numbers = #tpu.dot_dimension_numbers<[1], [0], [0], [1], [0, 0, 1, 1], [], []>} : vector<8x32xf32>, vector<32x8xf32>, vector<8x8xf32> -> vector<8x8xf32>
    %c0_34 = arith.constant 0 : index
    %c4_35 = arith.constant 4 : index
    %c0_36 = arith.constant 0 : index
    %c0_37 = arith.constant 0 : index
    %50 = vector.load %arg6[%c0_34, %c4_35, %c0_36, %c0_37] : memref<2x12x1x8xf32, #tpu.memory_space<vmem>>, vector<1x1x1x8xf32>
    %51 = vector.shape_cast %50 : vector<1x1x1x8xf32> to vector<1x8xf32>
    %52 = vector.broadcast %51 : vector<1x8xf32> to vector<8x8xf32>
    %53 = arith.addf %49, %52 : vector<8x8xf32>
    %c0_38 = arith.constant 0 : index
    %c8 = arith.constant 8 : index
    %c0_39 = arith.constant 0 : index
    %c0_40 = arith.constant 0 : index
    %54 = vector.load %arg5[%c0_38, %c8, %c0_39, %c0_40] : memref<2x12x32x8xf32, #tpu.memory_space<vmem>>, vector<1x1x32x8xf32>
    %55 = vector.shape_cast %54 : vector<1x1x32x8xf32> to vector<32x8xf32>
    %cst_41 = arith.constant dense<0.000000e+00> : vector<8x8xf32>
    %56 = tpu.matmul %39, %55, %cst_41 {dimension_numbers = #tpu.dot_dimension_numbers<[1], [0], [0], [1], [0, 0, 1, 1], [], []>} : vector<8x32xf32>, vector<32x8xf32>, vector<8x8xf32> -> vector<8x8xf32>
    %c0_42 = arith.constant 0 : index
    %c8_43 = arith.constant 8 : index
    %c0_44 = arith.constant 0 : index
    %c0_45 = arith.constant 0 : index
    %57 = vector.load %arg6[%c0_42, %c8_43, %c0_44, %c0_45] : memref<2x12x1x8xf32, #tpu.memory_space<vmem>>, vector<1x1x1x8xf32>
    %58 = vector.shape_cast %57 : vector<1x1x1x8xf32> to vector<1x8xf32>
    %59 = vector.broadcast %58 : vector<1x8xf32> to vector<8x8xf32>
    %60 = arith.addf %56, %59 : vector<8x8xf32>
    %cst_46 = arith.constant dense<0.000000e+00> : vector<8x8xf32>
    %61 = tpu.matmul %46, %53, %cst_46 {dimension_numbers = #tpu.dot_dimension_numbers<[1], [1], [0], [0], [0, 0, 1, 0], [], []>} : vector<8x8xf32>, vector<8x8xf32>, vector<8x8xf32> -> vector<8x8xf32>
    %cst_47 = arith.constant 0.353553385 : f32
    %62 = vector.broadcast %cst_47 : f32 to vector<8x8xf32>
    %63 = arith.mulf %61, %62 : vector<8x8xf32>
    %cst_48 = arith.constant dense<0xFF800000> : vector<8xf32>
    %64 = vector.multi_reduction <maximumf>, %63, %cst_48 [1] : vector<8x8xf32> to vector<8xf32>
    %65 = vector.shape_cast %64 : vector<8xf32> to vector<8x1xf32>
    %66 = vector.broadcast %65 : vector<8x1xf32> to vector<8x8xf32>
    %67 = arith.subf %63, %66 : vector<8x8xf32>
    %68 = math.exp %67 : vector<8x8xf32>
    %cst_49 = arith.constant dense<0.000000e+00> : vector<8xf32>
    %69 = vector.multi_reduction <add>, %68, %cst_49 [1] : vector<8x8xf32> to vector<8xf32>
    %70 = vector.shape_cast %69 : vector<8xf32> to vector<8x1xf32>
    %71 = tpu.reciprocal %70 {approx = true} : vector<8x1xf32> -> vector<8x1xf32>
    %72 = vector.broadcast %71 : vector<8x1xf32> to vector<8x8xf32>
    %73 = arith.mulf %68, %72 : vector<8x8xf32>
    %cst_50 = arith.constant dense<0.000000e+00> : vector<8x8xf32>
    %74 = tpu.matmul %73, %60, %cst_50 {dimension_numbers = #tpu.dot_dimension_numbers<[1], [0], [0], [1], [0, 0, 1, 1], [], []>} : vector<8x8xf32>, vector<8x8xf32>, vector<8x8xf32> -> vector<8x8xf32>
    %c0_51 = arith.constant 0 : index
    %c0_52 = arith.constant 0 : index
    %c0_53 = arith.constant 0 : index
    %c0_54 = arith.constant 0 : index
    %75 = vector.load %arg7[%c0_51, %c0_52, %c0_53, %c0_54] : memref<2x4x8x32xf32, #tpu.memory_space<vmem>>, vector<1x1x8x32xf32>
    %76 = vector.shape_cast %75 : vector<1x1x8x32xf32> to vector<8x32xf32>
    %cst_55 = arith.constant dense<0.000000e+00> : vector<8x32xf32>
    %77 = tpu.matmul %74, %76, %cst_55 {dimension_numbers = #tpu.dot_dimension_numbers<[1], [0], [0], [1], [0, 0, 1, 1], [], []>} : vector<8x8xf32>, vector<8x32xf32>, vector<8x32xf32> -> vector<8x32xf32>
    %c0_56 = arith.constant 0 : index
    %c1 = arith.constant 1 : index
    %c0_57 = arith.constant 0 : index
    %c0_58 = arith.constant 0 : index
    %78 = vector.load %arg5[%c0_56, %c1, %c0_57, %c0_58] : memref<2x12x32x8xf32, #tpu.memory_space<vmem>>, vector<1x1x32x8xf32>
    %79 = vector.shape_cast %78 : vector<1x1x32x8xf32> to vector<32x8xf32>
    %cst_59 = arith.constant dense<0.000000e+00> : vector<8x8xf32>
    %80 = tpu.matmul %39, %79, %cst_59 {dimension_numbers = #tpu.dot_dimension_numbers<[1], [0], [0], [1], [0, 0, 1, 1], [], []>} : vector<8x32xf32>, vector<32x8xf32>, vector<8x8xf32> -> vector<8x8xf32>
    %c0_60 = arith.constant 0 : index
    %c1_61 = arith.constant 1 : index
    %c0_62 = arith.constant 0 : index
    %c0_63 = arith.constant 0 : index
    %81 = vector.load %arg6[%c0_60, %c1_61, %c0_62, %c0_63] : memref<2x12x1x8xf32, #tpu.memory_space<vmem>>, vector<1x1x1x8xf32>
    %82 = vector.shape_cast %81 : vector<1x1x1x8xf32> to vector<1x8xf32>
    %83 = vector.broadcast %82 : vector<1x8xf32> to vector<8x8xf32>
    %84 = arith.addf %80, %83 : vector<8x8xf32>
    %c0_64 = arith.constant 0 : index
    %c5 = arith.constant 5 : index
    %c0_65 = arith.constant 0 : index
    %c0_66 = arith.constant 0 : index
    %85 = vector.load %arg5[%c0_64, %c5, %c0_65, %c0_66] : memref<2x12x32x8xf32, #tpu.memory_space<vmem>>, vector<1x1x32x8xf32>
    %86 = vector.shape_cast %85 : vector<1x1x32x8xf32> to vector<32x8xf32>
    %cst_67 = arith.constant dense<0.000000e+00> : vector<8x8xf32>
    %87 = tpu.matmul %39, %86, %cst_67 {dimension_numbers = #tpu.dot_dimension_numbers<[1], [0], [0], [1], [0, 0, 1, 1], [], []>} : vector<8x32xf32>, vector<32x8xf32>, vector<8x8xf32> -> vector<8x8xf32>
    %c0_68 = arith.constant 0 : index
    %c5_69 = arith.constant 5 : index
    %c0_70 = arith.constant 0 : index
    %c0_71 = arith.constant 0 : index
    %88 = vector.load %arg6[%c0_68, %c5_69, %c0_70, %c0_71] : memref<2x12x1x8xf32, #tpu.memory_space<vmem>>, vector<1x1x1x8xf32>
    %89 = vector.shape_cast %88 : vector<1x1x1x8xf32> to vector<1x8xf32>
    %90 = vector.broadcast %89 : vector<1x8xf32> to vector<8x8xf32>
    %91 = arith.addf %87, %90 : vector<8x8xf32>
    %c0_72 = arith.constant 0 : index
    %c9 = arith.constant 9 : index
    %c0_73 = arith.constant 0 : index
    %c0_74 = arith.constant 0 : index
    %92 = vector.load %arg5[%c0_72, %c9, %c0_73, %c0_74] : memref<2x12x32x8xf32, #tpu.memory_space<vmem>>, vector<1x1x32x8xf32>
    %93 = vector.shape_cast %92 : vector<1x1x32x8xf32> to vector<32x8xf32>
    %cst_75 = arith.constant dense<0.000000e+00> : vector<8x8xf32>
    %94 = tpu.matmul %39, %93, %cst_75 {dimension_numbers = #tpu.dot_dimension_numbers<[1], [0], [0], [1], [0, 0, 1, 1], [], []>} : vector<8x32xf32>, vector<32x8xf32>, vector<8x8xf32> -> vector<8x8xf32>
    %c0_76 = arith.constant 0 : index
    %c9_77 = arith.constant 9 : index
    %c0_78 = arith.constant 0 : index
    %c0_79 = arith.constant 0 : index
    %95 = vector.load %arg6[%c0_76, %c9_77, %c0_78, %c0_79] : memref<2x12x1x8xf32, #tpu.memory_space<vmem>>, vector<1x1x1x8xf32>
    %96 = vector.shape_cast %95 : vector<1x1x1x8xf32> to vector<1x8xf32>
    %97 = vector.broadcast %96 : vector<1x8xf32> to vector<8x8xf32>
    %98 = arith.addf %94, %97 : vector<8x8xf32>
    %cst_80 = arith.constant dense<0.000000e+00> : vector<8x8xf32>
    %99 = tpu.matmul %84, %91, %cst_80 {dimension_numbers = #tpu.dot_dimension_numbers<[1], [1], [0], [0], [0, 0, 1, 0], [], []>} : vector<8x8xf32>, vector<8x8xf32>, vector<8x8xf32> -> vector<8x8xf32>
    %cst_81 = arith.constant 0.353553385 : f32
    %100 = vector.broadcast %cst_81 : f32 to vector<8x8xf32>
    %101 = arith.mulf %99, %100 : vector<8x8xf32>
    %cst_82 = arith.constant dense<0xFF800000> : vector<8xf32>
    %102 = vector.multi_reduction <maximumf>, %101, %cst_82 [1] : vector<8x8xf32> to vector<8xf32>
    %103 = vector.shape_cast %102 : vector<8xf32> to vector<8x1xf32>
    %104 = vector.broadcast %103 : vector<8x1xf32> to vector<8x8xf32>
    %105 = arith.subf %101, %104 : vector<8x8xf32>
    %106 = math.exp %105 : vector<8x8xf32>
    %cst_83 = arith.constant dense<0.000000e+00> : vector<8xf32>
    %107 = vector.multi_reduction <add>, %106, %cst_83 [1] : vector<8x8xf32> to vector<8xf32>
    %108 = vector.shape_cast %107 : vector<8xf32> to vector<8x1xf32>
    %109 = tpu.reciprocal %108 {approx = true} : vector<8x1xf32> -> vector<8x1xf32>
    %110 = vector.broadcast %109 : vector<8x1xf32> to vector<8x8xf32>
    %111 = arith.mulf %106, %110 : vector<8x8xf32>
    %cst_84 = arith.constant dense<0.000000e+00> : vector<8x8xf32>
    %112 = tpu.matmul %111, %98, %cst_84 {dimension_numbers = #tpu.dot_dimension_numbers<[1], [0], [0], [1], [0, 0, 1, 1], [], []>} : vector<8x8xf32>, vector<8x8xf32>, vector<8x8xf32> -> vector<8x8xf32>
    %c0_85 = arith.constant 0 : index
    %c1_86 = arith.constant 1 : index
    %c0_87 = arith.constant 0 : index
    %c0_88 = arith.constant 0 : index
    %113 = vector.load %arg7[%c0_85, %c1_86, %c0_87, %c0_88] : memref<2x4x8x32xf32, #tpu.memory_space<vmem>>, vector<1x1x8x32xf32>
    %114 = vector.shape_cast %113 : vector<1x1x8x32xf32> to vector<8x32xf32>
    %cst_89 = arith.constant dense<0.000000e+00> : vector<8x32xf32>
    %115 = tpu.matmul %112, %114, %cst_89 {dimension_numbers = #tpu.dot_dimension_numbers<[1], [0], [0], [1], [0, 0, 1, 1], [], []>} : vector<8x8xf32>, vector<8x32xf32>, vector<8x32xf32> -> vector<8x32xf32>
    %116 = arith.addf %77, %115 : vector<8x32xf32>
    %c0_90 = arith.constant 0 : index
    %c2 = arith.constant 2 : index
    %c0_91 = arith.constant 0 : index
    %c0_92 = arith.constant 0 : index
    %117 = vector.load %arg5[%c0_90, %c2, %c0_91, %c0_92] : memref<2x12x32x8xf32, #tpu.memory_space<vmem>>, vector<1x1x32x8xf32>
    %118 = vector.shape_cast %117 : vector<1x1x32x8xf32> to vector<32x8xf32>
    %cst_93 = arith.constant dense<0.000000e+00> : vector<8x8xf32>
    %119 = tpu.matmul %39, %118, %cst_93 {dimension_numbers = #tpu.dot_dimension_numbers<[1], [0], [0], [1], [0, 0, 1, 1], [], []>} : vector<8x32xf32>, vector<32x8xf32>, vector<8x8xf32> -> vector<8x8xf32>
    %c0_94 = arith.constant 0 : index
    %c2_95 = arith.constant 2 : index
    %c0_96 = arith.constant 0 : index
    %c0_97 = arith.constant 0 : index
    %120 = vector.load %arg6[%c0_94, %c2_95, %c0_96, %c0_97] : memref<2x12x1x8xf32, #tpu.memory_space<vmem>>, vector<1x1x1x8xf32>
    %121 = vector.shape_cast %120 : vector<1x1x1x8xf32> to vector<1x8xf32>
    %122 = vector.broadcast %121 : vector<1x8xf32> to vector<8x8xf32>
    %123 = arith.addf %119, %122 : vector<8x8xf32>
    %c0_98 = arith.constant 0 : index
    %c6 = arith.constant 6 : index
    %c0_99 = arith.constant 0 : index
    %c0_100 = arith.constant 0 : index
    %124 = vector.load %arg5[%c0_98, %c6, %c0_99, %c0_100] : memref<2x12x32x8xf32, #tpu.memory_space<vmem>>, vector<1x1x32x8xf32>
    %125 = vector.shape_cast %124 : vector<1x1x32x8xf32> to vector<32x8xf32>
    %cst_101 = arith.constant dense<0.000000e+00> : vector<8x8xf32>
    %126 = tpu.matmul %39, %125, %cst_101 {dimension_numbers = #tpu.dot_dimension_numbers<[1], [0], [0], [1], [0, 0, 1, 1], [], []>} : vector<8x32xf32>, vector<32x8xf32>, vector<8x8xf32> -> vector<8x8xf32>
    %c0_102 = arith.constant 0 : index
    %c6_103 = arith.constant 6 : index
    %c0_104 = arith.constant 0 : index
    %c0_105 = arith.constant 0 : index
    %127 = vector.load %arg6[%c0_102, %c6_103, %c0_104, %c0_105] : memref<2x12x1x8xf32, #tpu.memory_space<vmem>>, vector<1x1x1x8xf32>
    %128 = vector.shape_cast %127 : vector<1x1x1x8xf32> to vector<1x8xf32>
    %129 = vector.broadcast %128 : vector<1x8xf32> to vector<8x8xf32>
    %130 = arith.addf %126, %129 : vector<8x8xf32>
    %c0_106 = arith.constant 0 : index
    %c10 = arith.constant 10 : index
    %c0_107 = arith.constant 0 : index
    %c0_108 = arith.constant 0 : index
    %131 = vector.load %arg5[%c0_106, %c10, %c0_107, %c0_108] : memref<2x12x32x8xf32, #tpu.memory_space<vmem>>, vector<1x1x32x8xf32>
    %132 = vector.shape_cast %131 : vector<1x1x32x8xf32> to vector<32x8xf32>
    %cst_109 = arith.constant dense<0.000000e+00> : vector<8x8xf32>
    %133 = tpu.matmul %39, %132, %cst_109 {dimension_numbers = #tpu.dot_dimension_numbers<[1], [0], [0], [1], [0, 0, 1, 1], [], []>} : vector<8x32xf32>, vector<32x8xf32>, vector<8x8xf32> -> vector<8x8xf32>
    %c0_110 = arith.constant 0 : index
    %c10_111 = arith.constant 10 : index
    %c0_112 = arith.constant 0 : index
    %c0_113 = arith.constant 0 : index
    %134 = vector.load %arg6[%c0_110, %c10_111, %c0_112, %c0_113] : memref<2x12x1x8xf32, #tpu.memory_space<vmem>>, vector<1x1x1x8xf32>
    %135 = vector.shape_cast %134 : vector<1x1x1x8xf32> to vector<1x8xf32>
    %136 = vector.broadcast %135 : vector<1x8xf32> to vector<8x8xf32>
    %137 = arith.addf %133, %136 : vector<8x8xf32>
    %cst_114 = arith.constant dense<0.000000e+00> : vector<8x8xf32>
    %138 = tpu.matmul %123, %130, %cst_114 {dimension_numbers = #tpu.dot_dimension_numbers<[1], [1], [0], [0], [0, 0, 1, 0], [], []>} : vector<8x8xf32>, vector<8x8xf32>, vector<8x8xf32> -> vector<8x8xf32>
    %cst_115 = arith.constant 0.353553385 : f32
    %139 = vector.broadcast %cst_115 : f32 to vector<8x8xf32>
    %140 = arith.mulf %138, %139 : vector<8x8xf32>
    %cst_116 = arith.constant dense<0xFF800000> : vector<8xf32>
    %141 = vector.multi_reduction <maximumf>, %140, %cst_116 [1] : vector<8x8xf32> to vector<8xf32>
    %142 = vector.shape_cast %141 : vector<8xf32> to vector<8x1xf32>
    %143 = vector.broadcast %142 : vector<8x1xf32> to vector<8x8xf32>
    %144 = arith.subf %140, %143 : vector<8x8xf32>
    %145 = math.exp %144 : vector<8x8xf32>
    %cst_117 = arith.constant dense<0.000000e+00> : vector<8xf32>
    %146 = vector.multi_reduction <add>, %145, %cst_117 [1] : vector<8x8xf32> to vector<8xf32>
    %147 = vector.shape_cast %146 : vector<8xf32> to vector<8x1xf32>
    %148 = tpu.reciprocal %147 {approx = true} : vector<8x1xf32> -> vector<8x1xf32>
    %149 = vector.broadcast %148 : vector<8x1xf32> to vector<8x8xf32>
    %150 = arith.mulf %145, %149 : vector<8x8xf32>
    %cst_118 = arith.constant dense<0.000000e+00> : vector<8x8xf32>
    %151 = tpu.matmul %150, %137, %cst_118 {dimension_numbers = #tpu.dot_dimension_numbers<[1], [0], [0], [1], [0, 0, 1, 1], [], []>} : vector<8x8xf32>, vector<8x8xf32>, vector<8x8xf32> -> vector<8x8xf32>
    %c0_119 = arith.constant 0 : index
    %c2_120 = arith.constant 2 : index
    %c0_121 = arith.constant 0 : index
    %c0_122 = arith.constant 0 : index
    %152 = vector.load %arg7[%c0_119, %c2_120, %c0_121, %c0_122] : memref<2x4x8x32xf32, #tpu.memory_space<vmem>>, vector<1x1x8x32xf32>
    %153 = vector.shape_cast %152 : vector<1x1x8x32xf32> to vector<8x32xf32>
    %cst_123 = arith.constant dense<0.000000e+00> : vector<8x32xf32>
    %154 = tpu.matmul %151, %153, %cst_123 {dimension_numbers = #tpu.dot_dimension_numbers<[1], [0], [0], [1], [0, 0, 1, 1], [], []>} : vector<8x8xf32>, vector<8x32xf32>, vector<8x32xf32> -> vector<8x32xf32>
    %155 = arith.addf %116, %154 : vector<8x32xf32>
    %c0_124 = arith.constant 0 : index
    %c3 = arith.constant 3 : index
    %c0_125 = arith.constant 0 : index
    %c0_126 = arith.constant 0 : index
    %156 = vector.load %arg5[%c0_124, %c3, %c0_125, %c0_126] : memref<2x12x32x8xf32, #tpu.memory_space<vmem>>, vector<1x1x32x8xf32>
    %157 = vector.shape_cast %156 : vector<1x1x32x8xf32> to vector<32x8xf32>
    %cst_127 = arith.constant dense<0.000000e+00> : vector<8x8xf32>
    %158 = tpu.matmul %39, %157, %cst_127 {dimension_numbers = #tpu.dot_dimension_numbers<[1], [0], [0], [1], [0, 0, 1, 1], [], []>} : vector<8x32xf32>, vector<32x8xf32>, vector<8x8xf32> -> vector<8x8xf32>
    %c0_128 = arith.constant 0 : index
    %c3_129 = arith.constant 3 : index
    %c0_130 = arith.constant 0 : index
    %c0_131 = arith.constant 0 : index
    %159 = vector.load %arg6[%c0_128, %c3_129, %c0_130, %c0_131] : memref<2x12x1x8xf32, #tpu.memory_space<vmem>>, vector<1x1x1x8xf32>
    %160 = vector.shape_cast %159 : vector<1x1x1x8xf32> to vector<1x8xf32>
    %161 = vector.broadcast %160 : vector<1x8xf32> to vector<8x8xf32>
    %162 = arith.addf %158, %161 : vector<8x8xf32>
    %c0_132 = arith.constant 0 : index
    %c7 = arith.constant 7 : index
    %c0_133 = arith.constant 0 : index
    %c0_134 = arith.constant 0 : index
    %163 = vector.load %arg5[%c0_132, %c7, %c0_133, %c0_134] : memref<2x12x32x8xf32, #tpu.memory_space<vmem>>, vector<1x1x32x8xf32>
    %164 = vector.shape_cast %163 : vector<1x1x32x8xf32> to vector<32x8xf32>
    %cst_135 = arith.constant dense<0.000000e+00> : vector<8x8xf32>
    %165 = tpu.matmul %39, %164, %cst_135 {dimension_numbers = #tpu.dot_dimension_numbers<[1], [0], [0], [1], [0, 0, 1, 1], [], []>} : vector<8x32xf32>, vector<32x8xf32>, vector<8x8xf32> -> vector<8x8xf32>
    %c0_136 = arith.constant 0 : index
    %c7_137 = arith.constant 7 : index
    %c0_138 = arith.constant 0 : index
    %c0_139 = arith.constant 0 : index
    %166 = vector.load %arg6[%c0_136, %c7_137, %c0_138, %c0_139] : memref<2x12x1x8xf32, #tpu.memory_space<vmem>>, vector<1x1x1x8xf32>
    %167 = vector.shape_cast %166 : vector<1x1x1x8xf32> to vector<1x8xf32>
    %168 = vector.broadcast %167 : vector<1x8xf32> to vector<8x8xf32>
    %169 = arith.addf %165, %168 : vector<8x8xf32>
    %c0_140 = arith.constant 0 : index
    %c11 = arith.constant 11 : index
    %c0_141 = arith.constant 0 : index
    %c0_142 = arith.constant 0 : index
    %170 = vector.load %arg5[%c0_140, %c11, %c0_141, %c0_142] : memref<2x12x32x8xf32, #tpu.memory_space<vmem>>, vector<1x1x32x8xf32>
    %171 = vector.shape_cast %170 : vector<1x1x32x8xf32> to vector<32x8xf32>
    %cst_143 = arith.constant dense<0.000000e+00> : vector<8x8xf32>
    %172 = tpu.matmul %39, %171, %cst_143 {dimension_numbers = #tpu.dot_dimension_numbers<[1], [0], [0], [1], [0, 0, 1, 1], [], []>} : vector<8x32xf32>, vector<32x8xf32>, vector<8x8xf32> -> vector<8x8xf32>
    %c0_144 = arith.constant 0 : index
    %c11_145 = arith.constant 11 : index
    %c0_146 = arith.constant 0 : index
    %c0_147 = arith.constant 0 : index
    %173 = vector.load %arg6[%c0_144, %c11_145, %c0_146, %c0_147] : memref<2x12x1x8xf32, #tpu.memory_space<vmem>>, vector<1x1x1x8xf32>
    %174 = vector.shape_cast %173 : vector<1x1x1x8xf32> to vector<1x8xf32>
    %175 = vector.broadcast %174 : vector<1x8xf32> to vector<8x8xf32>
    %176 = arith.addf %172, %175 : vector<8x8xf32>
    %cst_148 = arith.constant dense<0.000000e+00> : vector<8x8xf32>
    %177 = tpu.matmul %162, %169, %cst_148 {dimension_numbers = #tpu.dot_dimension_numbers<[1], [1], [0], [0], [0, 0, 1, 0], [], []>} : vector<8x8xf32>, vector<8x8xf32>, vector<8x8xf32> -> vector<8x8xf32>
    %cst_149 = arith.constant 0.353553385 : f32
    %178 = vector.broadcast %cst_149 : f32 to vector<8x8xf32>
    %179 = arith.mulf %177, %178 : vector<8x8xf32>
    %cst_150 = arith.constant dense<0xFF800000> : vector<8xf32>
    %180 = vector.multi_reduction <maximumf>, %179, %cst_150 [1] : vector<8x8xf32> to vector<8xf32>
    %181 = vector.shape_cast %180 : vector<8xf32> to vector<8x1xf32>
    %182 = vector.broadcast %181 : vector<8x1xf32> to vector<8x8xf32>
    %183 = arith.subf %179, %182 : vector<8x8xf32>
    %184 = math.exp %183 : vector<8x8xf32>
    %cst_151 = arith.constant dense<0.000000e+00> : vector<8xf32>
    %185 = vector.multi_reduction <add>, %184, %cst_151 [1] : vector<8x8xf32> to vector<8xf32>
    %186 = vector.shape_cast %185 : vector<8xf32> to vector<8x1xf32>
    %187 = tpu.reciprocal %186 {approx = true} : vector<8x1xf32> -> vector<8x1xf32>
    %188 = vector.broadcast %187 : vector<8x1xf32> to vector<8x8xf32>
    %189 = arith.mulf %184, %188 : vector<8x8xf32>
    %cst_152 = arith.constant dense<0.000000e+00> : vector<8x8xf32>
    %190 = tpu.matmul %189, %176, %cst_152 {dimension_numbers = #tpu.dot_dimension_numbers<[1], [0], [0], [1], [0, 0, 1, 1], [], []>} : vector<8x8xf32>, vector<8x8xf32>, vector<8x8xf32> -> vector<8x8xf32>
    %c0_153 = arith.constant 0 : index
    %c3_154 = arith.constant 3 : index
    %c0_155 = arith.constant 0 : index
    %c0_156 = arith.constant 0 : index
    %191 = vector.load %arg7[%c0_153, %c3_154, %c0_155, %c0_156] : memref<2x4x8x32xf32, #tpu.memory_space<vmem>>, vector<1x1x8x32xf32>
    %192 = vector.shape_cast %191 : vector<1x1x8x32xf32> to vector<8x32xf32>
    %cst_157 = arith.constant dense<0.000000e+00> : vector<8x32xf32>
    %193 = tpu.matmul %190, %192, %cst_157 {dimension_numbers = #tpu.dot_dimension_numbers<[1], [0], [0], [1], [0, 0, 1, 1], [], []>} : vector<8x8xf32>, vector<8x32xf32>, vector<8x32xf32> -> vector<8x32xf32>
    %194 = arith.addf %155, %193 : vector<8x32xf32>
    %c0_158 = arith.constant 0 : index
    %c0_159 = arith.constant 0 : index
    %c0_160 = arith.constant 0 : index
    %195 = vector.load %arg8[%c0_158, %c0_159, %c0_160] : memref<2x1x32xf32, #tpu.memory_space<vmem>>, vector<1x1x32xf32>
    %196 = vector.shape_cast %195 : vector<1x1x32xf32> to vector<1x32xf32>
    %197 = vector.broadcast %196 : vector<1x32xf32> to vector<8x32xf32>
    %198 = arith.addf %194, %197 : vector<8x32xf32>
    %199 = vector.extract_strided_slice %38 {offsets = [8, 0], sizes = [8, 32], strides = [1, 1]} : vector<16x32xf32> to vector<8x32xf32>
    %c0_161 = arith.constant 0 : index
    %c0_162 = arith.constant 0 : index
    %c0_163 = arith.constant 0 : index
    %c0_164 = arith.constant 0 : index
    %200 = vector.load %arg5[%c0_161, %c0_162, %c0_163, %c0_164] : memref<2x12x32x8xf32, #tpu.memory_space<vmem>>, vector<1x1x32x8xf32>
    %201 = vector.shape_cast %200 : vector<1x1x32x8xf32> to vector<32x8xf32>
    %cst_165 = arith.constant dense<0.000000e+00> : vector<8x8xf32>
    %202 = tpu.matmul %199, %201, %cst_165 {dimension_numbers = #tpu.dot_dimension_numbers<[1], [0], [0], [1], [0, 0, 1, 1], [], []>} : vector<8x32xf32>, vector<32x8xf32>, vector<8x8xf32> -> vector<8x8xf32>
    %c0_166 = arith.constant 0 : index
    %c0_167 = arith.constant 0 : index
    %c0_168 = arith.constant 0 : index
    %c0_169 = arith.constant 0 : index
    %203 = vector.load %arg6[%c0_166, %c0_167, %c0_168, %c0_169] : memref<2x12x1x8xf32, #tpu.memory_space<vmem>>, vector<1x1x1x8xf32>
    %204 = vector.shape_cast %203 : vector<1x1x1x8xf32> to vector<1x8xf32>
    %205 = vector.broadcast %204 : vector<1x8xf32> to vector<8x8xf32>
    %206 = arith.addf %202, %205 : vector<8x8xf32>
    %c0_170 = arith.constant 0 : index
    %c4_171 = arith.constant 4 : index
    %c0_172 = arith.constant 0 : index
    %c0_173 = arith.constant 0 : index
    %207 = vector.load %arg5[%c0_170, %c4_171, %c0_172, %c0_173] : memref<2x12x32x8xf32, #tpu.memory_space<vmem>>, vector<1x1x32x8xf32>
    %208 = vector.shape_cast %207 : vector<1x1x32x8xf32> to vector<32x8xf32>
    %cst_174 = arith.constant dense<0.000000e+00> : vector<8x8xf32>
    %209 = tpu.matmul %199, %208, %cst_174 {dimension_numbers = #tpu.dot_dimension_numbers<[1], [0], [0], [1], [0, 0, 1, 1], [], []>} : vector<8x32xf32>, vector<32x8xf32>, vector<8x8xf32> -> vector<8x8xf32>
    %c0_175 = arith.constant 0 : index
    %c4_176 = arith.constant 4 : index
    %c0_177 = arith.constant 0 : index
    %c0_178 = arith.constant 0 : index
    %210 = vector.load %arg6[%c0_175, %c4_176, %c0_177, %c0_178] : memref<2x12x1x8xf32, #tpu.memory_space<vmem>>, vector<1x1x1x8xf32>
    %211 = vector.shape_cast %210 : vector<1x1x1x8xf32> to vector<1x8xf32>
    %212 = vector.broadcast %211 : vector<1x8xf32> to vector<8x8xf32>
    %213 = arith.addf %209, %212 : vector<8x8xf32>
    %c0_179 = arith.constant 0 : index
    %c8_180 = arith.constant 8 : index
    %c0_181 = arith.constant 0 : index
    %c0_182 = arith.constant 0 : index
    %214 = vector.load %arg5[%c0_179, %c8_180, %c0_181, %c0_182] : memref<2x12x32x8xf32, #tpu.memory_space<vmem>>, vector<1x1x32x8xf32>
    %215 = vector.shape_cast %214 : vector<1x1x32x8xf32> to vector<32x8xf32>
    %cst_183 = arith.constant dense<0.000000e+00> : vector<8x8xf32>
    %216 = tpu.matmul %199, %215, %cst_183 {dimension_numbers = #tpu.dot_dimension_numbers<[1], [0], [0], [1], [0, 0, 1, 1], [], []>} : vector<8x32xf32>, vector<32x8xf32>, vector<8x8xf32> -> vector<8x8xf32>
    %c0_184 = arith.constant 0 : index
    %c8_185 = arith.constant 8 : index
    %c0_186 = arith.constant 0 : index
    %c0_187 = arith.constant 0 : index
    %217 = vector.load %arg6[%c0_184, %c8_185, %c0_186, %c0_187] : memref<2x12x1x8xf32, #tpu.memory_space<vmem>>, vector<1x1x1x8xf32>
    %218 = vector.shape_cast %217 : vector<1x1x1x8xf32> to vector<1x8xf32>
    %219 = vector.broadcast %218 : vector<1x8xf32> to vector<8x8xf32>
    %220 = arith.addf %216, %219 : vector<8x8xf32>
    %cst_188 = arith.constant dense<0.000000e+00> : vector<8x8xf32>
    %221 = tpu.matmul %206, %213, %cst_188 {dimension_numbers = #tpu.dot_dimension_numbers<[1], [1], [0], [0], [0, 0, 1, 0], [], []>} : vector<8x8xf32>, vector<8x8xf32>, vector<8x8xf32> -> vector<8x8xf32>
    %cst_189 = arith.constant 0.353553385 : f32
    %222 = vector.broadcast %cst_189 : f32 to vector<8x8xf32>
    %223 = arith.mulf %221, %222 : vector<8x8xf32>
    %cst_190 = arith.constant dense<0xFF800000> : vector<8xf32>
    %224 = vector.multi_reduction <maximumf>, %223, %cst_190 [1] : vector<8x8xf32> to vector<8xf32>
    %225 = vector.shape_cast %224 : vector<8xf32> to vector<8x1xf32>
    %226 = vector.broadcast %225 : vector<8x1xf32> to vector<8x8xf32>
    %227 = arith.subf %223, %226 : vector<8x8xf32>
    %228 = math.exp %227 : vector<8x8xf32>
    %cst_191 = arith.constant dense<0.000000e+00> : vector<8xf32>
    %229 = vector.multi_reduction <add>, %228, %cst_191 [1] : vector<8x8xf32> to vector<8xf32>
    %230 = vector.shape_cast %229 : vector<8xf32> to vector<8x1xf32>
    %231 = tpu.reciprocal %230 {approx = true} : vector<8x1xf32> -> vector<8x1xf32>
    %232 = vector.broadcast %231 : vector<8x1xf32> to vector<8x8xf32>
    %233 = arith.mulf %228, %232 : vector<8x8xf32>
    %cst_192 = arith.constant dense<0.000000e+00> : vector<8x8xf32>
    %234 = tpu.matmul %233, %220, %cst_192 {dimension_numbers = #tpu.dot_dimension_numbers<[1], [0], [0], [1], [0, 0, 1, 1], [], []>} : vector<8x8xf32>, vector<8x8xf32>, vector<8x8xf32> -> vector<8x8xf32>
    %c0_193 = arith.constant 0 : index
    %c0_194 = arith.constant 0 : index
    %c0_195 = arith.constant 0 : index
    %c0_196 = arith.constant 0 : index
    %235 = vector.load %arg7[%c0_193, %c0_194, %c0_195, %c0_196] : memref<2x4x8x32xf32, #tpu.memory_space<vmem>>, vector<1x1x8x32xf32>
    %236 = vector.shape_cast %235 : vector<1x1x8x32xf32> to vector<8x32xf32>
    %cst_197 = arith.constant dense<0.000000e+00> : vector<8x32xf32>
    %237 = tpu.matmul %234, %236, %cst_197 {dimension_numbers = #tpu.dot_dimension_numbers<[1], [0], [0], [1], [0, 0, 1, 1], [], []>} : vector<8x8xf32>, vector<8x32xf32>, vector<8x32xf32> -> vector<8x32xf32>
    %c0_198 = arith.constant 0 : index
    %c1_199 = arith.constant 1 : index
    %c0_200 = arith.constant 0 : index
    %c0_201 = arith.constant 0 : index
    %238 = vector.load %arg5[%c0_198, %c1_199, %c0_200, %c0_201] : memref<2x12x32x8xf32, #tpu.memory_space<vmem>>, vector<1x1x32x8xf32>
    %239 = vector.shape_cast %238 : vector<1x1x32x8xf32> to vector<32x8xf32>
    %cst_202 = arith.constant dense<0.000000e+00> : vector<8x8xf32>
    %240 = tpu.matmul %199, %239, %cst_202 {dimension_numbers = #tpu.dot_dimension_numbers<[1], [0], [0], [1], [0, 0, 1, 1], [], []>} : vector<8x32xf32>, vector<32x8xf32>, vector<8x8xf32> -> vector<8x8xf32>
    %c0_203 = arith.constant 0 : index
    %c1_204 = arith.constant 1 : index
    %c0_205 = arith.constant 0 : index
    %c0_206 = arith.constant 0 : index
    %241 = vector.load %arg6[%c0_203, %c1_204, %c0_205, %c0_206] : memref<2x12x1x8xf32, #tpu.memory_space<vmem>>, vector<1x1x1x8xf32>
    %242 = vector.shape_cast %241 : vector<1x1x1x8xf32> to vector<1x8xf32>
    %243 = vector.broadcast %242 : vector<1x8xf32> to vector<8x8xf32>
    %244 = arith.addf %240, %243 : vector<8x8xf32>
    %c0_207 = arith.constant 0 : index
    %c5_208 = arith.constant 5 : index
    %c0_209 = arith.constant 0 : index
    %c0_210 = arith.constant 0 : index
    %245 = vector.load %arg5[%c0_207, %c5_208, %c0_209, %c0_210] : memref<2x12x32x8xf32, #tpu.memory_space<vmem>>, vector<1x1x32x8xf32>
    %246 = vector.shape_cast %245 : vector<1x1x32x8xf32> to vector<32x8xf32>
    %cst_211 = arith.constant dense<0.000000e+00> : vector<8x8xf32>
    %247 = tpu.matmul %199, %246, %cst_211 {dimension_numbers = #tpu.dot_dimension_numbers<[1], [0], [0], [1], [0, 0, 1, 1], [], []>} : vector<8x32xf32>, vector<32x8xf32>, vector<8x8xf32> -> vector<8x8xf32>
    %c0_212 = arith.constant 0 : index
    %c5_213 = arith.constant 5 : index
    %c0_214 = arith.constant 0 : index
    %c0_215 = arith.constant 0 : index
    %248 = vector.load %arg6[%c0_212, %c5_213, %c0_214, %c0_215] : memref<2x12x1x8xf32, #tpu.memory_space<vmem>>, vector<1x1x1x8xf32>
    %249 = vector.shape_cast %248 : vector<1x1x1x8xf32> to vector<1x8xf32>
    %250 = vector.broadcast %249 : vector<1x8xf32> to vector<8x8xf32>
    %251 = arith.addf %247, %250 : vector<8x8xf32>
    %c0_216 = arith.constant 0 : index
    %c9_217 = arith.constant 9 : index
    %c0_218 = arith.constant 0 : index
    %c0_219 = arith.constant 0 : index
    %252 = vector.load %arg5[%c0_216, %c9_217, %c0_218, %c0_219] : memref<2x12x32x8xf32, #tpu.memory_space<vmem>>, vector<1x1x32x8xf32>
    %253 = vector.shape_cast %252 : vector<1x1x32x8xf32> to vector<32x8xf32>
    %cst_220 = arith.constant dense<0.000000e+00> : vector<8x8xf32>
    %254 = tpu.matmul %199, %253, %cst_220 {dimension_numbers = #tpu.dot_dimension_numbers<[1], [0], [0], [1], [0, 0, 1, 1], [], []>} : vector<8x32xf32>, vector<32x8xf32>, vector<8x8xf32> -> vector<8x8xf32>
    %c0_221 = arith.constant 0 : index
    %c9_222 = arith.constant 9 : index
    %c0_223 = arith.constant 0 : index
    %c0_224 = arith.constant 0 : index
    %255 = vector.load %arg6[%c0_221, %c9_222, %c0_223, %c0_224] : memref<2x12x1x8xf32, #tpu.memory_space<vmem>>, vector<1x1x1x8xf32>
    %256 = vector.shape_cast %255 : vector<1x1x1x8xf32> to vector<1x8xf32>
    %257 = vector.broadcast %256 : vector<1x8xf32> to vector<8x8xf32>
    %258 = arith.addf %254, %257 : vector<8x8xf32>
    %cst_225 = arith.constant dense<0.000000e+00> : vector<8x8xf32>
    %259 = tpu.matmul %244, %251, %cst_225 {dimension_numbers = #tpu.dot_dimension_numbers<[1], [1], [0], [0], [0, 0, 1, 0], [], []>} : vector<8x8xf32>, vector<8x8xf32>, vector<8x8xf32> -> vector<8x8xf32>
    %cst_226 = arith.constant 0.353553385 : f32
    %260 = vector.broadcast %cst_226 : f32 to vector<8x8xf32>
    %261 = arith.mulf %259, %260 : vector<8x8xf32>
    %cst_227 = arith.constant dense<0xFF800000> : vector<8xf32>
    %262 = vector.multi_reduction <maximumf>, %261, %cst_227 [1] : vector<8x8xf32> to vector<8xf32>
    %263 = vector.shape_cast %262 : vector<8xf32> to vector<8x1xf32>
    %264 = vector.broadcast %263 : vector<8x1xf32> to vector<8x8xf32>
    %265 = arith.subf %261, %264 : vector<8x8xf32>
    %266 = math.exp %265 : vector<8x8xf32>
    %cst_228 = arith.constant dense<0.000000e+00> : vector<8xf32>
    %267 = vector.multi_reduction <add>, %266, %cst_228 [1] : vector<8x8xf32> to vector<8xf32>
    %268 = vector.shape_cast %267 : vector<8xf32> to vector<8x1xf32>
    %269 = tpu.reciprocal %268 {approx = true} : vector<8x1xf32> -> vector<8x1xf32>
    %270 = vector.broadcast %269 : vector<8x1xf32> to vector<8x8xf32>
    %271 = arith.mulf %266, %270 : vector<8x8xf32>
    %cst_229 = arith.constant dense<0.000000e+00> : vector<8x8xf32>
    %272 = tpu.matmul %271, %258, %cst_229 {dimension_numbers = #tpu.dot_dimension_numbers<[1], [0], [0], [1], [0, 0, 1, 1], [], []>} : vector<8x8xf32>, vector<8x8xf32>, vector<8x8xf32> -> vector<8x8xf32>
    %c0_230 = arith.constant 0 : index
    %c1_231 = arith.constant 1 : index
    %c0_232 = arith.constant 0 : index
    %c0_233 = arith.constant 0 : index
    %273 = vector.load %arg7[%c0_230, %c1_231, %c0_232, %c0_233] : memref<2x4x8x32xf32, #tpu.memory_space<vmem>>, vector<1x1x8x32xf32>
    %274 = vector.shape_cast %273 : vector<1x1x8x32xf32> to vector<8x32xf32>
    %cst_234 = arith.constant dense<0.000000e+00> : vector<8x32xf32>
    %275 = tpu.matmul %272, %274, %cst_234 {dimension_numbers = #tpu.dot_dimension_numbers<[1], [0], [0], [1], [0, 0, 1, 1], [], []>} : vector<8x8xf32>, vector<8x32xf32>, vector<8x32xf32> -> vector<8x32xf32>
    %276 = arith.addf %237, %275 : vector<8x32xf32>
    %c0_235 = arith.constant 0 : index
    %c2_236 = arith.constant 2 : index
    %c0_237 = arith.constant 0 : index
    %c0_238 = arith.constant 0 : index
    %277 = vector.load %arg5[%c0_235, %c2_236, %c0_237, %c0_238] : memref<2x12x32x8xf32, #tpu.memory_space<vmem>>, vector<1x1x32x8xf32>
    %278 = vector.shape_cast %277 : vector<1x1x32x8xf32> to vector<32x8xf32>
    %cst_239 = arith.constant dense<0.000000e+00> : vector<8x8xf32>
    %279 = tpu.matmul %199, %278, %cst_239 {dimension_numbers = #tpu.dot_dimension_numbers<[1], [0], [0], [1], [0, 0, 1, 1], [], []>} : vector<8x32xf32>, vector<32x8xf32>, vector<8x8xf32> -> vector<8x8xf32>
    %c0_240 = arith.constant 0 : index
    %c2_241 = arith.constant 2 : index
    %c0_242 = arith.constant 0 : index
    %c0_243 = arith.constant 0 : index
    %280 = vector.load %arg6[%c0_240, %c2_241, %c0_242, %c0_243] : memref<2x12x1x8xf32, #tpu.memory_space<vmem>>, vector<1x1x1x8xf32>
    %281 = vector.shape_cast %280 : vector<1x1x1x8xf32> to vector<1x8xf32>
    %282 = vector.broadcast %281 : vector<1x8xf32> to vector<8x8xf32>
    %283 = arith.addf %279, %282 : vector<8x8xf32>
    %c0_244 = arith.constant 0 : index
    %c6_245 = arith.constant 6 : index
    %c0_246 = arith.constant 0 : index
    %c0_247 = arith.constant 0 : index
    %284 = vector.load %arg5[%c0_244, %c6_245, %c0_246, %c0_247] : memref<2x12x32x8xf32, #tpu.memory_space<vmem>>, vector<1x1x32x8xf32>
    %285 = vector.shape_cast %284 : vector<1x1x32x8xf32> to vector<32x8xf32>
    %cst_248 = arith.constant dense<0.000000e+00> : vector<8x8xf32>
    %286 = tpu.matmul %199, %285, %cst_248 {dimension_numbers = #tpu.dot_dimension_numbers<[1], [0], [0], [1], [0, 0, 1, 1], [], []>} : vector<8x32xf32>, vector<32x8xf32>, vector<8x8xf32> -> vector<8x8xf32>
    %c0_249 = arith.constant 0 : index
    %c6_250 = arith.constant 6 : index
    %c0_251 = arith.constant 0 : index
    %c0_252 = arith.constant 0 : index
    %287 = vector.load %arg6[%c0_249, %c6_250, %c0_251, %c0_252] : memref<2x12x1x8xf32, #tpu.memory_space<vmem>>, vector<1x1x1x8xf32>
    %288 = vector.shape_cast %287 : vector<1x1x1x8xf32> to vector<1x8xf32>
    %289 = vector.broadcast %288 : vector<1x8xf32> to vector<8x8xf32>
    %290 = arith.addf %286, %289 : vector<8x8xf32>
    %c0_253 = arith.constant 0 : index
    %c10_254 = arith.constant 10 : index
    %c0_255 = arith.constant 0 : index
    %c0_256 = arith.constant 0 : index
    %291 = vector.load %arg5[%c0_253, %c10_254, %c0_255, %c0_256] : memref<2x12x32x8xf32, #tpu.memory_space<vmem>>, vector<1x1x32x8xf32>
    %292 = vector.shape_cast %291 : vector<1x1x32x8xf32> to vector<32x8xf32>
    %cst_257 = arith.constant dense<0.000000e+00> : vector<8x8xf32>
    %293 = tpu.matmul %199, %292, %cst_257 {dimension_numbers = #tpu.dot_dimension_numbers<[1], [0], [0], [1], [0, 0, 1, 1], [], []>} : vector<8x32xf32>, vector<32x8xf32>, vector<8x8xf32> -> vector<8x8xf32>
    %c0_258 = arith.constant 0 : index
    %c10_259 = arith.constant 10 : index
    %c0_260 = arith.constant 0 : index
    %c0_261 = arith.constant 0 : index
    %294 = vector.load %arg6[%c0_258, %c10_259, %c0_260, %c0_261] : memref<2x12x1x8xf32, #tpu.memory_space<vmem>>, vector<1x1x1x8xf32>
    %295 = vector.shape_cast %294 : vector<1x1x1x8xf32> to vector<1x8xf32>
    %296 = vector.broadcast %295 : vector<1x8xf32> to vector<8x8xf32>
    %297 = arith.addf %293, %296 : vector<8x8xf32>
    %cst_262 = arith.constant dense<0.000000e+00> : vector<8x8xf32>
    %298 = tpu.matmul %283, %290, %cst_262 {dimension_numbers = #tpu.dot_dimension_numbers<[1], [1], [0], [0], [0, 0, 1, 0], [], []>} : vector<8x8xf32>, vector<8x8xf32>, vector<8x8xf32> -> vector<8x8xf32>
    %cst_263 = arith.constant 0.353553385 : f32
    %299 = vector.broadcast %cst_263 : f32 to vector<8x8xf32>
    %300 = arith.mulf %298, %299 : vector<8x8xf32>
    %cst_264 = arith.constant dense<0xFF800000> : vector<8xf32>
    %301 = vector.multi_reduction <maximumf>, %300, %cst_264 [1] : vector<8x8xf32> to vector<8xf32>
    %302 = vector.shape_cast %301 : vector<8xf32> to vector<8x1xf32>
    %303 = vector.broadcast %302 : vector<8x1xf32> to vector<8x8xf32>
    %304 = arith.subf %300, %303 : vector<8x8xf32>
    %305 = math.exp %304 : vector<8x8xf32>
    %cst_265 = arith.constant dense<0.000000e+00> : vector<8xf32>
    %306 = vector.multi_reduction <add>, %305, %cst_265 [1] : vector<8x8xf32> to vector<8xf32>
    %307 = vector.shape_cast %306 : vector<8xf32> to vector<8x1xf32>
    %308 = tpu.reciprocal %307 {approx = true} : vector<8x1xf32> -> vector<8x1xf32>
    %309 = vector.broadcast %308 : vector<8x1xf32> to vector<8x8xf32>
    %310 = arith.mulf %305, %309 : vector<8x8xf32>
    %cst_266 = arith.constant dense<0.000000e+00> : vector<8x8xf32>
    %311 = tpu.matmul %310, %297, %cst_266 {dimension_numbers = #tpu.dot_dimension_numbers<[1], [0], [0], [1], [0, 0, 1, 1], [], []>} : vector<8x8xf32>, vector<8x8xf32>, vector<8x8xf32> -> vector<8x8xf32>
    %c0_267 = arith.constant 0 : index
    %c2_268 = arith.constant 2 : index
    %c0_269 = arith.constant 0 : index
    %c0_270 = arith.constant 0 : index
    %312 = vector.load %arg7[%c0_267, %c2_268, %c0_269, %c0_270] : memref<2x4x8x32xf32, #tpu.memory_space<vmem>>, vector<1x1x8x32xf32>
    %313 = vector.shape_cast %312 : vector<1x1x8x32xf32> to vector<8x32xf32>
    %cst_271 = arith.constant dense<0.000000e+00> : vector<8x32xf32>
    %314 = tpu.matmul %311, %313, %cst_271 {dimension_numbers = #tpu.dot_dimension_numbers<[1], [0], [0], [1], [0, 0, 1, 1], [], []>} : vector<8x8xf32>, vector<8x32xf32>, vector<8x32xf32> -> vector<8x32xf32>
    %315 = arith.addf %276, %314 : vector<8x32xf32>
    %c0_272 = arith.constant 0 : index
    %c3_273 = arith.constant 3 : index
    %c0_274 = arith.constant 0 : index
    %c0_275 = arith.constant 0 : index
    %316 = vector.load %arg5[%c0_272, %c3_273, %c0_274, %c0_275] : memref<2x12x32x8xf32, #tpu.memory_space<vmem>>, vector<1x1x32x8xf32>
    %317 = vector.shape_cast %316 : vector<1x1x32x8xf32> to vector<32x8xf32>
    %cst_276 = arith.constant dense<0.000000e+00> : vector<8x8xf32>
    %318 = tpu.matmul %199, %317, %cst_276 {dimension_numbers = #tpu.dot_dimension_numbers<[1], [0], [0], [1], [0, 0, 1, 1], [], []>} : vector<8x32xf32>, vector<32x8xf32>, vector<8x8xf32> -> vector<8x8xf32>
    %c0_277 = arith.constant 0 : index
    %c3_278 = arith.constant 3 : index
    %c0_279 = arith.constant 0 : index
    %c0_280 = arith.constant 0 : index
    %319 = vector.load %arg6[%c0_277, %c3_278, %c0_279, %c0_280] : memref<2x12x1x8xf32, #tpu.memory_space<vmem>>, vector<1x1x1x8xf32>
    %320 = vector.shape_cast %319 : vector<1x1x1x8xf32> to vector<1x8xf32>
    %321 = vector.broadcast %320 : vector<1x8xf32> to vector<8x8xf32>
    %322 = arith.addf %318, %321 : vector<8x8xf32>
    %c0_281 = arith.constant 0 : index
    %c7_282 = arith.constant 7 : index
    %c0_283 = arith.constant 0 : index
    %c0_284 = arith.constant 0 : index
    %323 = vector.load %arg5[%c0_281, %c7_282, %c0_283, %c0_284] : memref<2x12x32x8xf32, #tpu.memory_space<vmem>>, vector<1x1x32x8xf32>
    %324 = vector.shape_cast %323 : vector<1x1x32x8xf32> to vector<32x8xf32>
    %cst_285 = arith.constant dense<0.000000e+00> : vector<8x8xf32>
    %325 = tpu.matmul %199, %324, %cst_285 {dimension_numbers = #tpu.dot_dimension_numbers<[1], [0], [0], [1], [0, 0, 1, 1], [], []>} : vector<8x32xf32>, vector<32x8xf32>, vector<8x8xf32> -> vector<8x8xf32>
    %c0_286 = arith.constant 0 : index
    %c7_287 = arith.constant 7 : index
    %c0_288 = arith.constant 0 : index
    %c0_289 = arith.constant 0 : index
    %326 = vector.load %arg6[%c0_286, %c7_287, %c0_288, %c0_289] : memref<2x12x1x8xf32, #tpu.memory_space<vmem>>, vector<1x1x1x8xf32>
    %327 = vector.shape_cast %326 : vector<1x1x1x8xf32> to vector<1x8xf32>
    %328 = vector.broadcast %327 : vector<1x8xf32> to vector<8x8xf32>
    %329 = arith.addf %325, %328 : vector<8x8xf32>
    %c0_290 = arith.constant 0 : index
    %c11_291 = arith.constant 11 : index
    %c0_292 = arith.constant 0 : index
    %c0_293 = arith.constant 0 : index
    %330 = vector.load %arg5[%c0_290, %c11_291, %c0_292, %c0_293] : memref<2x12x32x8xf32, #tpu.memory_space<vmem>>, vector<1x1x32x8xf32>
    %331 = vector.shape_cast %330 : vector<1x1x32x8xf32> to vector<32x8xf32>
    %cst_294 = arith.constant dense<0.000000e+00> : vector<8x8xf32>
    %332 = tpu.matmul %199, %331, %cst_294 {dimension_numbers = #tpu.dot_dimension_numbers<[1], [0], [0], [1], [0, 0, 1, 1], [], []>} : vector<8x32xf32>, vector<32x8xf32>, vector<8x8xf32> -> vector<8x8xf32>
    %c0_295 = arith.constant 0 : index
    %c11_296 = arith.constant 11 : index
    %c0_297 = arith.constant 0 : index
    %c0_298 = arith.constant 0 : index
    %333 = vector.load %arg6[%c0_295, %c11_296, %c0_297, %c0_298] : memref<2x12x1x8xf32, #tpu.memory_space<vmem>>, vector<1x1x1x8xf32>
    %334 = vector.shape_cast %333 : vector<1x1x1x8xf32> to vector<1x8xf32>
    %335 = vector.broadcast %334 : vector<1x8xf32> to vector<8x8xf32>
    %336 = arith.addf %332, %335 : vector<8x8xf32>
    %cst_299 = arith.constant dense<0.000000e+00> : vector<8x8xf32>
    %337 = tpu.matmul %322, %329, %cst_299 {dimension_numbers = #tpu.dot_dimension_numbers<[1], [1], [0], [0], [0, 0, 1, 0], [], []>} : vector<8x8xf32>, vector<8x8xf32>, vector<8x8xf32> -> vector<8x8xf32>
    %cst_300 = arith.constant 0.353553385 : f32
    %338 = vector.broadcast %cst_300 : f32 to vector<8x8xf32>
    %339 = arith.mulf %337, %338 : vector<8x8xf32>
    %cst_301 = arith.constant dense<0xFF800000> : vector<8xf32>
    %340 = vector.multi_reduction <maximumf>, %339, %cst_301 [1] : vector<8x8xf32> to vector<8xf32>
    %341 = vector.shape_cast %340 : vector<8xf32> to vector<8x1xf32>
    %342 = vector.broadcast %341 : vector<8x1xf32> to vector<8x8xf32>
    %343 = arith.subf %339, %342 : vector<8x8xf32>
    %344 = math.exp %343 : vector<8x8xf32>
    %cst_302 = arith.constant dense<0.000000e+00> : vector<8xf32>
    %345 = vector.multi_reduction <add>, %344, %cst_302 [1] : vector<8x8xf32> to vector<8xf32>
    %346 = vector.shape_cast %345 : vector<8xf32> to vector<8x1xf32>
    %347 = tpu.reciprocal %346 {approx = true} : vector<8x1xf32> -> vector<8x1xf32>
    %348 = vector.broadcast %347 : vector<8x1xf32> to vector<8x8xf32>
    %349 = arith.mulf %344, %348 : vector<8x8xf32>
    %cst_303 = arith.constant dense<0.000000e+00> : vector<8x8xf32>
    %350 = tpu.matmul %349, %336, %cst_303 {dimension_numbers = #tpu.dot_dimension_numbers<[1], [0], [0], [1], [0, 0, 1, 1], [], []>} : vector<8x8xf32>, vector<8x8xf32>, vector<8x8xf32> -> vector<8x8xf32>
    %c0_304 = arith.constant 0 : index
    %c3_305 = arith.constant 3 : index
    %c0_306 = arith.constant 0 : index
    %c0_307 = arith.constant 0 : index
    %351 = vector.load %arg7[%c0_304, %c3_305, %c0_306, %c0_307] : memref<2x4x8x32xf32, #tpu.memory_space<vmem>>, vector<1x1x8x32xf32>
    %352 = vector.shape_cast %351 : vector<1x1x8x32xf32> to vector<8x32xf32>
    %cst_308 = arith.constant dense<0.000000e+00> : vector<8x32xf32>
    %353 = tpu.matmul %350, %352, %cst_308 {dimension_numbers = #tpu.dot_dimension_numbers<[1], [0], [0], [1], [0, 0, 1, 1], [], []>} : vector<8x8xf32>, vector<8x32xf32>, vector<8x32xf32> -> vector<8x32xf32>
    %354 = arith.addf %315, %353 : vector<8x32xf32>
    %c0_309 = arith.constant 0 : index
    %c0_310 = arith.constant 0 : index
    %c0_311 = arith.constant 0 : index
    %355 = vector.load %arg8[%c0_309, %c0_310, %c0_311] : memref<2x1x32xf32, #tpu.memory_space<vmem>>, vector<1x1x32xf32>
    %356 = vector.shape_cast %355 : vector<1x1x32xf32> to vector<1x32xf32>
    %357 = vector.broadcast %356 : vector<1x32xf32> to vector<8x32xf32>
    %358 = arith.addf %354, %357 : vector<8x32xf32>
    %359 = tpu.concatenate %198, %358 in 0 : vector<8x32xf32>, vector<8x32xf32> -> vector<16x32xf32>
    %360 = arith.addf %12, %359 : vector<16x32xf32>
    %c0_312 = arith.constant 0 : index
    %c1_313 = arith.constant 1 : index
    %c0_314 = arith.constant 0 : index
    %c0_315 = arith.constant 0 : index
    %361 = vector.load %arg9[%c0_312, %c1_313, %c0_314, %c0_315] : memref<2x2x1x32xf32, #tpu.memory_space<vmem>>, vector<1x1x1x32xf32>
    %362 = vector.shape_cast %361 : vector<1x1x1x32xf32> to vector<1x32xf32>
    %c0_316 = arith.constant 0 : index
    %c1_317 = arith.constant 1 : index
    %c0_318 = arith.constant 0 : index
    %c0_319 = arith.constant 0 : index
    %363 = vector.load %arg10[%c0_316, %c1_317, %c0_318, %c0_319] : memref<2x2x1x32xf32, #tpu.memory_space<vmem>>, vector<1x1x1x32xf32>
    %364 = vector.shape_cast %363 : vector<1x1x1x32xf32> to vector<1x32xf32>
    %cst_320 = arith.constant dense<0.000000e+00> : vector<16xf32>
    %365 = vector.multi_reduction <add>, %360, %cst_320 [1] : vector<16x32xf32> to vector<16xf32>
    %366 = vector.shape_cast %365 : vector<16xf32> to vector<16x1xf32>
    %cst_321 = arith.constant 3.200000e+01 : f32
    %367 = vector.broadcast %cst_321 : f32 to vector<16x1xf32>
    %368 = arith.divf %366, %367 : vector<16x1xf32>
    %369 = vector.broadcast %368 : vector<16x1xf32> to vector<16x32xf32>
    %370 = arith.subf %360, %369 : vector<16x32xf32>
    %371 = arith.mulf %370, %370 : vector<16x32xf32>
    %cst_322 = arith.constant dense<0.000000e+00> : vector<16xf32>
    %372 = vector.multi_reduction <add>, %371, %cst_322 [1] : vector<16x32xf32> to vector<16xf32>
    %373 = vector.shape_cast %372 : vector<16xf32> to vector<16x1xf32>
    %cst_323 = arith.constant 3.200000e+01 : f32
    %374 = vector.broadcast %cst_323 : f32 to vector<16x1xf32>
    %375 = arith.divf %373, %374 : vector<16x1xf32>
    %376 = vector.broadcast %368 : vector<16x1xf32> to vector<16x32xf32>
    %377 = arith.subf %360, %376 : vector<16x32xf32>
    %cst_324 = arith.constant 9.99999974E-6 : f32
    %378 = vector.broadcast %cst_324 : f32 to vector<16x1xf32>
    %379 = arith.addf %375, %378 : vector<16x1xf32>
    %380 = math.rsqrt %379 : vector<16x1xf32>
    %381 = vector.broadcast %380 : vector<16x1xf32> to vector<16x32xf32>
    %382 = arith.mulf %377, %381 : vector<16x32xf32>
    %383 = vector.broadcast %362 : vector<1x32xf32> to vector<16x32xf32>
    %384 = arith.mulf %382, %383 : vector<16x32xf32>
    %385 = vector.broadcast %364 : vector<1x32xf32> to vector<16x32xf32>
    %386 = arith.addf %384, %385 : vector<16x32xf32>
    %c0_325 = arith.constant 0 : index
    %c0_326 = arith.constant 0 : index
    %c0_327 = arith.constant 0 : index
    %387 = vector.load %arg11[%c0_325, %c0_326, %c0_327] : memref<2x32x64xf32, #tpu.memory_space<vmem>>, vector<1x32x64xf32>
    %388 = vector.shape_cast %387 : vector<1x32x64xf32> to vector<32x64xf32>
    %cst_328 = arith.constant dense<0.000000e+00> : vector<16x64xf32>
    %389 = tpu.matmul %386, %388, %cst_328 {dimension_numbers = #tpu.dot_dimension_numbers<[1], [0], [0], [1], [0, 0, 1, 1], [], []>} : vector<16x32xf32>, vector<32x64xf32>, vector<16x64xf32> -> vector<16x64xf32>
    %c0_329 = arith.constant 0 : index
    %c0_330 = arith.constant 0 : index
    %c0_331 = arith.constant 0 : index
    %390 = vector.load %arg12[%c0_329, %c0_330, %c0_331] : memref<2x1x64xf32, #tpu.memory_space<vmem>>, vector<1x1x64xf32>
    %391 = vector.shape_cast %390 : vector<1x1x64xf32> to vector<1x64xf32>
    %392 = vector.broadcast %391 : vector<1x64xf32> to vector<16x64xf32>
    %393 = arith.addf %389, %392 : vector<16x64xf32>
    %cst_332 = arith.constant 0.000000e+00 : f32
    %394 = vector.broadcast %cst_332 : f32 to vector<16x64xf32>
    %395 = arith.maximumf %393, %394 : vector<16x64xf32>
    %c0_333 = arith.constant 0 : index
    %c0_334 = arith.constant 0 : index
    %c0_335 = arith.constant 0 : index
    %396 = vector.load %arg13[%c0_333, %c0_334, %c0_335] : memref<2x64x32xf32, #tpu.memory_space<vmem>>, vector<1x64x32xf32>
    %397 = vector.shape_cast %396 : vector<1x64x32xf32> to vector<64x32xf32>
    %cst_336 = arith.constant dense<0.000000e+00> : vector<16x32xf32>
    %398 = tpu.matmul %395, %397, %cst_336 {dimension_numbers = #tpu.dot_dimension_numbers<[1], [0], [0], [1], [0, 0, 1, 1], [], []>} : vector<16x64xf32>, vector<64x32xf32>, vector<16x32xf32> -> vector<16x32xf32>
    %c0_337 = arith.constant 0 : index
    %c0_338 = arith.constant 0 : index
    %c0_339 = arith.constant 0 : index
    %399 = vector.load %arg14[%c0_337, %c0_338, %c0_339] : memref<2x1x32xf32, #tpu.memory_space<vmem>>, vector<1x1x32xf32>
    %400 = vector.shape_cast %399 : vector<1x1x32xf32> to vector<1x32xf32>
    %401 = vector.broadcast %400 : vector<1x32xf32> to vector<16x32xf32>
    %402 = arith.addf %398, %401 : vector<16x32xf32>
    %403 = arith.addf %360, %402 : vector<16x32xf32>
    %c1_340 = arith.constant 1 : index
    %c0_341 = arith.constant 0 : index
    %c0_342 = arith.constant 0 : index
    %c0_343 = arith.constant 0 : index
    %404 = vector.load %arg9[%c1_340, %c0_341, %c0_342, %c0_343] : memref<2x2x1x32xf32, #tpu.memory_space<vmem>>, vector<1x1x1x32xf32>
    %405 = vector.shape_cast %404 : vector<1x1x1x32xf32> to vector<1x32xf32>
    %c1_344 = arith.constant 1 : index
    %c0_345 = arith.constant 0 : index
    %c0_346 = arith.constant 0 : index
    %c0_347 = arith.constant 0 : index
    %406 = vector.load %arg10[%c1_344, %c0_345, %c0_346, %c0_347] : memref<2x2x1x32xf32, #tpu.memory_space<vmem>>, vector<1x1x1x32xf32>
    %407 = vector.shape_cast %406 : vector<1x1x1x32xf32> to vector<1x32xf32>
    %cst_348 = arith.constant dense<0.000000e+00> : vector<16xf32>
    %408 = vector.multi_reduction <add>, %403, %cst_348 [1] : vector<16x32xf32> to vector<16xf32>
    %409 = vector.shape_cast %408 : vector<16xf32> to vector<16x1xf32>
    %cst_349 = arith.constant 3.200000e+01 : f32
    %410 = vector.broadcast %cst_349 : f32 to vector<16x1xf32>
    %411 = arith.divf %409, %410 : vector<16x1xf32>
    %412 = vector.broadcast %411 : vector<16x1xf32> to vector<16x32xf32>
    %413 = arith.subf %403, %412 : vector<16x32xf32>
    %414 = arith.mulf %413, %413 : vector<16x32xf32>
    %cst_350 = arith.constant dense<0.000000e+00> : vector<16xf32>
    %415 = vector.multi_reduction <add>, %414, %cst_350 [1] : vector<16x32xf32> to vector<16xf32>
    %416 = vector.shape_cast %415 : vector<16xf32> to vector<16x1xf32>
    %cst_351 = arith.constant 3.200000e+01 : f32
    %417 = vector.broadcast %cst_351 : f32 to vector<16x1xf32>
    %418 = arith.divf %416, %417 : vector<16x1xf32>
    %419 = vector.broadcast %411 : vector<16x1xf32> to vector<16x32xf32>
    %420 = arith.subf %403, %419 : vector<16x32xf32>
    %cst_352 = arith.constant 9.99999974E-6 : f32
    %421 = vector.broadcast %cst_352 : f32 to vector<16x1xf32>
    %422 = arith.addf %418, %421 : vector<16x1xf32>
    %423 = math.rsqrt %422 : vector<16x1xf32>
    %424 = vector.broadcast %423 : vector<16x1xf32> to vector<16x32xf32>
    %425 = arith.mulf %420, %424 : vector<16x32xf32>
    %426 = vector.broadcast %405 : vector<1x32xf32> to vector<16x32xf32>
    %427 = arith.mulf %425, %426 : vector<16x32xf32>
    %428 = vector.broadcast %407 : vector<1x32xf32> to vector<16x32xf32>
    %429 = arith.addf %427, %428 : vector<16x32xf32>
    %430 = vector.extract_strided_slice %429 {offsets = [0, 0], sizes = [8, 32], strides = [1, 1]} : vector<16x32xf32> to vector<8x32xf32>
    %c1_353 = arith.constant 1 : index
    %c0_354 = arith.constant 0 : index
    %c0_355 = arith.constant 0 : index
    %c0_356 = arith.constant 0 : index
    %431 = vector.load %arg5[%c1_353, %c0_354, %c0_355, %c0_356] : memref<2x12x32x8xf32, #tpu.memory_space<vmem>>, vector<1x1x32x8xf32>
    %432 = vector.shape_cast %431 : vector<1x1x32x8xf32> to vector<32x8xf32>
    %cst_357 = arith.constant dense<0.000000e+00> : vector<8x8xf32>
    %433 = tpu.matmul %430, %432, %cst_357 {dimension_numbers = #tpu.dot_dimension_numbers<[1], [0], [0], [1], [0, 0, 1, 1], [], []>} : vector<8x32xf32>, vector<32x8xf32>, vector<8x8xf32> -> vector<8x8xf32>
    %c1_358 = arith.constant 1 : index
    %c0_359 = arith.constant 0 : index
    %c0_360 = arith.constant 0 : index
    %c0_361 = arith.constant 0 : index
    %434 = vector.load %arg6[%c1_358, %c0_359, %c0_360, %c0_361] : memref<2x12x1x8xf32, #tpu.memory_space<vmem>>, vector<1x1x1x8xf32>
    %435 = vector.shape_cast %434 : vector<1x1x1x8xf32> to vector<1x8xf32>
    %436 = vector.broadcast %435 : vector<1x8xf32> to vector<8x8xf32>
    %437 = arith.addf %433, %436 : vector<8x8xf32>
    %c1_362 = arith.constant 1 : index
    %c4_363 = arith.constant 4 : index
    %c0_364 = arith.constant 0 : index
    %c0_365 = arith.constant 0 : index
    %438 = vector.load %arg5[%c1_362, %c4_363, %c0_364, %c0_365] : memref<2x12x32x8xf32, #tpu.memory_space<vmem>>, vector<1x1x32x8xf32>
    %439 = vector.shape_cast %438 : vector<1x1x32x8xf32> to vector<32x8xf32>
    %cst_366 = arith.constant dense<0.000000e+00> : vector<8x8xf32>
    %440 = tpu.matmul %430, %439, %cst_366 {dimension_numbers = #tpu.dot_dimension_numbers<[1], [0], [0], [1], [0, 0, 1, 1], [], []>} : vector<8x32xf32>, vector<32x8xf32>, vector<8x8xf32> -> vector<8x8xf32>
    %c1_367 = arith.constant 1 : index
    %c4_368 = arith.constant 4 : index
    %c0_369 = arith.constant 0 : index
    %c0_370 = arith.constant 0 : index
    %441 = vector.load %arg6[%c1_367, %c4_368, %c0_369, %c0_370] : memref<2x12x1x8xf32, #tpu.memory_space<vmem>>, vector<1x1x1x8xf32>
    %442 = vector.shape_cast %441 : vector<1x1x1x8xf32> to vector<1x8xf32>
    %443 = vector.broadcast %442 : vector<1x8xf32> to vector<8x8xf32>
    %444 = arith.addf %440, %443 : vector<8x8xf32>
    %c1_371 = arith.constant 1 : index
    %c8_372 = arith.constant 8 : index
    %c0_373 = arith.constant 0 : index
    %c0_374 = arith.constant 0 : index
    %445 = vector.load %arg5[%c1_371, %c8_372, %c0_373, %c0_374] : memref<2x12x32x8xf32, #tpu.memory_space<vmem>>, vector<1x1x32x8xf32>
    %446 = vector.shape_cast %445 : vector<1x1x32x8xf32> to vector<32x8xf32>
    %cst_375 = arith.constant dense<0.000000e+00> : vector<8x8xf32>
    %447 = tpu.matmul %430, %446, %cst_375 {dimension_numbers = #tpu.dot_dimension_numbers<[1], [0], [0], [1], [0, 0, 1, 1], [], []>} : vector<8x32xf32>, vector<32x8xf32>, vector<8x8xf32> -> vector<8x8xf32>
    %c1_376 = arith.constant 1 : index
    %c8_377 = arith.constant 8 : index
    %c0_378 = arith.constant 0 : index
    %c0_379 = arith.constant 0 : index
    %448 = vector.load %arg6[%c1_376, %c8_377, %c0_378, %c0_379] : memref<2x12x1x8xf32, #tpu.memory_space<vmem>>, vector<1x1x1x8xf32>
    %449 = vector.shape_cast %448 : vector<1x1x1x8xf32> to vector<1x8xf32>
    %450 = vector.broadcast %449 : vector<1x8xf32> to vector<8x8xf32>
    %451 = arith.addf %447, %450 : vector<8x8xf32>
    %cst_380 = arith.constant dense<0.000000e+00> : vector<8x8xf32>
    %452 = tpu.matmul %437, %444, %cst_380 {dimension_numbers = #tpu.dot_dimension_numbers<[1], [1], [0], [0], [0, 0, 1, 0], [], []>} : vector<8x8xf32>, vector<8x8xf32>, vector<8x8xf32> -> vector<8x8xf32>
    %cst_381 = arith.constant 0.353553385 : f32
    %453 = vector.broadcast %cst_381 : f32 to vector<8x8xf32>
    %454 = arith.mulf %452, %453 : vector<8x8xf32>
    %cst_382 = arith.constant dense<0xFF800000> : vector<8xf32>
    %455 = vector.multi_reduction <maximumf>, %454, %cst_382 [1] : vector<8x8xf32> to vector<8xf32>
    %456 = vector.shape_cast %455 : vector<8xf32> to vector<8x1xf32>
    %457 = vector.broadcast %456 : vector<8x1xf32> to vector<8x8xf32>
    %458 = arith.subf %454, %457 : vector<8x8xf32>
    %459 = math.exp %458 : vector<8x8xf32>
    %cst_383 = arith.constant dense<0.000000e+00> : vector<8xf32>
    %460 = vector.multi_reduction <add>, %459, %cst_383 [1] : vector<8x8xf32> to vector<8xf32>
    %461 = vector.shape_cast %460 : vector<8xf32> to vector<8x1xf32>
    %462 = tpu.reciprocal %461 {approx = true} : vector<8x1xf32> -> vector<8x1xf32>
    %463 = vector.broadcast %462 : vector<8x1xf32> to vector<8x8xf32>
    %464 = arith.mulf %459, %463 : vector<8x8xf32>
    %cst_384 = arith.constant dense<0.000000e+00> : vector<8x8xf32>
    %465 = tpu.matmul %464, %451, %cst_384 {dimension_numbers = #tpu.dot_dimension_numbers<[1], [0], [0], [1], [0, 0, 1, 1], [], []>} : vector<8x8xf32>, vector<8x8xf32>, vector<8x8xf32> -> vector<8x8xf32>
    %c1_385 = arith.constant 1 : index
    %c0_386 = arith.constant 0 : index
    %c0_387 = arith.constant 0 : index
    %c0_388 = arith.constant 0 : index
    %466 = vector.load %arg7[%c1_385, %c0_386, %c0_387, %c0_388] : memref<2x4x8x32xf32, #tpu.memory_space<vmem>>, vector<1x1x8x32xf32>
    %467 = vector.shape_cast %466 : vector<1x1x8x32xf32> to vector<8x32xf32>
    %cst_389 = arith.constant dense<0.000000e+00> : vector<8x32xf32>
    %468 = tpu.matmul %465, %467, %cst_389 {dimension_numbers = #tpu.dot_dimension_numbers<[1], [0], [0], [1], [0, 0, 1, 1], [], []>} : vector<8x8xf32>, vector<8x32xf32>, vector<8x32xf32> -> vector<8x32xf32>
    %c1_390 = arith.constant 1 : index
    %c1_391 = arith.constant 1 : index
    %c0_392 = arith.constant 0 : index
    %c0_393 = arith.constant 0 : index
    %469 = vector.load %arg5[%c1_390, %c1_391, %c0_392, %c0_393] : memref<2x12x32x8xf32, #tpu.memory_space<vmem>>, vector<1x1x32x8xf32>
    %470 = vector.shape_cast %469 : vector<1x1x32x8xf32> to vector<32x8xf32>
    %cst_394 = arith.constant dense<0.000000e+00> : vector<8x8xf32>
    %471 = tpu.matmul %430, %470, %cst_394 {dimension_numbers = #tpu.dot_dimension_numbers<[1], [0], [0], [1], [0, 0, 1, 1], [], []>} : vector<8x32xf32>, vector<32x8xf32>, vector<8x8xf32> -> vector<8x8xf32>
    %c1_395 = arith.constant 1 : index
    %c1_396 = arith.constant 1 : index
    %c0_397 = arith.constant 0 : index
    %c0_398 = arith.constant 0 : index
    %472 = vector.load %arg6[%c1_395, %c1_396, %c0_397, %c0_398] : memref<2x12x1x8xf32, #tpu.memory_space<vmem>>, vector<1x1x1x8xf32>
    %473 = vector.shape_cast %472 : vector<1x1x1x8xf32> to vector<1x8xf32>
    %474 = vector.broadcast %473 : vector<1x8xf32> to vector<8x8xf32>
    %475 = arith.addf %471, %474 : vector<8x8xf32>
    %c1_399 = arith.constant 1 : index
    %c5_400 = arith.constant 5 : index
    %c0_401 = arith.constant 0 : index
    %c0_402 = arith.constant 0 : index
    %476 = vector.load %arg5[%c1_399, %c5_400, %c0_401, %c0_402] : memref<2x12x32x8xf32, #tpu.memory_space<vmem>>, vector<1x1x32x8xf32>
    %477 = vector.shape_cast %476 : vector<1x1x32x8xf32> to vector<32x8xf32>
    %cst_403 = arith.constant dense<0.000000e+00> : vector<8x8xf32>
    %478 = tpu.matmul %430, %477, %cst_403 {dimension_numbers = #tpu.dot_dimension_numbers<[1], [0], [0], [1], [0, 0, 1, 1], [], []>} : vector<8x32xf32>, vector<32x8xf32>, vector<8x8xf32> -> vector<8x8xf32>
    %c1_404 = arith.constant 1 : index
    %c5_405 = arith.constant 5 : index
    %c0_406 = arith.constant 0 : index
    %c0_407 = arith.constant 0 : index
    %479 = vector.load %arg6[%c1_404, %c5_405, %c0_406, %c0_407] : memref<2x12x1x8xf32, #tpu.memory_space<vmem>>, vector<1x1x1x8xf32>
    %480 = vector.shape_cast %479 : vector<1x1x1x8xf32> to vector<1x8xf32>
    %481 = vector.broadcast %480 : vector<1x8xf32> to vector<8x8xf32>
    %482 = arith.addf %478, %481 : vector<8x8xf32>
    %c1_408 = arith.constant 1 : index
    %c9_409 = arith.constant 9 : index
    %c0_410 = arith.constant 0 : index
    %c0_411 = arith.constant 0 : index
    %483 = vector.load %arg5[%c1_408, %c9_409, %c0_410, %c0_411] : memref<2x12x32x8xf32, #tpu.memory_space<vmem>>, vector<1x1x32x8xf32>
    %484 = vector.shape_cast %483 : vector<1x1x32x8xf32> to vector<32x8xf32>
    %cst_412 = arith.constant dense<0.000000e+00> : vector<8x8xf32>
    %485 = tpu.matmul %430, %484, %cst_412 {dimension_numbers = #tpu.dot_dimension_numbers<[1], [0], [0], [1], [0, 0, 1, 1], [], []>} : vector<8x32xf32>, vector<32x8xf32>, vector<8x8xf32> -> vector<8x8xf32>
    %c1_413 = arith.constant 1 : index
    %c9_414 = arith.constant 9 : index
    %c0_415 = arith.constant 0 : index
    %c0_416 = arith.constant 0 : index
    %486 = vector.load %arg6[%c1_413, %c9_414, %c0_415, %c0_416] : memref<2x12x1x8xf32, #tpu.memory_space<vmem>>, vector<1x1x1x8xf32>
    %487 = vector.shape_cast %486 : vector<1x1x1x8xf32> to vector<1x8xf32>
    %488 = vector.broadcast %487 : vector<1x8xf32> to vector<8x8xf32>
    %489 = arith.addf %485, %488 : vector<8x8xf32>
    %cst_417 = arith.constant dense<0.000000e+00> : vector<8x8xf32>
    %490 = tpu.matmul %475, %482, %cst_417 {dimension_numbers = #tpu.dot_dimension_numbers<[1], [1], [0], [0], [0, 0, 1, 0], [], []>} : vector<8x8xf32>, vector<8x8xf32>, vector<8x8xf32> -> vector<8x8xf32>
    %cst_418 = arith.constant 0.353553385 : f32
    %491 = vector.broadcast %cst_418 : f32 to vector<8x8xf32>
    %492 = arith.mulf %490, %491 : vector<8x8xf32>
    %cst_419 = arith.constant dense<0xFF800000> : vector<8xf32>
    %493 = vector.multi_reduction <maximumf>, %492, %cst_419 [1] : vector<8x8xf32> to vector<8xf32>
    %494 = vector.shape_cast %493 : vector<8xf32> to vector<8x1xf32>
    %495 = vector.broadcast %494 : vector<8x1xf32> to vector<8x8xf32>
    %496 = arith.subf %492, %495 : vector<8x8xf32>
    %497 = math.exp %496 : vector<8x8xf32>
    %cst_420 = arith.constant dense<0.000000e+00> : vector<8xf32>
    %498 = vector.multi_reduction <add>, %497, %cst_420 [1] : vector<8x8xf32> to vector<8xf32>
    %499 = vector.shape_cast %498 : vector<8xf32> to vector<8x1xf32>
    %500 = tpu.reciprocal %499 {approx = true} : vector<8x1xf32> -> vector<8x1xf32>
    %501 = vector.broadcast %500 : vector<8x1xf32> to vector<8x8xf32>
    %502 = arith.mulf %497, %501 : vector<8x8xf32>
    %cst_421 = arith.constant dense<0.000000e+00> : vector<8x8xf32>
    %503 = tpu.matmul %502, %489, %cst_421 {dimension_numbers = #tpu.dot_dimension_numbers<[1], [0], [0], [1], [0, 0, 1, 1], [], []>} : vector<8x8xf32>, vector<8x8xf32>, vector<8x8xf32> -> vector<8x8xf32>
    %c1_422 = arith.constant 1 : index
    %c1_423 = arith.constant 1 : index
    %c0_424 = arith.constant 0 : index
    %c0_425 = arith.constant 0 : index
    %504 = vector.load %arg7[%c1_422, %c1_423, %c0_424, %c0_425] : memref<2x4x8x32xf32, #tpu.memory_space<vmem>>, vector<1x1x8x32xf32>
    %505 = vector.shape_cast %504 : vector<1x1x8x32xf32> to vector<8x32xf32>
    %cst_426 = arith.constant dense<0.000000e+00> : vector<8x32xf32>
    %506 = tpu.matmul %503, %505, %cst_426 {dimension_numbers = #tpu.dot_dimension_numbers<[1], [0], [0], [1], [0, 0, 1, 1], [], []>} : vector<8x8xf32>, vector<8x32xf32>, vector<8x32xf32> -> vector<8x32xf32>
    %507 = arith.addf %468, %506 : vector<8x32xf32>
    %c1_427 = arith.constant 1 : index
    %c2_428 = arith.constant 2 : index
    %c0_429 = arith.constant 0 : index
    %c0_430 = arith.constant 0 : index
    %508 = vector.load %arg5[%c1_427, %c2_428, %c0_429, %c0_430] : memref<2x12x32x8xf32, #tpu.memory_space<vmem>>, vector<1x1x32x8xf32>
    %509 = vector.shape_cast %508 : vector<1x1x32x8xf32> to vector<32x8xf32>
    %cst_431 = arith.constant dense<0.000000e+00> : vector<8x8xf32>
    %510 = tpu.matmul %430, %509, %cst_431 {dimension_numbers = #tpu.dot_dimension_numbers<[1], [0], [0], [1], [0, 0, 1, 1], [], []>} : vector<8x32xf32>, vector<32x8xf32>, vector<8x8xf32> -> vector<8x8xf32>
    %c1_432 = arith.constant 1 : index
    %c2_433 = arith.constant 2 : index
    %c0_434 = arith.constant 0 : index
    %c0_435 = arith.constant 0 : index
    %511 = vector.load %arg6[%c1_432, %c2_433, %c0_434, %c0_435] : memref<2x12x1x8xf32, #tpu.memory_space<vmem>>, vector<1x1x1x8xf32>
    %512 = vector.shape_cast %511 : vector<1x1x1x8xf32> to vector<1x8xf32>
    %513 = vector.broadcast %512 : vector<1x8xf32> to vector<8x8xf32>
    %514 = arith.addf %510, %513 : vector<8x8xf32>
    %c1_436 = arith.constant 1 : index
    %c6_437 = arith.constant 6 : index
    %c0_438 = arith.constant 0 : index
    %c0_439 = arith.constant 0 : index
    %515 = vector.load %arg5[%c1_436, %c6_437, %c0_438, %c0_439] : memref<2x12x32x8xf32, #tpu.memory_space<vmem>>, vector<1x1x32x8xf32>
    %516 = vector.shape_cast %515 : vector<1x1x32x8xf32> to vector<32x8xf32>
    %cst_440 = arith.constant dense<0.000000e+00> : vector<8x8xf32>
    %517 = tpu.matmul %430, %516, %cst_440 {dimension_numbers = #tpu.dot_dimension_numbers<[1], [0], [0], [1], [0, 0, 1, 1], [], []>} : vector<8x32xf32>, vector<32x8xf32>, vector<8x8xf32> -> vector<8x8xf32>
    %c1_441 = arith.constant 1 : index
    %c6_442 = arith.constant 6 : index
    %c0_443 = arith.constant 0 : index
    %c0_444 = arith.constant 0 : index
    %518 = vector.load %arg6[%c1_441, %c6_442, %c0_443, %c0_444] : memref<2x12x1x8xf32, #tpu.memory_space<vmem>>, vector<1x1x1x8xf32>
    %519 = vector.shape_cast %518 : vector<1x1x1x8xf32> to vector<1x8xf32>
    %520 = vector.broadcast %519 : vector<1x8xf32> to vector<8x8xf32>
    %521 = arith.addf %517, %520 : vector<8x8xf32>
    %c1_445 = arith.constant 1 : index
    %c10_446 = arith.constant 10 : index
    %c0_447 = arith.constant 0 : index
    %c0_448 = arith.constant 0 : index
    %522 = vector.load %arg5[%c1_445, %c10_446, %c0_447, %c0_448] : memref<2x12x32x8xf32, #tpu.memory_space<vmem>>, vector<1x1x32x8xf32>
    %523 = vector.shape_cast %522 : vector<1x1x32x8xf32> to vector<32x8xf32>
    %cst_449 = arith.constant dense<0.000000e+00> : vector<8x8xf32>
    %524 = tpu.matmul %430, %523, %cst_449 {dimension_numbers = #tpu.dot_dimension_numbers<[1], [0], [0], [1], [0, 0, 1, 1], [], []>} : vector<8x32xf32>, vector<32x8xf32>, vector<8x8xf32> -> vector<8x8xf32>
    %c1_450 = arith.constant 1 : index
    %c10_451 = arith.constant 10 : index
    %c0_452 = arith.constant 0 : index
    %c0_453 = arith.constant 0 : index
    %525 = vector.load %arg6[%c1_450, %c10_451, %c0_452, %c0_453] : memref<2x12x1x8xf32, #tpu.memory_space<vmem>>, vector<1x1x1x8xf32>
    %526 = vector.shape_cast %525 : vector<1x1x1x8xf32> to vector<1x8xf32>
    %527 = vector.broadcast %526 : vector<1x8xf32> to vector<8x8xf32>
    %528 = arith.addf %524, %527 : vector<8x8xf32>
    %cst_454 = arith.constant dense<0.000000e+00> : vector<8x8xf32>
    %529 = tpu.matmul %514, %521, %cst_454 {dimension_numbers = #tpu.dot_dimension_numbers<[1], [1], [0], [0], [0, 0, 1, 0], [], []>} : vector<8x8xf32>, vector<8x8xf32>, vector<8x8xf32> -> vector<8x8xf32>
    %cst_455 = arith.constant 0.353553385 : f32
    %530 = vector.broadcast %cst_455 : f32 to vector<8x8xf32>
    %531 = arith.mulf %529, %530 : vector<8x8xf32>
    %cst_456 = arith.constant dense<0xFF800000> : vector<8xf32>
    %532 = vector.multi_reduction <maximumf>, %531, %cst_456 [1] : vector<8x8xf32> to vector<8xf32>
    %533 = vector.shape_cast %532 : vector<8xf32> to vector<8x1xf32>
    %534 = vector.broadcast %533 : vector<8x1xf32> to vector<8x8xf32>
    %535 = arith.subf %531, %534 : vector<8x8xf32>
    %536 = math.exp %535 : vector<8x8xf32>
    %cst_457 = arith.constant dense<0.000000e+00> : vector<8xf32>
    %537 = vector.multi_reduction <add>, %536, %cst_457 [1] : vector<8x8xf32> to vector<8xf32>
    %538 = vector.shape_cast %537 : vector<8xf32> to vector<8x1xf32>
    %539 = tpu.reciprocal %538 {approx = true} : vector<8x1xf32> -> vector<8x1xf32>
    %540 = vector.broadcast %539 : vector<8x1xf32> to vector<8x8xf32>
    %541 = arith.mulf %536, %540 : vector<8x8xf32>
    %cst_458 = arith.constant dense<0.000000e+00> : vector<8x8xf32>
    %542 = tpu.matmul %541, %528, %cst_458 {dimension_numbers = #tpu.dot_dimension_numbers<[1], [0], [0], [1], [0, 0, 1, 1], [], []>} : vector<8x8xf32>, vector<8x8xf32>, vector<8x8xf32> -> vector<8x8xf32>
    %c1_459 = arith.constant 1 : index
    %c2_460 = arith.constant 2 : index
    %c0_461 = arith.constant 0 : index
    %c0_462 = arith.constant 0 : index
    %543 = vector.load %arg7[%c1_459, %c2_460, %c0_461, %c0_462] : memref<2x4x8x32xf32, #tpu.memory_space<vmem>>, vector<1x1x8x32xf32>
    %544 = vector.shape_cast %543 : vector<1x1x8x32xf32> to vector<8x32xf32>
    %cst_463 = arith.constant dense<0.000000e+00> : vector<8x32xf32>
    %545 = tpu.matmul %542, %544, %cst_463 {dimension_numbers = #tpu.dot_dimension_numbers<[1], [0], [0], [1], [0, 0, 1, 1], [], []>} : vector<8x8xf32>, vector<8x32xf32>, vector<8x32xf32> -> vector<8x32xf32>
    %546 = arith.addf %507, %545 : vector<8x32xf32>
    %c1_464 = arith.constant 1 : index
    %c3_465 = arith.constant 3 : index
    %c0_466 = arith.constant 0 : index
    %c0_467 = arith.constant 0 : index
    %547 = vector.load %arg5[%c1_464, %c3_465, %c0_466, %c0_467] : memref<2x12x32x8xf32, #tpu.memory_space<vmem>>, vector<1x1x32x8xf32>
    %548 = vector.shape_cast %547 : vector<1x1x32x8xf32> to vector<32x8xf32>
    %cst_468 = arith.constant dense<0.000000e+00> : vector<8x8xf32>
    %549 = tpu.matmul %430, %548, %cst_468 {dimension_numbers = #tpu.dot_dimension_numbers<[1], [0], [0], [1], [0, 0, 1, 1], [], []>} : vector<8x32xf32>, vector<32x8xf32>, vector<8x8xf32> -> vector<8x8xf32>
    %c1_469 = arith.constant 1 : index
    %c3_470 = arith.constant 3 : index
    %c0_471 = arith.constant 0 : index
    %c0_472 = arith.constant 0 : index
    %550 = vector.load %arg6[%c1_469, %c3_470, %c0_471, %c0_472] : memref<2x12x1x8xf32, #tpu.memory_space<vmem>>, vector<1x1x1x8xf32>
    %551 = vector.shape_cast %550 : vector<1x1x1x8xf32> to vector<1x8xf32>
    %552 = vector.broadcast %551 : vector<1x8xf32> to vector<8x8xf32>
    %553 = arith.addf %549, %552 : vector<8x8xf32>
    %c1_473 = arith.constant 1 : index
    %c7_474 = arith.constant 7 : index
    %c0_475 = arith.constant 0 : index
    %c0_476 = arith.constant 0 : index
    %554 = vector.load %arg5[%c1_473, %c7_474, %c0_475, %c0_476] : memref<2x12x32x8xf32, #tpu.memory_space<vmem>>, vector<1x1x32x8xf32>
    %555 = vector.shape_cast %554 : vector<1x1x32x8xf32> to vector<32x8xf32>
    %cst_477 = arith.constant dense<0.000000e+00> : vector<8x8xf32>
    %556 = tpu.matmul %430, %555, %cst_477 {dimension_numbers = #tpu.dot_dimension_numbers<[1], [0], [0], [1], [0, 0, 1, 1], [], []>} : vector<8x32xf32>, vector<32x8xf32>, vector<8x8xf32> -> vector<8x8xf32>
    %c1_478 = arith.constant 1 : index
    %c7_479 = arith.constant 7 : index
    %c0_480 = arith.constant 0 : index
    %c0_481 = arith.constant 0 : index
    %557 = vector.load %arg6[%c1_478, %c7_479, %c0_480, %c0_481] : memref<2x12x1x8xf32, #tpu.memory_space<vmem>>, vector<1x1x1x8xf32>
    %558 = vector.shape_cast %557 : vector<1x1x1x8xf32> to vector<1x8xf32>
    %559 = vector.broadcast %558 : vector<1x8xf32> to vector<8x8xf32>
    %560 = arith.addf %556, %559 : vector<8x8xf32>
    %c1_482 = arith.constant 1 : index
    %c11_483 = arith.constant 11 : index
    %c0_484 = arith.constant 0 : index
    %c0_485 = arith.constant 0 : index
    %561 = vector.load %arg5[%c1_482, %c11_483, %c0_484, %c0_485] : memref<2x12x32x8xf32, #tpu.memory_space<vmem>>, vector<1x1x32x8xf32>
    %562 = vector.shape_cast %561 : vector<1x1x32x8xf32> to vector<32x8xf32>
    %cst_486 = arith.constant dense<0.000000e+00> : vector<8x8xf32>
    %563 = tpu.matmul %430, %562, %cst_486 {dimension_numbers = #tpu.dot_dimension_numbers<[1], [0], [0], [1], [0, 0, 1, 1], [], []>} : vector<8x32xf32>, vector<32x8xf32>, vector<8x8xf32> -> vector<8x8xf32>
    %c1_487 = arith.constant 1 : index
    %c11_488 = arith.constant 11 : index
    %c0_489 = arith.constant 0 : index
    %c0_490 = arith.constant 0 : index
    %564 = vector.load %arg6[%c1_487, %c11_488, %c0_489, %c0_490] : memref<2x12x1x8xf32, #tpu.memory_space<vmem>>, vector<1x1x1x8xf32>
    %565 = vector.shape_cast %564 : vector<1x1x1x8xf32> to vector<1x8xf32>
    %566 = vector.broadcast %565 : vector<1x8xf32> to vector<8x8xf32>
    %567 = arith.addf %563, %566 : vector<8x8xf32>
    %cst_491 = arith.constant dense<0.000000e+00> : vector<8x8xf32>
    %568 = tpu.matmul %553, %560, %cst_491 {dimension_numbers = #tpu.dot_dimension_numbers<[1], [1], [0], [0], [0, 0, 1, 0], [], []>} : vector<8x8xf32>, vector<8x8xf32>, vector<8x8xf32> -> vector<8x8xf32>
    %cst_492 = arith.constant 0.353553385 : f32
    %569 = vector.broadcast %cst_492 : f32 to vector<8x8xf32>
    %570 = arith.mulf %568, %569 : vector<8x8xf32>
    %cst_493 = arith.constant dense<0xFF800000> : vector<8xf32>
    %571 = vector.multi_reduction <maximumf>, %570, %cst_493 [1] : vector<8x8xf32> to vector<8xf32>
    %572 = vector.shape_cast %571 : vector<8xf32> to vector<8x1xf32>
    %573 = vector.broadcast %572 : vector<8x1xf32> to vector<8x8xf32>
    %574 = arith.subf %570, %573 : vector<8x8xf32>
    %575 = math.exp %574 : vector<8x8xf32>
    %cst_494 = arith.constant dense<0.000000e+00> : vector<8xf32>
    %576 = vector.multi_reduction <add>, %575, %cst_494 [1] : vector<8x8xf32> to vector<8xf32>
    %577 = vector.shape_cast %576 : vector<8xf32> to vector<8x1xf32>
    %578 = tpu.reciprocal %577 {approx = true} : vector<8x1xf32> -> vector<8x1xf32>
    %579 = vector.broadcast %578 : vector<8x1xf32> to vector<8x8xf32>
    %580 = arith.mulf %575, %579 : vector<8x8xf32>
    %cst_495 = arith.constant dense<0.000000e+00> : vector<8x8xf32>
    %581 = tpu.matmul %580, %567, %cst_495 {dimension_numbers = #tpu.dot_dimension_numbers<[1], [0], [0], [1], [0, 0, 1, 1], [], []>} : vector<8x8xf32>, vector<8x8xf32>, vector<8x8xf32> -> vector<8x8xf32>
    %c1_496 = arith.constant 1 : index
    %c3_497 = arith.constant 3 : index
    %c0_498 = arith.constant 0 : index
    %c0_499 = arith.constant 0 : index
    %582 = vector.load %arg7[%c1_496, %c3_497, %c0_498, %c0_499] : memref<2x4x8x32xf32, #tpu.memory_space<vmem>>, vector<1x1x8x32xf32>
    %583 = vector.shape_cast %582 : vector<1x1x8x32xf32> to vector<8x32xf32>
    %cst_500 = arith.constant dense<0.000000e+00> : vector<8x32xf32>
    %584 = tpu.matmul %581, %583, %cst_500 {dimension_numbers = #tpu.dot_dimension_numbers<[1], [0], [0], [1], [0, 0, 1, 1], [], []>} : vector<8x8xf32>, vector<8x32xf32>, vector<8x32xf32> -> vector<8x32xf32>
    %585 = arith.addf %546, %584 : vector<8x32xf32>
    %c1_501 = arith.constant 1 : index
    %c0_502 = arith.constant 0 : index
    %c0_503 = arith.constant 0 : index
    %586 = vector.load %arg8[%c1_501, %c0_502, %c0_503] : memref<2x1x32xf32, #tpu.memory_space<vmem>>, vector<1x1x32xf32>
    %587 = vector.shape_cast %586 : vector<1x1x32xf32> to vector<1x32xf32>
    %588 = vector.broadcast %587 : vector<1x32xf32> to vector<8x32xf32>
    %589 = arith.addf %585, %588 : vector<8x32xf32>
    %590 = vector.extract_strided_slice %429 {offsets = [8, 0], sizes = [8, 32], strides = [1, 1]} : vector<16x32xf32> to vector<8x32xf32>
    %c1_504 = arith.constant 1 : index
    %c0_505 = arith.constant 0 : index
    %c0_506 = arith.constant 0 : index
    %c0_507 = arith.constant 0 : index
    %591 = vector.load %arg5[%c1_504, %c0_505, %c0_506, %c0_507] : memref<2x12x32x8xf32, #tpu.memory_space<vmem>>, vector<1x1x32x8xf32>
    %592 = vector.shape_cast %591 : vector<1x1x32x8xf32> to vector<32x8xf32>
    %cst_508 = arith.constant dense<0.000000e+00> : vector<8x8xf32>
    %593 = tpu.matmul %590, %592, %cst_508 {dimension_numbers = #tpu.dot_dimension_numbers<[1], [0], [0], [1], [0, 0, 1, 1], [], []>} : vector<8x32xf32>, vector<32x8xf32>, vector<8x8xf32> -> vector<8x8xf32>
    %c1_509 = arith.constant 1 : index
    %c0_510 = arith.constant 0 : index
    %c0_511 = arith.constant 0 : index
    %c0_512 = arith.constant 0 : index
    %594 = vector.load %arg6[%c1_509, %c0_510, %c0_511, %c0_512] : memref<2x12x1x8xf32, #tpu.memory_space<vmem>>, vector<1x1x1x8xf32>
    %595 = vector.shape_cast %594 : vector<1x1x1x8xf32> to vector<1x8xf32>
    %596 = vector.broadcast %595 : vector<1x8xf32> to vector<8x8xf32>
    %597 = arith.addf %593, %596 : vector<8x8xf32>
    %c1_513 = arith.constant 1 : index
    %c4_514 = arith.constant 4 : index
    %c0_515 = arith.constant 0 : index
    %c0_516 = arith.constant 0 : index
    %598 = vector.load %arg5[%c1_513, %c4_514, %c0_515, %c0_516] : memref<2x12x32x8xf32, #tpu.memory_space<vmem>>, vector<1x1x32x8xf32>
    %599 = vector.shape_cast %598 : vector<1x1x32x8xf32> to vector<32x8xf32>
    %cst_517 = arith.constant dense<0.000000e+00> : vector<8x8xf32>
    %600 = tpu.matmul %590, %599, %cst_517 {dimension_numbers = #tpu.dot_dimension_numbers<[1], [0], [0], [1], [0, 0, 1, 1], [], []>} : vector<8x32xf32>, vector<32x8xf32>, vector<8x8xf32> -> vector<8x8xf32>
    %c1_518 = arith.constant 1 : index
    %c4_519 = arith.constant 4 : index
    %c0_520 = arith.constant 0 : index
    %c0_521 = arith.constant 0 : index
    %601 = vector.load %arg6[%c1_518, %c4_519, %c0_520, %c0_521] : memref<2x12x1x8xf32, #tpu.memory_space<vmem>>, vector<1x1x1x8xf32>
    %602 = vector.shape_cast %601 : vector<1x1x1x8xf32> to vector<1x8xf32>
    %603 = vector.broadcast %602 : vector<1x8xf32> to vector<8x8xf32>
    %604 = arith.addf %600, %603 : vector<8x8xf32>
    %c1_522 = arith.constant 1 : index
    %c8_523 = arith.constant 8 : index
    %c0_524 = arith.constant 0 : index
    %c0_525 = arith.constant 0 : index
    %605 = vector.load %arg5[%c1_522, %c8_523, %c0_524, %c0_525] : memref<2x12x32x8xf32, #tpu.memory_space<vmem>>, vector<1x1x32x8xf32>
    %606 = vector.shape_cast %605 : vector<1x1x32x8xf32> to vector<32x8xf32>
    %cst_526 = arith.constant dense<0.000000e+00> : vector<8x8xf32>
    %607 = tpu.matmul %590, %606, %cst_526 {dimension_numbers = #tpu.dot_dimension_numbers<[1], [0], [0], [1], [0, 0, 1, 1], [], []>} : vector<8x32xf32>, vector<32x8xf32>, vector<8x8xf32> -> vector<8x8xf32>
    %c1_527 = arith.constant 1 : index
    %c8_528 = arith.constant 8 : index
    %c0_529 = arith.constant 0 : index
    %c0_530 = arith.constant 0 : index
    %608 = vector.load %arg6[%c1_527, %c8_528, %c0_529, %c0_530] : memref<2x12x1x8xf32, #tpu.memory_space<vmem>>, vector<1x1x1x8xf32>
    %609 = vector.shape_cast %608 : vector<1x1x1x8xf32> to vector<1x8xf32>
    %610 = vector.broadcast %609 : vector<1x8xf32> to vector<8x8xf32>
    %611 = arith.addf %607, %610 : vector<8x8xf32>
    %cst_531 = arith.constant dense<0.000000e+00> : vector<8x8xf32>
    %612 = tpu.matmul %597, %604, %cst_531 {dimension_numbers = #tpu.dot_dimension_numbers<[1], [1], [0], [0], [0, 0, 1, 0], [], []>} : vector<8x8xf32>, vector<8x8xf32>, vector<8x8xf32> -> vector<8x8xf32>
    %cst_532 = arith.constant 0.353553385 : f32
    %613 = vector.broadcast %cst_532 : f32 to vector<8x8xf32>
    %614 = arith.mulf %612, %613 : vector<8x8xf32>
    %cst_533 = arith.constant dense<0xFF800000> : vector<8xf32>
    %615 = vector.multi_reduction <maximumf>, %614, %cst_533 [1] : vector<8x8xf32> to vector<8xf32>
    %616 = vector.shape_cast %615 : vector<8xf32> to vector<8x1xf32>
    %617 = vector.broadcast %616 : vector<8x1xf32> to vector<8x8xf32>
    %618 = arith.subf %614, %617 : vector<8x8xf32>
    %619 = math.exp %618 : vector<8x8xf32>
    %cst_534 = arith.constant dense<0.000000e+00> : vector<8xf32>
    %620 = vector.multi_reduction <add>, %619, %cst_534 [1] : vector<8x8xf32> to vector<8xf32>
    %621 = vector.shape_cast %620 : vector<8xf32> to vector<8x1xf32>
    %622 = tpu.reciprocal %621 {approx = true} : vector<8x1xf32> -> vector<8x1xf32>
    %623 = vector.broadcast %622 : vector<8x1xf32> to vector<8x8xf32>
    %624 = arith.mulf %619, %623 : vector<8x8xf32>
    %cst_535 = arith.constant dense<0.000000e+00> : vector<8x8xf32>
    %625 = tpu.matmul %624, %611, %cst_535 {dimension_numbers = #tpu.dot_dimension_numbers<[1], [0], [0], [1], [0, 0, 1, 1], [], []>} : vector<8x8xf32>, vector<8x8xf32>, vector<8x8xf32> -> vector<8x8xf32>
    %c1_536 = arith.constant 1 : index
    %c0_537 = arith.constant 0 : index
    %c0_538 = arith.constant 0 : index
    %c0_539 = arith.constant 0 : index
    %626 = vector.load %arg7[%c1_536, %c0_537, %c0_538, %c0_539] : memref<2x4x8x32xf32, #tpu.memory_space<vmem>>, vector<1x1x8x32xf32>
    %627 = vector.shape_cast %626 : vector<1x1x8x32xf32> to vector<8x32xf32>
    %cst_540 = arith.constant dense<0.000000e+00> : vector<8x32xf32>
    %628 = tpu.matmul %625, %627, %cst_540 {dimension_numbers = #tpu.dot_dimension_numbers<[1], [0], [0], [1], [0, 0, 1, 1], [], []>} : vector<8x8xf32>, vector<8x32xf32>, vector<8x32xf32> -> vector<8x32xf32>
    %c1_541 = arith.constant 1 : index
    %c1_542 = arith.constant 1 : index
    %c0_543 = arith.constant 0 : index
    %c0_544 = arith.constant 0 : index
    %629 = vector.load %arg5[%c1_541, %c1_542, %c0_543, %c0_544] : memref<2x12x32x8xf32, #tpu.memory_space<vmem>>, vector<1x1x32x8xf32>
    %630 = vector.shape_cast %629 : vector<1x1x32x8xf32> to vector<32x8xf32>
    %cst_545 = arith.constant dense<0.000000e+00> : vector<8x8xf32>
    %631 = tpu.matmul %590, %630, %cst_545 {dimension_numbers = #tpu.dot_dimension_numbers<[1], [0], [0], [1], [0, 0, 1, 1], [], []>} : vector<8x32xf32>, vector<32x8xf32>, vector<8x8xf32> -> vector<8x8xf32>
    %c1_546 = arith.constant 1 : index
    %c1_547 = arith.constant 1 : index
    %c0_548 = arith.constant 0 : index
    %c0_549 = arith.constant 0 : index
    %632 = vector.load %arg6[%c1_546, %c1_547, %c0_548, %c0_549] : memref<2x12x1x8xf32, #tpu.memory_space<vmem>>, vector<1x1x1x8xf32>
    %633 = vector.shape_cast %632 : vector<1x1x1x8xf32> to vector<1x8xf32>
    %634 = vector.broadcast %633 : vector<1x8xf32> to vector<8x8xf32>
    %635 = arith.addf %631, %634 : vector<8x8xf32>
    %c1_550 = arith.constant 1 : index
    %c5_551 = arith.constant 5 : index
    %c0_552 = arith.constant 0 : index
    %c0_553 = arith.constant 0 : index
    %636 = vector.load %arg5[%c1_550, %c5_551, %c0_552, %c0_553] : memref<2x12x32x8xf32, #tpu.memory_space<vmem>>, vector<1x1x32x8xf32>
    %637 = vector.shape_cast %636 : vector<1x1x32x8xf32> to vector<32x8xf32>
    %cst_554 = arith.constant dense<0.000000e+00> : vector<8x8xf32>
    %638 = tpu.matmul %590, %637, %cst_554 {dimension_numbers = #tpu.dot_dimension_numbers<[1], [0], [0], [1], [0, 0, 1, 1], [], []>} : vector<8x32xf32>, vector<32x8xf32>, vector<8x8xf32> -> vector<8x8xf32>
    %c1_555 = arith.constant 1 : index
    %c5_556 = arith.constant 5 : index
    %c0_557 = arith.constant 0 : index
    %c0_558 = arith.constant 0 : index
    %639 = vector.load %arg6[%c1_555, %c5_556, %c0_557, %c0_558] : memref<2x12x1x8xf32, #tpu.memory_space<vmem>>, vector<1x1x1x8xf32>
    %640 = vector.shape_cast %639 : vector<1x1x1x8xf32> to vector<1x8xf32>
    %641 = vector.broadcast %640 : vector<1x8xf32> to vector<8x8xf32>
    %642 = arith.addf %638, %641 : vector<8x8xf32>
    %c1_559 = arith.constant 1 : index
    %c9_560 = arith.constant 9 : index
    %c0_561 = arith.constant 0 : index
    %c0_562 = arith.constant 0 : index
    %643 = vector.load %arg5[%c1_559, %c9_560, %c0_561, %c0_562] : memref<2x12x32x8xf32, #tpu.memory_space<vmem>>, vector<1x1x32x8xf32>
    %644 = vector.shape_cast %643 : vector<1x1x32x8xf32> to vector<32x8xf32>
    %cst_563 = arith.constant dense<0.000000e+00> : vector<8x8xf32>
    %645 = tpu.matmul %590, %644, %cst_563 {dimension_numbers = #tpu.dot_dimension_numbers<[1], [0], [0], [1], [0, 0, 1, 1], [], []>} : vector<8x32xf32>, vector<32x8xf32>, vector<8x8xf32> -> vector<8x8xf32>
    %c1_564 = arith.constant 1 : index
    %c9_565 = arith.constant 9 : index
    %c0_566 = arith.constant 0 : index
    %c0_567 = arith.constant 0 : index
    %646 = vector.load %arg6[%c1_564, %c9_565, %c0_566, %c0_567] : memref<2x12x1x8xf32, #tpu.memory_space<vmem>>, vector<1x1x1x8xf32>
    %647 = vector.shape_cast %646 : vector<1x1x1x8xf32> to vector<1x8xf32>
    %648 = vector.broadcast %647 : vector<1x8xf32> to vector<8x8xf32>
    %649 = arith.addf %645, %648 : vector<8x8xf32>
    %cst_568 = arith.constant dense<0.000000e+00> : vector<8x8xf32>
    %650 = tpu.matmul %635, %642, %cst_568 {dimension_numbers = #tpu.dot_dimension_numbers<[1], [1], [0], [0], [0, 0, 1, 0], [], []>} : vector<8x8xf32>, vector<8x8xf32>, vector<8x8xf32> -> vector<8x8xf32>
    %cst_569 = arith.constant 0.353553385 : f32
    %651 = vector.broadcast %cst_569 : f32 to vector<8x8xf32>
    %652 = arith.mulf %650, %651 : vector<8x8xf32>
    %cst_570 = arith.constant dense<0xFF800000> : vector<8xf32>
    %653 = vector.multi_reduction <maximumf>, %652, %cst_570 [1] : vector<8x8xf32> to vector<8xf32>
    %654 = vector.shape_cast %653 : vector<8xf32> to vector<8x1xf32>
    %655 = vector.broadcast %654 : vector<8x1xf32> to vector<8x8xf32>
    %656 = arith.subf %652, %655 : vector<8x8xf32>
    %657 = math.exp %656 : vector<8x8xf32>
    %cst_571 = arith.constant dense<0.000000e+00> : vector<8xf32>
    %658 = vector.multi_reduction <add>, %657, %cst_571 [1] : vector<8x8xf32> to vector<8xf32>
    %659 = vector.shape_cast %658 : vector<8xf32> to vector<8x1xf32>
    %660 = tpu.reciprocal %659 {approx = true} : vector<8x1xf32> -> vector<8x1xf32>
    %661 = vector.broadcast %660 : vector<8x1xf32> to vector<8x8xf32>
    %662 = arith.mulf %657, %661 : vector<8x8xf32>
    %cst_572 = arith.constant dense<0.000000e+00> : vector<8x8xf32>
    %663 = tpu.matmul %662, %649, %cst_572 {dimension_numbers = #tpu.dot_dimension_numbers<[1], [0], [0], [1], [0, 0, 1, 1], [], []>} : vector<8x8xf32>, vector<8x8xf32>, vector<8x8xf32> -> vector<8x8xf32>
    %c1_573 = arith.constant 1 : index
    %c1_574 = arith.constant 1 : index
    %c0_575 = arith.constant 0 : index
    %c0_576 = arith.constant 0 : index
    %664 = vector.load %arg7[%c1_573, %c1_574, %c0_575, %c0_576] : memref<2x4x8x32xf32, #tpu.memory_space<vmem>>, vector<1x1x8x32xf32>
    %665 = vector.shape_cast %664 : vector<1x1x8x32xf32> to vector<8x32xf32>
    %cst_577 = arith.constant dense<0.000000e+00> : vector<8x32xf32>
    %666 = tpu.matmul %663, %665, %cst_577 {dimension_numbers = #tpu.dot_dimension_numbers<[1], [0], [0], [1], [0, 0, 1, 1], [], []>} : vector<8x8xf32>, vector<8x32xf32>, vector<8x32xf32> -> vector<8x32xf32>
    %667 = arith.addf %628, %666 : vector<8x32xf32>
    %c1_578 = arith.constant 1 : index
    %c2_579 = arith.constant 2 : index
    %c0_580 = arith.constant 0 : index
    %c0_581 = arith.constant 0 : index
    %668 = vector.load %arg5[%c1_578, %c2_579, %c0_580, %c0_581] : memref<2x12x32x8xf32, #tpu.memory_space<vmem>>, vector<1x1x32x8xf32>
    %669 = vector.shape_cast %668 : vector<1x1x32x8xf32> to vector<32x8xf32>
    %cst_582 = arith.constant dense<0.000000e+00> : vector<8x8xf32>
    %670 = tpu.matmul %590, %669, %cst_582 {dimension_numbers = #tpu.dot_dimension_numbers<[1], [0], [0], [1], [0, 0, 1, 1], [], []>} : vector<8x32xf32>, vector<32x8xf32>, vector<8x8xf32> -> vector<8x8xf32>
    %c1_583 = arith.constant 1 : index
    %c2_584 = arith.constant 2 : index
    %c0_585 = arith.constant 0 : index
    %c0_586 = arith.constant 0 : index
    %671 = vector.load %arg6[%c1_583, %c2_584, %c0_585, %c0_586] : memref<2x12x1x8xf32, #tpu.memory_space<vmem>>, vector<1x1x1x8xf32>
    %672 = vector.shape_cast %671 : vector<1x1x1x8xf32> to vector<1x8xf32>
    %673 = vector.broadcast %672 : vector<1x8xf32> to vector<8x8xf32>
    %674 = arith.addf %670, %673 : vector<8x8xf32>
    %c1_587 = arith.constant 1 : index
    %c6_588 = arith.constant 6 : index
    %c0_589 = arith.constant 0 : index
    %c0_590 = arith.constant 0 : index
    %675 = vector.load %arg5[%c1_587, %c6_588, %c0_589, %c0_590] : memref<2x12x32x8xf32, #tpu.memory_space<vmem>>, vector<1x1x32x8xf32>
    %676 = vector.shape_cast %675 : vector<1x1x32x8xf32> to vector<32x8xf32>
    %cst_591 = arith.constant dense<0.000000e+00> : vector<8x8xf32>
    %677 = tpu.matmul %590, %676, %cst_591 {dimension_numbers = #tpu.dot_dimension_numbers<[1], [0], [0], [1], [0, 0, 1, 1], [], []>} : vector<8x32xf32>, vector<32x8xf32>, vector<8x8xf32> -> vector<8x8xf32>
    %c1_592 = arith.constant 1 : index
    %c6_593 = arith.constant 6 : index
    %c0_594 = arith.constant 0 : index
    %c0_595 = arith.constant 0 : index
    %678 = vector.load %arg6[%c1_592, %c6_593, %c0_594, %c0_595] : memref<2x12x1x8xf32, #tpu.memory_space<vmem>>, vector<1x1x1x8xf32>
    %679 = vector.shape_cast %678 : vector<1x1x1x8xf32> to vector<1x8xf32>
    %680 = vector.broadcast %679 : vector<1x8xf32> to vector<8x8xf32>
    %681 = arith.addf %677, %680 : vector<8x8xf32>
    %c1_596 = arith.constant 1 : index
    %c10_597 = arith.constant 10 : index
    %c0_598 = arith.constant 0 : index
    %c0_599 = arith.constant 0 : index
    %682 = vector.load %arg5[%c1_596, %c10_597, %c0_598, %c0_599] : memref<2x12x32x8xf32, #tpu.memory_space<vmem>>, vector<1x1x32x8xf32>
    %683 = vector.shape_cast %682 : vector<1x1x32x8xf32> to vector<32x8xf32>
    %cst_600 = arith.constant dense<0.000000e+00> : vector<8x8xf32>
    %684 = tpu.matmul %590, %683, %cst_600 {dimension_numbers = #tpu.dot_dimension_numbers<[1], [0], [0], [1], [0, 0, 1, 1], [], []>} : vector<8x32xf32>, vector<32x8xf32>, vector<8x8xf32> -> vector<8x8xf32>
    %c1_601 = arith.constant 1 : index
    %c10_602 = arith.constant 10 : index
    %c0_603 = arith.constant 0 : index
    %c0_604 = arith.constant 0 : index
    %685 = vector.load %arg6[%c1_601, %c10_602, %c0_603, %c0_604] : memref<2x12x1x8xf32, #tpu.memory_space<vmem>>, vector<1x1x1x8xf32>
    %686 = vector.shape_cast %685 : vector<1x1x1x8xf32> to vector<1x8xf32>
    %687 = vector.broadcast %686 : vector<1x8xf32> to vector<8x8xf32>
    %688 = arith.addf %684, %687 : vector<8x8xf32>
    %cst_605 = arith.constant dense<0.000000e+00> : vector<8x8xf32>
    %689 = tpu.matmul %674, %681, %cst_605 {dimension_numbers = #tpu.dot_dimension_numbers<[1], [1], [0], [0], [0, 0, 1, 0], [], []>} : vector<8x8xf32>, vector<8x8xf32>, vector<8x8xf32> -> vector<8x8xf32>
    %cst_606 = arith.constant 0.353553385 : f32
    %690 = vector.broadcast %cst_606 : f32 to vector<8x8xf32>
    %691 = arith.mulf %689, %690 : vector<8x8xf32>
    %cst_607 = arith.constant dense<0xFF800000> : vector<8xf32>
    %692 = vector.multi_reduction <maximumf>, %691, %cst_607 [1] : vector<8x8xf32> to vector<8xf32>
    %693 = vector.shape_cast %692 : vector<8xf32> to vector<8x1xf32>
    %694 = vector.broadcast %693 : vector<8x1xf32> to vector<8x8xf32>
    %695 = arith.subf %691, %694 : vector<8x8xf32>
    %696 = math.exp %695 : vector<8x8xf32>
    %cst_608 = arith.constant dense<0.000000e+00> : vector<8xf32>
    %697 = vector.multi_reduction <add>, %696, %cst_608 [1] : vector<8x8xf32> to vector<8xf32>
    %698 = vector.shape_cast %697 : vector<8xf32> to vector<8x1xf32>
    %699 = tpu.reciprocal %698 {approx = true} : vector<8x1xf32> -> vector<8x1xf32>
    %700 = vector.broadcast %699 : vector<8x1xf32> to vector<8x8xf32>
    %701 = arith.mulf %696, %700 : vector<8x8xf32>
    %cst_609 = arith.constant dense<0.000000e+00> : vector<8x8xf32>
    %702 = tpu.matmul %701, %688, %cst_609 {dimension_numbers = #tpu.dot_dimension_numbers<[1], [0], [0], [1], [0, 0, 1, 1], [], []>} : vector<8x8xf32>, vector<8x8xf32>, vector<8x8xf32> -> vector<8x8xf32>
    %c1_610 = arith.constant 1 : index
    %c2_611 = arith.constant 2 : index
    %c0_612 = arith.constant 0 : index
    %c0_613 = arith.constant 0 : index
    %703 = vector.load %arg7[%c1_610, %c2_611, %c0_612, %c0_613] : memref<2x4x8x32xf32, #tpu.memory_space<vmem>>, vector<1x1x8x32xf32>
    %704 = vector.shape_cast %703 : vector<1x1x8x32xf32> to vector<8x32xf32>
    %cst_614 = arith.constant dense<0.000000e+00> : vector<8x32xf32>
    %705 = tpu.matmul %702, %704, %cst_614 {dimension_numbers = #tpu.dot_dimension_numbers<[1], [0], [0], [1], [0, 0, 1, 1], [], []>} : vector<8x8xf32>, vector<8x32xf32>, vector<8x32xf32> -> vector<8x32xf32>
    %706 = arith.addf %667, %705 : vector<8x32xf32>
    %c1_615 = arith.constant 1 : index
    %c3_616 = arith.constant 3 : index
    %c0_617 = arith.constant 0 : index
    %c0_618 = arith.constant 0 : index
    %707 = vector.load %arg5[%c1_615, %c3_616, %c0_617, %c0_618] : memref<2x12x32x8xf32, #tpu.memory_space<vmem>>, vector<1x1x32x8xf32>
    %708 = vector.shape_cast %707 : vector<1x1x32x8xf32> to vector<32x8xf32>
    %cst_619 = arith.constant dense<0.000000e+00> : vector<8x8xf32>
    %709 = tpu.matmul %590, %708, %cst_619 {dimension_numbers = #tpu.dot_dimension_numbers<[1], [0], [0], [1], [0, 0, 1, 1], [], []>} : vector<8x32xf32>, vector<32x8xf32>, vector<8x8xf32> -> vector<8x8xf32>
    %c1_620 = arith.constant 1 : index
    %c3_621 = arith.constant 3 : index
    %c0_622 = arith.constant 0 : index
    %c0_623 = arith.constant 0 : index
    %710 = vector.load %arg6[%c1_620, %c3_621, %c0_622, %c0_623] : memref<2x12x1x8xf32, #tpu.memory_space<vmem>>, vector<1x1x1x8xf32>
    %711 = vector.shape_cast %710 : vector<1x1x1x8xf32> to vector<1x8xf32>
    %712 = vector.broadcast %711 : vector<1x8xf32> to vector<8x8xf32>
    %713 = arith.addf %709, %712 : vector<8x8xf32>
    %c1_624 = arith.constant 1 : index
    %c7_625 = arith.constant 7 : index
    %c0_626 = arith.constant 0 : index
    %c0_627 = arith.constant 0 : index
    %714 = vector.load %arg5[%c1_624, %c7_625, %c0_626, %c0_627] : memref<2x12x32x8xf32, #tpu.memory_space<vmem>>, vector<1x1x32x8xf32>
    %715 = vector.shape_cast %714 : vector<1x1x32x8xf32> to vector<32x8xf32>
    %cst_628 = arith.constant dense<0.000000e+00> : vector<8x8xf32>
    %716 = tpu.matmul %590, %715, %cst_628 {dimension_numbers = #tpu.dot_dimension_numbers<[1], [0], [0], [1], [0, 0, 1, 1], [], []>} : vector<8x32xf32>, vector<32x8xf32>, vector<8x8xf32> -> vector<8x8xf32>
    %c1_629 = arith.constant 1 : index
    %c7_630 = arith.constant 7 : index
    %c0_631 = arith.constant 0 : index
    %c0_632 = arith.constant 0 : index
    %717 = vector.load %arg6[%c1_629, %c7_630, %c0_631, %c0_632] : memref<2x12x1x8xf32, #tpu.memory_space<vmem>>, vector<1x1x1x8xf32>
    %718 = vector.shape_cast %717 : vector<1x1x1x8xf32> to vector<1x8xf32>
    %719 = vector.broadcast %718 : vector<1x8xf32> to vector<8x8xf32>
    %720 = arith.addf %716, %719 : vector<8x8xf32>
    %c1_633 = arith.constant 1 : index
    %c11_634 = arith.constant 11 : index
    %c0_635 = arith.constant 0 : index
    %c0_636 = arith.constant 0 : index
    %721 = vector.load %arg5[%c1_633, %c11_634, %c0_635, %c0_636] : memref<2x12x32x8xf32, #tpu.memory_space<vmem>>, vector<1x1x32x8xf32>
    %722 = vector.shape_cast %721 : vector<1x1x32x8xf32> to vector<32x8xf32>
    %cst_637 = arith.constant dense<0.000000e+00> : vector<8x8xf32>
    %723 = tpu.matmul %590, %722, %cst_637 {dimension_numbers = #tpu.dot_dimension_numbers<[1], [0], [0], [1], [0, 0, 1, 1], [], []>} : vector<8x32xf32>, vector<32x8xf32>, vector<8x8xf32> -> vector<8x8xf32>
    %c1_638 = arith.constant 1 : index
    %c11_639 = arith.constant 11 : index
    %c0_640 = arith.constant 0 : index
    %c0_641 = arith.constant 0 : index
    %724 = vector.load %arg6[%c1_638, %c11_639, %c0_640, %c0_641] : memref<2x12x1x8xf32, #tpu.memory_space<vmem>>, vector<1x1x1x8xf32>
    %725 = vector.shape_cast %724 : vector<1x1x1x8xf32> to vector<1x8xf32>
    %726 = vector.broadcast %725 : vector<1x8xf32> to vector<8x8xf32>
    %727 = arith.addf %723, %726 : vector<8x8xf32>
    %cst_642 = arith.constant dense<0.000000e+00> : vector<8x8xf32>
    %728 = tpu.matmul %713, %720, %cst_642 {dimension_numbers = #tpu.dot_dimension_numbers<[1], [1], [0], [0], [0, 0, 1, 0], [], []>} : vector<8x8xf32>, vector<8x8xf32>, vector<8x8xf32> -> vector<8x8xf32>
    %cst_643 = arith.constant 0.353553385 : f32
    %729 = vector.broadcast %cst_643 : f32 to vector<8x8xf32>
    %730 = arith.mulf %728, %729 : vector<8x8xf32>
    %cst_644 = arith.constant dense<0xFF800000> : vector<8xf32>
    %731 = vector.multi_reduction <maximumf>, %730, %cst_644 [1] : vector<8x8xf32> to vector<8xf32>
    %732 = vector.shape_cast %731 : vector<8xf32> to vector<8x1xf32>
    %733 = vector.broadcast %732 : vector<8x1xf32> to vector<8x8xf32>
    %734 = arith.subf %730, %733 : vector<8x8xf32>
    %735 = math.exp %734 : vector<8x8xf32>
    %cst_645 = arith.constant dense<0.000000e+00> : vector<8xf32>
    %736 = vector.multi_reduction <add>, %735, %cst_645 [1] : vector<8x8xf32> to vector<8xf32>
    %737 = vector.shape_cast %736 : vector<8xf32> to vector<8x1xf32>
    %738 = tpu.reciprocal %737 {approx = true} : vector<8x1xf32> -> vector<8x1xf32>
    %739 = vector.broadcast %738 : vector<8x1xf32> to vector<8x8xf32>
    %740 = arith.mulf %735, %739 : vector<8x8xf32>
    %cst_646 = arith.constant dense<0.000000e+00> : vector<8x8xf32>
    %741 = tpu.matmul %740, %727, %cst_646 {dimension_numbers = #tpu.dot_dimension_numbers<[1], [0], [0], [1], [0, 0, 1, 1], [], []>} : vector<8x8xf32>, vector<8x8xf32>, vector<8x8xf32> -> vector<8x8xf32>
    %c1_647 = arith.constant 1 : index
    %c3_648 = arith.constant 3 : index
    %c0_649 = arith.constant 0 : index
    %c0_650 = arith.constant 0 : index
    %742 = vector.load %arg7[%c1_647, %c3_648, %c0_649, %c0_650] : memref<2x4x8x32xf32, #tpu.memory_space<vmem>>, vector<1x1x8x32xf32>
    %743 = vector.shape_cast %742 : vector<1x1x8x32xf32> to vector<8x32xf32>
    %cst_651 = arith.constant dense<0.000000e+00> : vector<8x32xf32>
    %744 = tpu.matmul %741, %743, %cst_651 {dimension_numbers = #tpu.dot_dimension_numbers<[1], [0], [0], [1], [0, 0, 1, 1], [], []>} : vector<8x8xf32>, vector<8x32xf32>, vector<8x32xf32> -> vector<8x32xf32>
    %745 = arith.addf %706, %744 : vector<8x32xf32>
    %c1_652 = arith.constant 1 : index
    %c0_653 = arith.constant 0 : index
    %c0_654 = arith.constant 0 : index
    %746 = vector.load %arg8[%c1_652, %c0_653, %c0_654] : memref<2x1x32xf32, #tpu.memory_space<vmem>>, vector<1x1x32xf32>
    %747 = vector.shape_cast %746 : vector<1x1x32xf32> to vector<1x32xf32>
    %748 = vector.broadcast %747 : vector<1x32xf32> to vector<8x32xf32>
    %749 = arith.addf %745, %748 : vector<8x32xf32>
    %750 = tpu.concatenate %589, %749 in 0 : vector<8x32xf32>, vector<8x32xf32> -> vector<16x32xf32>
    %751 = arith.addf %403, %750 : vector<16x32xf32>
    %c1_655 = arith.constant 1 : index
    %c1_656 = arith.constant 1 : index
    %c0_657 = arith.constant 0 : index
    %c0_658 = arith.constant 0 : index
    %752 = vector.load %arg9[%c1_655, %c1_656, %c0_657, %c0_658] : memref<2x2x1x32xf32, #tpu.memory_space<vmem>>, vector<1x1x1x32xf32>
    %753 = vector.shape_cast %752 : vector<1x1x1x32xf32> to vector<1x32xf32>
    %c1_659 = arith.constant 1 : index
    %c1_660 = arith.constant 1 : index
    %c0_661 = arith.constant 0 : index
    %c0_662 = arith.constant 0 : index
    %754 = vector.load %arg10[%c1_659, %c1_660, %c0_661, %c0_662] : memref<2x2x1x32xf32, #tpu.memory_space<vmem>>, vector<1x1x1x32xf32>
    %755 = vector.shape_cast %754 : vector<1x1x1x32xf32> to vector<1x32xf32>
    %cst_663 = arith.constant dense<0.000000e+00> : vector<16xf32>
    %756 = vector.multi_reduction <add>, %751, %cst_663 [1] : vector<16x32xf32> to vector<16xf32>
    %757 = vector.shape_cast %756 : vector<16xf32> to vector<16x1xf32>
    %cst_664 = arith.constant 3.200000e+01 : f32
    %758 = vector.broadcast %cst_664 : f32 to vector<16x1xf32>
    %759 = arith.divf %757, %758 : vector<16x1xf32>
    %760 = vector.broadcast %759 : vector<16x1xf32> to vector<16x32xf32>
    %761 = arith.subf %751, %760 : vector<16x32xf32>
    %762 = arith.mulf %761, %761 : vector<16x32xf32>
    %cst_665 = arith.constant dense<0.000000e+00> : vector<16xf32>
    %763 = vector.multi_reduction <add>, %762, %cst_665 [1] : vector<16x32xf32> to vector<16xf32>
    %764 = vector.shape_cast %763 : vector<16xf32> to vector<16x1xf32>
    %cst_666 = arith.constant 3.200000e+01 : f32
    %765 = vector.broadcast %cst_666 : f32 to vector<16x1xf32>
    %766 = arith.divf %764, %765 : vector<16x1xf32>
    %767 = vector.broadcast %759 : vector<16x1xf32> to vector<16x32xf32>
    %768 = arith.subf %751, %767 : vector<16x32xf32>
    %cst_667 = arith.constant 9.99999974E-6 : f32
    %769 = vector.broadcast %cst_667 : f32 to vector<16x1xf32>
    %770 = arith.addf %766, %769 : vector<16x1xf32>
    %771 = math.rsqrt %770 : vector<16x1xf32>
    %772 = vector.broadcast %771 : vector<16x1xf32> to vector<16x32xf32>
    %773 = arith.mulf %768, %772 : vector<16x32xf32>
    %774 = vector.broadcast %753 : vector<1x32xf32> to vector<16x32xf32>
    %775 = arith.mulf %773, %774 : vector<16x32xf32>
    %776 = vector.broadcast %755 : vector<1x32xf32> to vector<16x32xf32>
    %777 = arith.addf %775, %776 : vector<16x32xf32>
    %c1_668 = arith.constant 1 : index
    %c0_669 = arith.constant 0 : index
    %c0_670 = arith.constant 0 : index
    %778 = vector.load %arg11[%c1_668, %c0_669, %c0_670] : memref<2x32x64xf32, #tpu.memory_space<vmem>>, vector<1x32x64xf32>
    %779 = vector.shape_cast %778 : vector<1x32x64xf32> to vector<32x64xf32>
    %cst_671 = arith.constant dense<0.000000e+00> : vector<16x64xf32>
    %780 = tpu.matmul %777, %779, %cst_671 {dimension_numbers = #tpu.dot_dimension_numbers<[1], [0], [0], [1], [0, 0, 1, 1], [], []>} : vector<16x32xf32>, vector<32x64xf32>, vector<16x64xf32> -> vector<16x64xf32>
    %c1_672 = arith.constant 1 : index
    %c0_673 = arith.constant 0 : index
    %c0_674 = arith.constant 0 : index
    %781 = vector.load %arg12[%c1_672, %c0_673, %c0_674] : memref<2x1x64xf32, #tpu.memory_space<vmem>>, vector<1x1x64xf32>
    %782 = vector.shape_cast %781 : vector<1x1x64xf32> to vector<1x64xf32>
    %783 = vector.broadcast %782 : vector<1x64xf32> to vector<16x64xf32>
    %784 = arith.addf %780, %783 : vector<16x64xf32>
    %cst_675 = arith.constant 0.000000e+00 : f32
    %785 = vector.broadcast %cst_675 : f32 to vector<16x64xf32>
    %786 = arith.maximumf %784, %785 : vector<16x64xf32>
    %c1_676 = arith.constant 1 : index
    %c0_677 = arith.constant 0 : index
    %c0_678 = arith.constant 0 : index
    %787 = vector.load %arg13[%c1_676, %c0_677, %c0_678] : memref<2x64x32xf32, #tpu.memory_space<vmem>>, vector<1x64x32xf32>
    %788 = vector.shape_cast %787 : vector<1x64x32xf32> to vector<64x32xf32>
    %cst_679 = arith.constant dense<0.000000e+00> : vector<16x32xf32>
    %789 = tpu.matmul %786, %788, %cst_679 {dimension_numbers = #tpu.dot_dimension_numbers<[1], [0], [0], [1], [0, 0, 1, 1], [], []>} : vector<16x64xf32>, vector<64x32xf32>, vector<16x32xf32> -> vector<16x32xf32>
    %c1_680 = arith.constant 1 : index
    %c0_681 = arith.constant 0 : index
    %c0_682 = arith.constant 0 : index
    %790 = vector.load %arg14[%c1_680, %c0_681, %c0_682] : memref<2x1x32xf32, #tpu.memory_space<vmem>>, vector<1x1x32xf32>
    %791 = vector.shape_cast %790 : vector<1x1x32xf32> to vector<1x32xf32>
    %792 = vector.broadcast %791 : vector<1x32xf32> to vector<16x32xf32>
    %793 = arith.addf %789, %792 : vector<16x32xf32>
    %794 = arith.addf %751, %793 : vector<16x32xf32>
    %c0_683 = arith.constant 0 : index
    %c0_684 = arith.constant 0 : index
    %795 = vector.load %arg15[%c0_683, %c0_684] : memref<1x32xf32, #tpu.memory_space<vmem>>, vector<1x32xf32>
    %c0_685 = arith.constant 0 : index
    %c0_686 = arith.constant 0 : index
    %796 = vector.load %arg16[%c0_685, %c0_686] : memref<1x32xf32, #tpu.memory_space<vmem>>, vector<1x32xf32>
    %cst_687 = arith.constant dense<0.000000e+00> : vector<16xf32>
    %797 = vector.multi_reduction <add>, %794, %cst_687 [1] : vector<16x32xf32> to vector<16xf32>
    %798 = vector.shape_cast %797 : vector<16xf32> to vector<16x1xf32>
    %cst_688 = arith.constant 3.200000e+01 : f32
    %799 = vector.broadcast %cst_688 : f32 to vector<16x1xf32>
    %800 = arith.divf %798, %799 : vector<16x1xf32>
    %801 = vector.broadcast %800 : vector<16x1xf32> to vector<16x32xf32>
    %802 = arith.subf %794, %801 : vector<16x32xf32>
    %803 = arith.mulf %802, %802 : vector<16x32xf32>
    %cst_689 = arith.constant dense<0.000000e+00> : vector<16xf32>
    %804 = vector.multi_reduction <add>, %803, %cst_689 [1] : vector<16x32xf32> to vector<16xf32>
    %805 = vector.shape_cast %804 : vector<16xf32> to vector<16x1xf32>
    %cst_690 = arith.constant 3.200000e+01 : f32
    %806 = vector.broadcast %cst_690 : f32 to vector<16x1xf32>
    %807 = arith.divf %805, %806 : vector<16x1xf32>
    %808 = vector.broadcast %800 : vector<16x1xf32> to vector<16x32xf32>
    %809 = arith.subf %794, %808 : vector<16x32xf32>
    %cst_691 = arith.constant 9.99999974E-6 : f32
    %810 = vector.broadcast %cst_691 : f32 to vector<16x1xf32>
    %811 = arith.addf %807, %810 : vector<16x1xf32>
    %812 = math.rsqrt %811 : vector<16x1xf32>
    %813 = vector.broadcast %812 : vector<16x1xf32> to vector<16x32xf32>
    %814 = arith.mulf %809, %813 : vector<16x32xf32>
    %815 = vector.broadcast %795 : vector<1x32xf32> to vector<16x32xf32>
    %816 = arith.mulf %814, %815 : vector<16x32xf32>
    %817 = vector.broadcast %796 : vector<1x32xf32> to vector<16x32xf32>
    %818 = arith.addf %816, %817 : vector<16x32xf32>
    %819 = vector.extract_strided_slice %818 {offsets = [0, 0], sizes = [8, 32], strides = [1, 1]} : vector<16x32xf32> to vector<8x32xf32>
    %cst_692 = arith.constant dense<0.000000e+00> : vector<32xf32>
    %820 = vector.multi_reduction <add>, %819, %cst_692 [0] : vector<8x32xf32> to vector<32xf32>
    %821 = vector.shape_cast %820 : vector<32xf32> to vector<1x32xf32>
    %cst_693 = arith.constant 8.000000e+00 : f32
    %822 = vector.broadcast %cst_693 : f32 to vector<1x32xf32>
    %823 = arith.divf %821, %822 : vector<1x32xf32>
    %824 = vector.extract_strided_slice %818 {offsets = [8, 0], sizes = [8, 32], strides = [1, 1]} : vector<16x32xf32> to vector<8x32xf32>
    %cst_694 = arith.constant dense<0.000000e+00> : vector<32xf32>
    %825 = vector.multi_reduction <add>, %824, %cst_694 [0] : vector<8x32xf32> to vector<32xf32>
    %826 = vector.shape_cast %825 : vector<32xf32> to vector<1x32xf32>
    %cst_695 = arith.constant 8.000000e+00 : f32
    %827 = vector.broadcast %cst_695 : f32 to vector<1x32xf32>
    %828 = arith.divf %826, %827 : vector<1x32xf32>
    %829 = tpu.concatenate %823, %828 in 0 : vector<1x32xf32>, vector<1x32xf32> -> vector<2x32xf32>
    %c0_696 = arith.constant 0 : index
    %c0_697 = arith.constant 0 : index
    %830 = vector.load %arg17[%c0_696, %c0_697] : memref<32x64xf32, #tpu.memory_space<vmem>>, vector<32x64xf32>
    %cst_698 = arith.constant dense<0.000000e+00> : vector<2x64xf32>
    %831 = tpu.matmul %829, %830, %cst_698 {dimension_numbers = #tpu.dot_dimension_numbers<[1], [0], [0], [1], [0, 0, 1, 1], [], []>} : vector<2x32xf32>, vector<32x64xf32>, vector<2x64xf32> -> vector<2x64xf32>
    %c0_699 = arith.constant 0 : index
    %c0_700 = arith.constant 0 : index
    %832 = vector.load %arg18[%c0_699, %c0_700] : memref<1x64xf32, #tpu.memory_space<vmem>>, vector<1x64xf32>
    %833 = vector.broadcast %832 : vector<1x64xf32> to vector<2x64xf32>
    %834 = arith.addf %831, %833 : vector<2x64xf32>
    %cst_701 = arith.constant 0.000000e+00 : f32
    %835 = vector.broadcast %cst_701 : f32 to vector<2x64xf32>
    %836 = arith.maximumf %834, %835 : vector<2x64xf32>
    %c0_702 = arith.constant 0 : index
    %c0_703 = arith.constant 0 : index
    %837 = vector.load %arg19[%c0_702, %c0_703] : memref<64x128xf32, #tpu.memory_space<vmem>>, vector<64x128xf32>
    %cst_704 = arith.constant dense<0.000000e+00> : vector<2x128xf32>
    %838 = tpu.matmul %836, %837, %cst_704 {dimension_numbers = #tpu.dot_dimension_numbers<[1], [0], [0], [1], [0, 0, 1, 1], [], []>} : vector<2x64xf32>, vector<64x128xf32>, vector<2x128xf32> -> vector<2x128xf32>
    %c0_705 = arith.constant 0 : index
    %c0_706 = arith.constant 0 : index
    %839 = vector.load %arg20[%c0_705, %c0_706] : memref<1x128xf32, #tpu.memory_space<vmem>>, vector<1x128xf32>
    %840 = vector.broadcast %839 : vector<1x128xf32> to vector<2x128xf32>
    %841 = arith.addf %838, %840 : vector<2x128xf32>
    %c0_707 = arith.constant 0 : index
    %c0_708 = arith.constant 0 : index
    %842 = vector.load %arg21[%c0_707, %c0_708] : memref<2x128xf32, #tpu.memory_space<vmem>>, vector<2x128xf32>
    tpu.vector_store %arg21[%c0_707, %c0_708], %841 {strides = array<i32>} : memref<2x128xf32, #tpu.memory_space<vmem>>, vector<2x128xf32>,
    return
  }
  func.func @transform_0(%arg0: i32) -> (i32, i32) {
    %c0_i32 = arith.constant 0 : i32
    %c0_i32_0 = arith.constant 0 : i32
    %c0_i32_1 = arith.constant 0 : i32
    return %c0_i32, %c0_i32_0 : i32, i32
  }
  func.func @transform_1(%arg0: i32) -> (i32, i32) {
    %c0_i32 = arith.constant 0 : i32
    %c0_i32_0 = arith.constant 0 : i32
    %c0_i32_1 = arith.constant 0 : i32
    return %c0_i32, %c0_i32_0 : i32, i32
  }
  func.func @transform_2(%arg0: i32) -> (i32, i32) {
    %c0_i32 = arith.constant 0 : i32
    %c0_i32_0 = arith.constant 0 : i32
    %c0_i32_1 = arith.constant 0 : i32
    return %c0_i32, %c0_i32_0 : i32, i32
  }
  func.func @transform_3(%arg0: i32) -> (i32, i32) {
    %c0_i32 = arith.constant 0 : i32
    %c0_i32_0 = arith.constant 0 : i32
    %c0_i32_1 = arith.constant 0 : i32
    return %c0_i32, %c0_i32_0 : i32, i32
  }
  func.func @transform_4(%arg0: i32) -> (i32, i32, i32, i32) {
    %c0_i32 = arith.constant 0 : i32
    %c0_i32_0 = arith.constant 0 : i32
    %c0_i32_1 = arith.constant 0 : i32
    %c0_i32_2 = arith.constant 0 : i32
    %c0_i32_3 = arith.constant 0 : i32
    return %c0_i32, %c0_i32_0, %c0_i32_1, %c0_i32_2 : i32, i32, i32, i32
  }
  func.func @transform_5(%arg0: i32) -> (i32, i32, i32, i32) {
    %c0_i32 = arith.constant 0 : i32
    %c0_i32_0 = arith.constant 0 : i32
    %c0_i32_1 = arith.constant 0 : i32
    %c0_i32_2 = arith.constant 0 : i32
    %c0_i32_3 = arith.constant 0 : i32
    return %c0_i32, %c0_i32_0, %c0_i32_1, %c0_i32_2 : i32, i32, i32, i32
  }
  func.func @transform_6(%arg0: i32) -> (i32, i32, i32, i32) {
    %c0_i32 = arith.constant 0 : i32
    %c0_i32_0 = arith.constant 0 : i32
    %c0_i32_1 = arith.constant 0 : i32
    %c0_i32_2 = arith.constant 0 : i32
    %c0_i32_3 = arith.constant 0 : i32
    return %c0_i32, %c0_i32_0, %c0_i32_1, %c0_i32_2 : i32, i32, i32, i32
  }
  func.func @transform_7(%arg0: i32) -> (i32, i32, i32) {
    %c0_i32 = arith.constant 0 : i32
    %c0_i32_0 = arith.constant 0 : i32
    %c0_i32_1 = arith.constant 0 : i32
    %c0_i32_2 = arith.constant 0 : i32
    return %c0_i32, %c0_i32_0, %c0_i32_1 : i32, i32, i32
  }
  func.func @transform_8(%arg0: i32) -> (i32, i32, i32, i32) {
    %c0_i32 = arith.constant 0 : i32
    %c0_i32_0 = arith.constant 0 : i32
    %c0_i32_1 = arith.constant 0 : i32
    %c0_i32_2 = arith.constant 0 : i32
    %c0_i32_3 = arith.constant 0 : i32
    return %c0_i32, %c0_i32_0, %c0_i32_1, %c0_i32_2 : i32, i32, i32, i32
  }
  func.func @transform_9(%arg0: i32) -> (i32, i32, i32, i32) {
    %c0_i32 = arith.constant 0 : i32
    %c0_i32_0 = arith.constant 0 : i32
    %c0_i32_1 = arith.constant 0 : i32
    %c0_i32_2 = arith.constant 0 : i32
    %c0_i32_3 = arith.constant 0 : i32
    return %c0_i32, %c0_i32_0, %c0_i32_1, %c0_i32_2 : i32, i32, i32, i32
  }
  func.func @transform_10(%arg0: i32) -> (i32, i32, i32) {
    %c0_i32 = arith.constant 0 : i32
    %c0_i32_0 = arith.constant 0 : i32
    %c0_i32_1 = arith.constant 0 : i32
    %c0_i32_2 = arith.constant 0 : i32
    return %c0_i32, %c0_i32_0, %c0_i32_1 : i32, i32, i32
  }
  func.func @transform_11(%arg0: i32) -> (i32, i32, i32) {
    %c0_i32 = arith.constant 0 : i32
    %c0_i32_0 = arith.constant 0 : i32
    %c0_i32_1 = arith.constant 0 : i32
    %c0_i32_2 = arith.constant 0 : i32
    return %c0_i32, %c0_i32_0, %c0_i32_1 : i32, i32, i32
  }
  func.func @transform_12(%arg0: i32) -> (i32, i32, i32) {
    %c0_i32 = arith.constant 0 : i32
    %c0_i32_0 = arith.constant 0 : i32
    %c0_i32_1 = arith.constant 0 : i32
    %c0_i32_2 = arith.constant 0 : i32
    return %c0_i32, %c0_i32_0, %c0_i32_1 : i32, i32, i32
  }
  func.func @transform_13(%arg0: i32) -> (i32, i32, i32) {
    %c0_i32 = arith.constant 0 : i32
    %c0_i32_0 = arith.constant 0 : i32
    %c0_i32_1 = arith.constant 0 : i32
    %c0_i32_2 = arith.constant 0 : i32
    return %c0_i32, %c0_i32_0, %c0_i32_1 : i32, i32, i32
  }
  func.func @transform_14(%arg0: i32) -> (i32, i32) {
    %c0_i32 = arith.constant 0 : i32
    %c0_i32_0 = arith.constant 0 : i32
    %c0_i32_1 = arith.constant 0 : i32
    return %c0_i32, %c0_i32_0 : i32, i32
  }
  func.func @transform_15(%arg0: i32) -> (i32, i32) {
    %c0_i32 = arith.constant 0 : i32
    %c0_i32_0 = arith.constant 0 : i32
    %c0_i32_1 = arith.constant 0 : i32
    return %c0_i32, %c0_i32_0 : i32, i32
  }
  func.func @transform_16(%arg0: i32) -> (i32, i32) {
    %c0_i32 = arith.constant 0 : i32
    %c0_i32_0 = arith.constant 0 : i32
    %c0_i32_1 = arith.constant 0 : i32
    return %c0_i32, %c0_i32_0 : i32, i32
  }
  func.func @transform_17(%arg0: i32) -> (i32, i32) {
    %c0_i32 = arith.constant 0 : i32
    %c0_i32_0 = arith.constant 0 : i32
    %c0_i32_1 = arith.constant 0 : i32
    return %c0_i32, %c0_i32_0 : i32, i32
  }
  func.func @transform_18(%arg0: i32) -> (i32, i32) {
    %c0_i32 = arith.constant 0 : i32
    %c0_i32_0 = arith.constant 0 : i32
    %c0_i32_1 = arith.constant 0 : i32
    return %c0_i32, %c0_i32_0 : i32, i32
  }
  func.func @transform_19(%arg0: i32) -> (i32, i32) {
    %c0_i32 = arith.constant 0 : i32
    %c0_i32_0 = arith.constant 0 : i32
    %c0_i32_1 = arith.constant 0 : i32
    return %c0_i32, %c0_i32_0 : i32, i32
  }
  func.func @transform_20(%arg0: i32) -> (i32, i32) {
    %c0_i32 = arith.constant 0 : i32
    %c0_i32_0 = arith.constant 0 : i32
    %c0_i32_1 = arith.constant 0 : i32
    return %c0_i32, %c0_i32_0 : i32, i32
  }
}

</mosaic_0001>

<bundles_post_ra>
// kernel: forward.1
= control target key start
LH: loop header
LB: loop body
LE: loop exit
PB: predicated region body
PF: predicated region fallthrough
CT: control target
= control target key end

     0   :  { %s12346_s0 = inlined_call_operand.vmem [shape: s32[16,1], index: 0, kind: input, shape index: {}]   ;;  %s12347_s1 = inlined_call_operand.vmem [shape: f32[64,32], index: 1, kind: input, shape index: {}]   ;;  %s12348_s2 = inlined_call_operand.vmem [shape: f32[32,32], index: 2, kind: input, shape index: {}]   ;;  %s12349_s3 = inlined_call_operand.vmem [shape: f32[1,32], index: 3, kind: input, shape index: {}]   ;;  %s12350_s4 = inlined_call_operand.vmem [shape: f32[2,12,32,8], index: 4, kind: input, shape index: {}]   ;;  %s12351_s5 = inlined_call_operand.vmem [shape: f32[2,12,1,8], index: 5, kind: input, shape index: {}]   ;;  %s12352_s6 = inlined_call_operand.vmem [shape: f32[2,4,8,32], index: 6, kind: input, shape index: {}]   ;;  %s12353_s7 = inlined_call_operand.vmem [shape: f32[2,1,32], index: 7, kind: input, shape index: {}]   ;;  %s12354_s8 = inlined_call_operand.vmem [shape: f32[2,2,1,32], index: 8, kind: input, shape index: {}]   ;;  %s12355_s9 = inlined_call_operand.vmem [shape: f32[2,2,1,32], index: 9, kind: input, shape index: {}]   ;;  %s12356_s10 = inlined_call_operand.vmem [shape: f32[2,32,64], index: 10, kind: input, shape index: {}]   ;;  %s12357_s11 = inlined_call_operand.vmem [shape: f32[2,1,64], index: 11, kind: input, shape index: {}]   ;;  %s12358_s12 = inlined_call_operand.vmem [shape: f32[2,64,32], index: 12, kind: input, shape index: {}]   ;;  %s12359_s13 = inlined_call_operand.vmem [shape: f32[2,1,32], index: 13, kind: input, shape index: {}]   ;;  %s12360_s14 = inlined_call_operand.vmem [shape: f32[1,32], index: 14, kind: input, shape index: {}]   ;;  %s12361_s15 = inlined_call_operand.vmem [shape: f32[1,32], index: 15, kind: input, shape index: {}]   ;;  %s12362_s16 = inlined_call_operand.vmem [shape: f32[32,64], index: 16, kind: input, shape index: {}]   ;;  %s12363_s17 = inlined_call_operand.vmem [shape: f32[1,64], index: 17, kind: input, shape index: {}]   ;;  %s12364_s18 = inlined_call_operand.vmem [shape: f32[64,128], index: 18, kind: input, shape index: {}]   ;;  %s12365_s19 = inlined_call_operand.vmem [shape: f32[1,128], index: 19, kind: input, shape index: {}]   ;;  %s12366_s20 = inlined_call_operand.hbm [shape: f32[2,128], index: 20, kind: output, shape index: {}]  }
   0x1   :  { %12371 = sst [smem:[#allocation5_spill]] %s12346_s0 }
   0x2   :  { %12372 = sst [smem:[#allocation6_spill]] %s12347_s1 }
   0x3   :  { %12373 = sst [smem:[#allocation7_spill]] %s12348_s2 }
   0x4   :  { %12374 = sst [smem:[#allocation8_spill]] %s12349_s3 }
   0x5   :  { %12375 = sst [smem:[#allocation9_spill]] %s12350_s4 }
   0x6   :  { %12376 = sst [smem:[#allocation10_spill]] %s12361_s15 }
   0x7   :  { %s12377_s23 = sld [smem:[#allocation5_spill]]  ;;  %s12378_s15 = sld [smem:[#allocation6_spill]]  ;;  %v10652_v2 = vmov 0  }
   0x8   :  { %10543 = vset.pattern.permute.xlu0 %v10652_v2 }
   0xd   :  { %v66_v0 = vld [vmem:[%s12377_s23] sm:$0xff]  ;;  %v83_v3 = vld [vmem:[%s12378_s15 + $0x8] sm:$0xff]  ;;  %v84_v4 = vld [vmem:[%s12378_s15 + $0x10] sm:$0xff] }
   0xe   :  { %v82_v1 = vld [vmem:[%s12378_s15] sm:$0xff]  ;;  %v85_v5 = vld [vmem:[%s12378_s15 + $0x18] sm:$0xff]  ;;  %71 = vperm.xlu0 %10543, %v66_v0   ;;  %v67_v6 = vld [vmem:[%s12377_s23 + $0x8] sm:$0xff] }
   0xf   :  { %v10160_v7 = vpack.c.bf16 %v83_v3, %v82_v1  ;;  %v10164_v8 = vpack.c.bf16 %v85_v5, %v84_v4  ;;  %v86_v9 = vld [vmem:[%s12378_s15 + $0x20] sm:$0xff]  ;;  %v87_v10 = vld [vmem:[%s12378_s15 + $0x28] sm:$0xff] }
  0x10   :  { %25 = vsyncpa [#allocation3], 0  ;;  %v10168_v11 = vpack.c.bf16 %v87_v10, %v86_v9  ;;  %v88_v12 = vld [vmem:[%s12378_s15 + $0x30] sm:$0xff]  ;;  %v89_v13 = vld [vmem:[%s12378_s15 + $0x38] sm:$0xff]  ;;  %s12379_s27 = sld [smem:[#allocation7_spill]]  ;;  %v10653_v21 = vmov 0.0   ;;  %v68_v22 = vlaneseq }
  0x11   :  { %10161 = vmatprep.subr.bf16.mxu0 %v10160_v7  ;;  %v10172_v19 = vpack.c.bf16 %v89_v13, %v88_v12  ;;  %vm90_vm0 = vcmask 523264   ;;  %vm183_vm3 = vcmask 261120   ;;  %s12380_s22 = sld [smem:[#allocation8_spill]]  ;;  %s12381_s23 = sld [smem:[#allocation9_spill]]  ;;  %v10654_v44 = vmov 0.0|0.0  }
  0x12   :  { %10163 = vmatpush3.bf16.msra.mxu0 %v10160_v7  ;;  %74 = vperm.xlu0 %10543, %v67_v6   ;;  %v69_v23 = vand.u32 127, %v68_v22  ;;  %vm10655_vm4 = vmmov 0   ;;  %v10850_v52 = vld [vmem:[%s12354_s8] ss:$0 sm:$0xff]  ;;  %v10916_v7 = vld [vmem:[%s12351_s5 + $0x4] ss:$0 sm:$0xff] }
  0x13   :  { %10165 = vmatprep.subr.bf16.mxu0 %v10164_v8  ;;  %v10861_v56 = vld [vmem:[%s12355_s9] ss:$0 sm:$0xff]  ;;  %vm560_vm5 = vcmask 64512   ;;  %s12382_s0 = sld [smem:[#allocation10_spill]]  ;;  %vm8370_vm6 = vcmask 1040384   ;;  %s10656_s28 = smov [#allocation2]  }
  0x14   :  { %s8552_s4 = sshll.u32 %s10656_s28, 4  ;;  %s8553_s4 = int_to_ptr.vmem [resolvable:$true] %s8552_s4 }
  0x15   :  { %p10633_p1 = scmp.lt.s32.totalorder %s8553_s4, %s8553_s4 }
  0x16   :  { %v172_v14 = vld [vmem:[%s12379_s27] sm:$0xff]  ;;  %v173_v15 = vld [vmem:[%s12379_s27 + $0x8] sm:$0xff]  ;;  %v174_v16 = vld [vmem:[%s12379_s27 + $0x10] sm:$0xff]  ;;  %10167 = vmatpush3.bf16.msra.mxu0 %v10164_v8 }
  0x17   :  { %v10176_v17 = vpack.c.bf16 %v173_v15, %v172_v14  ;;  %v175_v18 = vld [vmem:[%s12379_s27 + $0x18] sm:$0xff]  ;;  %10169 = vmatprep.subr.bf16.mxu0 %v10168_v11  ;;  %v8564_v30 = vld [vmem:[%s12380_s22] ss:$0 sm:$0xff]  ;;  %v311_v42 = vld [vmem:[%s12381_s23 + $0x8] sm:$0xff] }
  0x18   :  { %v10180_v20 = vpack.c.bf16 %v175_v18, %v174_v16  ;;  %v310_v41 = vld [vmem:[%s12381_s23] sm:$0xff]  ;;  %v312_v45 = vld [vmem:[%s12381_s23 + $0x10] sm:$0xff]  ;;  %v313_v46 = vld [vmem:[%s12381_s23 + $0x18] sm:$0xff] }
  0x19   :  { %10177 = vmatprep.subr.bf16.mxu1 %v10176_v17  ;;  %v10828_v43 = vpack.c.bf16 %v311_v42, %v310_v41  ;;  %v10839_v47 = vpack.c.bf16 %v313_v46, %v312_v45  ;;  %v8571_v54 = vld [vmem:[%s12381_s23 + $0x80] sm:$0xff]  ;;  %v8572_v55 = vld [vmem:[%s12381_s23 + $0x88] sm:$0xff]  ;;  %v8573_v60 = vld [vmem:[%s12381_s23 + $0x90] sm:$0xff] }
  0x1a   :  { %10179 = vmatpush3.bf16.msra.mxu1 %v10176_v17  ;;  %10171 = vmatpush3.bf16.msra.mxu0 %v10168_v11  ;;  %v10864_v58 = vpack.c.bf16 %v8572_v55, %v8571_v54  ;;  %v8574_v61 = vld [vmem:[%s12381_s23 + $0x98] sm:$0xff]  ;;  %v8578_v63 = vld [vmem:[%s12381_s23 + $0x100] sm:$0xff]  ;;  %v8579_v0 = vld [vmem:[%s12381_s23 + $0x108] sm:$0xff] }
  0x1b   :  { %10181 = vmatprep.subr.bf16.mxu1 %v10180_v20  ;;  %10173 = vmatprep.subr.bf16.mxu0 %v10172_v19  ;;  %v10878_v62 = vpack.c.bf16 %v8574_v61, %v8573_v60  ;;  %v10890_v1 = vpack.c.bf16 %v8579_v0, %v8578_v63  ;;  %v8580_v2 = vld [vmem:[%s12381_s23 + $0x110] sm:$0xff]  ;;  %v8581_v3 = vld [vmem:[%s12381_s23 + $0x118] sm:$0xff]  ;;  %v8588_v9 = vld [vmem:[%s12381_s23 + $0x20] sm:$0xff] }
  0x1c   :  { %v10902_v4 = vpack.c.bf16 %v8581_v3, %v8580_v2  ;;  %v8589_v10 = vld [vmem:[%s12381_s23 + $0x28] sm:$0xff]  ;;  %v10927_v11 = vld [vmem:[%s12351_s5] ss:$0 sm:$0xff]  ;;  %v8590_v16 = vld [vmem:[%s12381_s23 + $0x30] sm:$0xff] }
  0x1d   :  { %v10931_v14 = vpack.c.bf16 %v8589_v10, %v8588_v9  ;;  %v8591_v17 = vld [vmem:[%s12381_s23 + $0x38] sm:$0xff]  ;;  %v10945_v18 = vld [vmem:[%s12351_s5 + $0x8] ss:$0 sm:$0xff]  ;;  %v8602_v22 = vld [vmem:[%s12381_s23 + $0x120] sm:$0xff] }
  0x1e   :  { %10183 = vmatpush3.bf16.msra.mxu1 %v10180_v20  ;;  %10175 = vmatpush3.bf16.msra.mxu0 %v10172_v19  ;;  %v10948_v19 = vpack.c.bf16 %v8591_v17, %v8590_v16  ;;  %v8597_v55 = vld [vmem:[%s12381_s23 + $0xb0] sm:$0xff]  ;;  %v11017_v0 = vld [vmem:[%s12351_s5 + $0x5] ss:$0 sm:$0xff]  ;;  %v11022_v3 = vld [vmem:[%s12351_s5 + $0x1] ss:$0 sm:$0xff] }
  0x1f   :  { %9335 = vmatprep.subr.mxu0 %v10653_v21  ;;  %10184 = vmatprep.subr.bf16.mxu1 %v10654_v44 }
  0x8d   :  { %v72_v24 = vpop.permute.xlu0 %71 }
  0x8e   :  { %vm76_vm1 = vcmp.eq.s32.totalorder %v69_v23, %v72_v24 }
  0x8f   :  { %v8560_v25 = vsel %vm76_vm1, 1.0, %v10653_v21 }
  0x90   :  { %9288 = vmatprep.mubr.msk.f32.mxu0 %vm90_vm0, %v8560_v25 }
  0x91   :  { %v75_v26 = vpop.permute.xlu0 %74 }
  0x92   :  { %vm77_vm2 = vcmp.eq.s32.totalorder %v69_v23, %v75_v26  ;;  %v8603_v23 = vld [vmem:[%s12381_s23 + $0x128] sm:$0xff] }
  0x93   :  { %v8561_v27 = vsel %vm77_vm2, 1.0, %v10653_v21  ;;  %v10961_v26 = vpack.c.bf16 %v8603_v23, %v8602_v22 }
  0x94   :  { %9289 = vmatmul.mubr.msk.f32.vlgmr.msra.gmra.mrb[0].mxu0 %vm90_vm0, %v8561_v27  ;;  %v8604_v27 = vld [vmem:[%s12381_s23 + $0x130] sm:$0xff] }
  0x95   :  { %9337 = vmatprep.mubr.msk.f32.mxu0 %vm10655_vm4, %v10653_v21 }
 0x167   :  { %v9290_v28 = vpop.f32.mrb[0].mxu0 }
 0x168   :  { %v163_v29 = vpop.f32.mrb[1].mxu0 }
 0x169   :  { %9299 = vmatprep.mubr.msk.f32.mxu1 %vm183_vm3, %v163_v29 }
 0x16a   :  { %9300 = vmatmul.mubr.msk.f32.vlgmr.msra.gmra.mrb[0].mxu1 %vm183_vm3, %v9290_v28  ;;  %v8605_v28 = vld [vmem:[%s12381_s23 + $0x138] sm:$0xff] }
 0x16b   :  { %10186 = vmatpush3.bf16.msra.mxu1 %v10828_v43  ;;  %9310 = vmatprep.mubr.msk.f32.mxu1 %vm10655_vm4, %v10653_v21  ;;  %v10974_v29 = vpack.c.bf16 %v8605_v28, %v8604_v27 }
 0x16c   :  { %10187 = vmatprep.subr.bf16.mxu1 %v10654_v44 }
 0x16f   :  { %10189 = vmatpush3.bf16.msra.mxu1 %v10839_v47 }
 0x170   :  { %10190 = vmatprep.subr.bf16.mxu1 %v10654_v44 }
 0x23d   :  { %v9301_v31 = vpop.f32.mrb[0].mxu1 }
 0x23e   :  { %v10814_v32 = vadd.f32 %v9301_v31, %v8564_v30  ;;  %v256_v33 = vpop.f32.mrb[1].mxu1 }
 0x23f   :  { %v10816_v34 = vadd.f32 %v8564_v30, %v256_v33 }
 0x241   :  { %v267_v35 = vsel %vm183_vm3, %v10816_v34, 0.0 }
 0x242   :  { %268 = vadd.xlane.f32.xlu1 %v267_v35 }
 0x2cf   :  { %v269_v36 = vpop.xlane.xlu1 %268 }
 0x2d0   :  { %v274_v37 = vmul.f32 0.03125, %v269_v36 }
 0x2d2   :  { %v276_v38 = vsub.f32 %v10816_v34, %v274_v37 }
 0x2d4   :  { %v278_v39 = vmul.f32 %v276_v38, %v276_v38 }
 0x2d6   :  { %v280_v40 = vsel %vm183_vm3, %v278_v39, 0.0 }
 0x2d7   :  { %281 = vadd.xlane.f32.xlu1 %v280_v40 }
 0x364   :  { %v282_v48 = vpop.xlane.xlu1 %281 }
 0x365   :  { %v286_v49 = vmul.f32 0.03125, %v282_v48 }
 0x367   :  { %v288_v50 = vadd.f32 1e-05, %v286_v49  ;;  %v8595_v49 = vld [vmem:[%s12381_s23 + $0xa0] sm:$0xff] }
 0x369   :  { %10544 = vrsqrt.f32 %v288_v50  ;;  %v8596_v50 = vld [vmem:[%s12381_s23 + $0xa8] sm:$0xff] }
 0x373   :  { %v10545_v51 = vpop.eup %10544 }
 0x374   :  { %v292_v53 = vmul.f32 %v10545_v51, %v276_v38 }
 0x376   :  { %v300_v57 = vmul.f32 %v10850_v52, %v292_v53  ;;  %v10993_v53 = vpack.c.bf16 %v8596_v50, %v8595_v49 }
 0x378   :  { %v10867_v59 = vadd.f32 %v10861_v56, %v300_v57  ;;  %v8598_v57 = vld [vmem:[%s12381_s23 + $0xb8] sm:$0xff] }
 0x379   :  { %v11003_v60 = vpack.c.bf16 %v8598_v57, %v8597_v55 }
 0x37a   :  { %9311 = vmatmul.mubr.msk.f32.vlgmr.msra.gmra.mrb[2].mxu1 %vm183_vm3, %v10867_v59 }
 0x37b   :  { %10192 = vmatpush3.bf16.msra.mxu1 %v10864_v58  ;;  %9321 = vmatprep.mubr.msk.f32.mxu1 %vm10655_vm4, %v10653_v21 }
 0x37c   :  { %10193 = vmatprep.subr.bf16.mxu1 %v10654_v44 }
 0x37f   :  { %10195 = vmatpush3.bf16.msra.mxu1 %v10878_v62 }
 0x380   :  { %10196 = vmatprep.subr.bf16.mxu1 %v10654_v44 }
 0x382   :  { %9322 = vmatmul.mubr.msk.f32.vlgmr.msra.gmra.mrb[4].mxu1 %vm183_vm3, %v10867_v59 }
 0x383   :  { %10198 = vmatpush3.bf16.msra.mxu1 %v10890_v1  ;;  %9332 = vmatprep.mubr.msk.f32.mxu1 %vm10655_vm4, %v10653_v21 }
 0x384   :  { %10199 = vmatprep.subr.bf16.mxu1 %v10654_v44 }
 0x387   :  { %10201 = vmatpush3.bf16.msra.mxu1 %v10902_v4 }
 0x388   :  { %9340 = vmatprep.subr.mxu1 %v10653_v21 }
 0x38a   :  { %9333 = vmatmul.mubr.msk.f32.vlgmr.msra.gmra.mrb[6].mxu1 %vm183_vm3, %v10867_v59 }
 0x38b   :  { %9342 = vmatprep.mubr.msk.f32.mxu1 %vm10655_vm4, %v10653_v21 }
 0x44d   :  { %v390_v5 = vpop.f32.mrb[2].mxu1 }
 0x44e   :  { %v9312_v6 = vpop.f32.mrb[3].mxu1  ;;  %v391_v15 = vadd.f32 %v10927_v11, %v390_v5 }
 0x455   :  { %v473_v8 = vpop.f32.mrb[4].mxu1 }
 0x456   :  { %v474_v12 = vadd.f32 %v10916_v7, %v473_v8  ;;  %v9323_v13 = vpop.f32.mrb[5].mxu1  ;;  %v11028_v8 = vld [vmem:[%s12351_s5 + $0x9] ss:$0 sm:$0xff] }
 0x458   :  { %9336 = vmatpush3.xpose.msk.msra.mxu0 %vm560_vm5, %v474_v12 }
 0x459   :  { %10202 = vmatprep.subr.bf16.mxu0 %v10654_v44 }
 0x45b   :  { %9338 = vmatmul.mubr.msk.f32.vlgmr.msra.gmra.mrb[2].mxu0 %vm560_vm5, %v391_v15 }
 0x45c   :  { %10204 = vmatpush3.bf16.msra.mxu0 %v10931_v14  ;;  %9353 = vmatprep.mubr.msk.f32.mxu0 %vm10655_vm4, %v10653_v21 }
 0x45d   :  { %v556_v20 = vpop.f32.mrb[6].mxu1  ;;  %10205 = vmatprep.subr.bf16.mxu0 %v10654_v44 }
 0x45e   :  { %v557_v24 = vadd.f32 %v10945_v18, %v556_v20  ;;  %v9334_v25 = vpop.f32.mrb[7].mxu1 }
 0x45f   :  { %v11043_v25 = vld [vmem:[%s12352_s6 + $0x8] sm:$0xff] }
 0x460   :  { %9341 = vmatpush3.msra.mxu1 %v557_v24  ;;  %10207 = vmatpush3.bf16.msra.mxu0 %v10948_v19 }
 0x461   :  { %10214 = vmatprep.subr.bf16.mxu0 %v10654_v44  ;;  %10208 = vmatprep.subr.bf16.mxu1 %v10654_v44 }
 0x463   :  { %9354 = vmatmul.mubr.msk.f32.vlgmr.msra.gmra.mrb[4].mxu0 %vm183_vm3, %v10867_v59 }
 0x464   :  { %10216 = vmatpush3.bf16.msra.mxu0 %v10961_v26  ;;  %9375 = vmatprep.mubr.msk.f32.mxu0 %vm10655_vm4, %v10653_v21 }
 0x465   :  { %10217 = vmatprep.subr.bf16.mxu0 %v10654_v44 }
 0x468   :  { %10219 = vmatpush3.bf16.msra.mxu0 %v10974_v29 }
 0x469   :  { %9388 = vmatprep.subr.mxu0 %v10653_v21 }
 0x46b   :  { %9376 = vmatmul.mubr.msk.f32.vlgmr.msra.gmra.mrb[6].mxu0 %vm183_vm3, %v10867_v59 }
 0x46c   :  { %9390 = vmatprep.mubr.msk.f32.mxu0 %vm10655_vm4, %v10653_v21  ;;  %9389 = vmatpush3.msra.mxu0 %v11043_v25 }
 0x46d   :  { %10220 = vmatprep.subr.bf16.mxu0 %v10654_v44 }
 0x52e   :  { %v633_v30 = vpop.f32.mrb[2].mxu0 }
 0x52f   :  { %v637_v31 = vmul.f32 0.35355338, %v633_v30  ;;  %v9339_v33 = vpop.f32.mrb[3].mxu0 }
 0x530   :  { %v8622_v33 = vld [vmem:[%s12381_s23 + $0xc0] sm:$0xff] }
 0x531   :  { %v638_v35 = vsel %vm560_vm5, %v637_v31, -inf }
 0x532   :  { %639 = vmax.xlane.f32.xlu0 %v638_v35  ;;  %v8623_v35 = vld [vmem:[%s12381_s23 + $0xc8] sm:$0xff] }
 0x536   :  { %v802_v36 = vpop.f32.mrb[4].mxu0 }
 0x537   :  { %v9355_v37 = vpop.f32.mrb[5].mxu0  ;;  %v803_v9 = vadd.f32 %v11022_v3, %v802_v36  ;;  %v11062_v36 = vpack.c.bf16 %v8623_v35, %v8622_v33 }
 0x538   :  { %v8624_v37 = vld [vmem:[%s12381_s23 + $0xd0] sm:$0xff] }
 0x53e   :  { %v968_v38 = vpop.f32.mrb[6].mxu0 }
 0x53f   :  { %v9377_v39 = vpop.f32.mrb[7].mxu0  ;;  %v969_v10 = vadd.f32 %v11028_v8, %v968_v38  ;;  %v8625_v38 = vld [vmem:[%s12381_s23 + $0xd8] sm:$0xff] }
 0x540   :  { %v11073_v39 = vpack.c.bf16 %v8625_v38, %v8624_v37 }
 0x5bf   :  { %v640_v40 = vpop.xlane.xlu0 %639 }
 0x5c0   :  { %v641_v41 = vsub.f32 %v637_v31, %v640_v40  ;;  %v11050_v31 = vld [vmem:[%s12352_s6] sm:$0xff] }
 0x5c1   :  { %v8615_v40 = vld [vmem:[%s12381_s23 + $0x40] sm:$0xff] }
 0x5c2   :  { %v642_v42 = vmul.f32 1.442695, %v641_v41  ;;  %v8616_v41 = vld [vmem:[%s12381_s23 + $0x48] sm:$0xff] }
 0x5c4   :  { %10546 = vpow2.f32 %v642_v42  ;;  %v11090_v42 = vpack.c.bf16 %v8616_v41, %v8615_v40 }
 0x5ce   :  { %v10547_v45 = vpop.eup %10546 }
 0x5cf   :  { %v644_v46 = vsel %vm560_vm5, %v10547_v45, 0.0 }
 0x5d0   :  { %645 = vadd.xlane.f32.xlu1 %v644_v46  ;;  %v8618_v46 = vld [vmem:[%s12381_s23 + $0x58] sm:$0xff] }
 0x65d   :  { %v646_v48 = vpop.xlane.xlu1 %645 }
 0x65e   :  { %10548 = vrcp.f32 %v646_v48 }
 0x668   :  { %v10549_v51 = vpop.eup %10548 }
 0x669   :  { %v648_v54 = vmul.f32 %v10549_v51, %v10547_v45  ;;  %v8617_v45 = vld [vmem:[%s12381_s23 + $0x50] sm:$0xff]  ;;  %v8629_v51 = vld [vmem:[%s12381_s23 + $0x140] sm:$0xff] }
 0x66a   :  { %v11100_v50 = vpack.c.bf16 %v8618_v46, %v8617_v45 }
 0x66b   :  { %9343 = vmatmul.mubr.msk.f32.vlgmr.msra.gmra.mrb[8].mxu1 %vm560_vm5, %v648_v54  ;;  %v8630_v54 = vld [vmem:[%s12381_s23 + $0x148] sm:$0xff] }
 0x66c   :  { %10210 = vmatpush3.bf16.msra.mxu1 %v10993_v53  ;;  %9364 = vmatprep.mubr.msk.f32.mxu1 %vm10655_vm4, %v10653_v21 }
 0x66d   :  { %10211 = vmatprep.subr.bf16.mxu1 %v10654_v44 }
 0x670   :  { %10213 = vmatpush3.bf16.msra.mxu1 %v11003_v60 }
 0x671   :  { %9378 = vmatprep.subr.mxu1 %v10653_v21 }
 0x673   :  { %9365 = vmatmul.mubr.msk.f32.vlgmr.msra.gmra.mrb[10].mxu1 %vm183_vm3, %v10867_v59 }
 0x674   :  { %9380 = vmatprep.mubr.msk.f32.mxu1 %vm10655_vm4, %v10653_v21 }
 0x73e   :  { %v718_v61 = vpop.f32.mrb[8].mxu1 }
 0x73f   :  { %v9344_v63 = vpop.f32.mrb[9].mxu1 }
 0x740   :  { %v8631_v63 = vld [vmem:[%s12381_s23 + $0x150] sm:$0xff] }
 0x746   :  { %v885_v2 = vpop.f32.mrb[10].mxu1 }
 0x747   :  { %v886_v5 = vadd.f32 %v11017_v0, %v885_v2  ;;  %v9366_v6 = vpop.f32.mrb[11].mxu1  ;;  %v8632_v2 = vld [vmem:[%s12381_s23 + $0x158] sm:$0xff] }
 0x748   :  { %v11129_v6 = vpack.c.bf16 %v8632_v2, %v8631_v63 }
 0x749   :  { %9379 = vmatpush3.xpose.msk.msra.mxu1 %vm560_vm5, %v886_v5  ;;  %v11127_v5 = vld [vmem:[%s12351_s5 + $0x6] ss:$0 sm:$0xff] }
 0x74a   :  { %9383 = vmatprep.subr.mxu1 %v10653_v21 }
 0x74c   :  { %9381 = vmatmul.mubr.msk.f32.vlgmr.msra.gmra.mrb[12].mxu1 %vm560_vm5, %v803_v9 }
 0x74d   :  { %9384 = vmatpush3.msra.mxu1 %v969_v10  ;;  %9385 = vmatprep.mubr.msk.f32.mxu1 %vm10655_vm4, %v10653_v21 }
 0x74e   :  { %9393 = vmatprep.subr.mxu1 %v10653_v21 }
 0x81f   :  { %v1044_v12 = vpop.f32.mrb[12].mxu1 }
 0x820   :  { %v1048_v13 = vmul.f32 0.35355338, %v1044_v12  ;;  %v9382_v15 = vpop.f32.mrb[13].mxu1 }
 0x822   :  { %v1049_v16 = vsel %vm560_vm5, %v1048_v13, -inf }
 0x823   :  { %1050 = vmax.xlane.f32.xlu1 %v1049_v16 }
 0x8b0   :  { %v1051_v17 = vpop.xlane.xlu1 %1050 }
 0x8b1   :  { %v1052_v20 = vsub.f32 %v1048_v13, %v1051_v17  ;;  %v11148_v17 = vld [vmem:[%s12351_s5 + $0x2] ss:$0 sm:$0xff] }
 0x8b3   :  { %v1053_v22 = vmul.f32 1.442695, %v1052_v20 }
 0x8b5   :  { %10550 = vpow2.f32 %v1053_v22 }
 0x8bf   :  { %v10551_v23 = vpop.eup %10550 }
 0x8c0   :  { %v1055_v24 = vsel %vm560_vm5, %v10551_v23, 0.0 }
 0x8c1   :  { %1056 = vadd.xlane.f32.xlu1 %v1055_v24  ;;  %v11157_v24 = vld [vmem:[%s12351_s5 + $0xa] ss:$0 sm:$0xff] }
 0x94e   :  { %v1057_v27 = vpop.xlane.xlu1 %1056 }
 0x94f   :  { %10552 = vrcp.f32 %v1057_v27 }
 0x959   :  { %v10553_v28 = vpop.eup %10552 }
 0x95a   :  { %v1059_v30 = vmul.f32 %v10553_v28, %v10551_v23 }
 0x95c   :  { %9386 = vmatmul.mubr.msk.f32.vlgmr.msra.gmra.mrb[14].mxu1 %vm560_vm5, %v1059_v30 }
 0x95d   :  { %9394 = vmatpush3.msra.mxu1 %v11050_v31  ;;  %9395 = vmatprep.mubr.msk.f32.mxu1 %vm10655_vm4, %v10653_v21 }
 0x95e   :  { %10226 = vmatprep.subr.bf16.mxu1 %v10654_v44 }
 0x960   :  { %9396 = vmatmul.mubr.msk.f32.vlgmr.msra.gmra.mrb[16].mxu1 %vm560_vm5, %v718_v61  ;;  %v11112_v61 = vpack.c.bf16 %v8630_v54, %v8629_v51  ;;  %v8641_v54 = vld [vmem:[%s12381_s23 + $0x60] sm:$0xff] }
 0x961   :  { %10228 = vmatpush3.bf16.msra.mxu1 %v11062_v36  ;;  %9417 = vmatprep.mubr.msk.f32.mxu1 %vm10655_vm4, %v10653_v21 }
 0x962   :  { %10229 = vmatprep.subr.bf16.mxu1 %v10654_v44 }
 0x965   :  { %10231 = vmatpush3.bf16.msra.mxu1 %v11073_v39 }
 0x966   :  { %9431 = vmatprep.subr.mxu1 %v10653_v21 }
 0x968   :  { %9418 = vmatmul.mubr.msk.f32.vlgmr.msra.gmra.mrb[18].mxu1 %vm183_vm3, %v10867_v59 }
 0x969   :  { %9433 = vmatprep.mubr.msk.f32.mxu1 %vm10655_vm4, %v10653_v21 }
 0xa2f   :  { %v1129_v48 = vpop.f32.mrb[14].mxu1 }
 0xa30   :  { %v9387_v49 = vpop.f32.mrb[15].mxu1  ;;  %9391 = vmatmul.mubr.msk.f32.vlgmr.msra.gmra.mrb[8].mxu0 %vm560_vm5, %v1129_v48 }
 0xa31   :  { %10222 = vmatpush3.bf16.msra.mxu0 %v11090_v42  ;;  %9406 = vmatprep.mubr.msk.f32.mxu0 %vm10655_vm4, %v10653_v21  ;;  %v11166_v49 = vld [vmem:[%s12352_s6 + $0x10] sm:$0xff] }
 0xa32   :  { %10223 = vmatprep.subr.bf16.mxu0 %v10654_v44 }
 0xa33   :  { %v1277_v55 = vpop.f32.mrb[16].mxu1 }
 0xa34   :  { %v9397_v57 = vpop.f32.mrb[17].mxu1 }
 0xa35   :  { %10225 = vmatpush3.bf16.msra.mxu0 %v11100_v50 }
 0xa36   :  { %10232 = vmatprep.subr.bf16.mxu0 %v10654_v44 }
 0xa38   :  { %9407 = vmatmul.mubr.msk.f32.vlgmr.msra.gmra.mrb[10].mxu0 %vm183_vm3, %v10867_v59 }
 0xa39   :  { %10234 = vmatpush3.bf16.msra.mxu0 %v11112_v61  ;;  %9428 = vmatprep.mubr.msk.f32.mxu0 %vm10655_vm4, %v10653_v21 }
 0xa3a   :  { %10235 = vmatprep.subr.bf16.mxu0 %v10654_v44 }
 0xa3b   :  { %v1443_v9 = vpop.f32.mrb[18].mxu1 }
 0xa3c   :  { %v1444_v10 = vadd.f32 %v11127_v5, %v1443_v9  ;;  %v9419_v12 = vpop.f32.mrb[19].mxu1  ;;  %v8643_v9 = vld [vmem:[%s12381_s23 + $0x70] sm:$0xff] }
 0xa3d   :  { %10237 = vmatpush3.bf16.msra.mxu0 %v11129_v6 }
 0xa3e   :  { %9432 = vmatpush3.xpose.msk.msra.mxu1 %vm560_vm5, %v1444_v10  ;;  %9441 = vmatprep.subr.mxu0 %v10653_v21  ;;  %v8644_v10 = vld [vmem:[%s12381_s23 + $0x78] sm:$0xff] }
 0xa3f   :  { %9436 = vmatprep.subr.mxu1 %v10653_v21  ;;  %v11186_v12 = vpack.c.bf16 %v8644_v10, %v8643_v9 }
 0xa40   :  { %9429 = vmatmul.mubr.msk.f32.vlgmr.msra.gmra.mrb[12].mxu0 %vm183_vm3, %v10867_v59 }
 0xa41   :  { %9443 = vmatprep.mubr.msk.f32.mxu0 %vm10655_vm4, %v10653_v21  ;;  %9442 = vmatpush3.msra.mxu0 %v11166_v49 }
 0xa42   :  { %10244 = vmatprep.subr.bf16.mxu0 %v10654_v44 }
 0xb03   :  { %v1204_v13 = vpop.f32.mrb[8].mxu0 }
 0xb04   :  { %v11143_v15 = vadd.f32 %v1277_v55, %v1204_v13  ;;  %v9392_v16 = vpop.f32.mrb[9].mxu0  ;;  %v8642_v55 = vld [vmem:[%s12381_s23 + $0x68] sm:$0xff]  ;;  %v8655_v13 = vld [vmem:[%s12381_s23 + $0x160] sm:$0xff] }
 0xb05   :  { %v11176_v63 = vpack.c.bf16 %v8642_v55, %v8641_v54  ;;  %v8656_v16 = vld [vmem:[%s12381_s23 + $0x168] sm:$0xff] }
 0xb0b   :  { %v1360_v20 = vpop.f32.mrb[10].mxu0 }
 0xb0c   :  { %v1361_v22 = vadd.f32 %v11148_v17, %v1360_v20  ;;  %v9408_v23 = vpop.f32.mrb[11].mxu0  ;;  %v11198_v20 = vpack.c.bf16 %v8656_v16, %v8655_v13 }
 0xb0d   :  { %v8658_v23 = vld [vmem:[%s12381_s23 + $0x178] sm:$0xff] }
 0xb0e   :  { %9434 = vmatmul.mubr.msk.f32.vlgmr.msra.gmra.mrb[20].mxu1 %vm560_vm5, %v1361_v22  ;;  %v8657_v22 = vld [vmem:[%s12381_s23 + $0x170] sm:$0xff] }
 0xb0f   :  { %9438 = vmatprep.mubr.msk.f32.mxu1 %vm10655_vm4, %v10653_v21 }
 0xb13   :  { %v1526_v27 = vpop.f32.mrb[12].mxu0 }
 0xb14   :  { %v1527_v28 = vadd.f32 %v11157_v24, %v1526_v27  ;;  %v9430_v30 = vpop.f32.mrb[13].mxu0  ;;  %v11210_v27 = vpack.c.bf16 %v8658_v23, %v8657_v22 }
 0xb15   :  { %v8649_v30 = vld [vmem:[%s12381_s23 + $0xe8] sm:$0xff] }
 0xb16   :  { %9437 = vmatpush3.msra.mxu1 %v1527_v28  ;;  %v8648_v28 = vld [vmem:[%s12381_s23 + $0xe0] sm:$0xff] }
 0xb17   :  { %10238 = vmatprep.subr.bf16.mxu1 %v10654_v44 }
 0xbe1   :  { %v1602_v33 = vpop.f32.mrb[20].mxu1 }
 0xbe2   :  { %v1606_v35 = vmul.f32 0.35355338, %v1602_v33  ;;  %v9435_v37 = vpop.f32.mrb[21].mxu1  ;;  %v11227_v33 = vpack.c.bf16 %v8649_v30, %v8648_v28 }
 0xbe3   :  { %v8651_v37 = vld [vmem:[%s12381_s23 + $0xf8] sm:$0xff] }
 0xbe4   :  { %v1607_v38 = vsel %vm560_vm5, %v1606_v35, -inf }
 0xbe5   :  { %1608 = vmax.xlane.f32.xlu1 %v1607_v38 }
 0xc72   :  { %v1609_v40 = vpop.xlane.xlu1 %1608 }
 0xc73   :  { %v1610_v41 = vsub.f32 %v1606_v35, %v1609_v40  ;;  %v8650_v35 = vld [vmem:[%s12381_s23 + $0xf0] sm:$0xff] }
 0xc75   :  { %v1611_v45 = vmul.f32 1.442695, %v1610_v41  ;;  %v11237_v41 = vpack.c.bf16 %v8651_v37, %v8650_v35 }
 0xc77   :  { %10554 = vpow2.f32 %v1611_v45 }
 0xc81   :  { %v10555_v46 = vpop.eup %10554 }
 0xc82   :  { %v1613_v48 = vsel %vm560_vm5, %v10555_v46, 0.0 }
 0xc83   :  { %1614 = vadd.xlane.f32.xlu1 %v1613_v48 }
 0xd10   :  { %v1615_v51 = vpop.xlane.xlu1 %1614 }
 0xd11   :  { %10556 = vrcp.f32 %v1615_v51 }
 0xd1b   :  { %v10557_v57 = vpop.eup %10556 }
 0xd1c   :  { %v1617_v2 = vmul.f32 %v10557_v57, %v10555_v46 }
 0xd1e   :  { %9439 = vmatmul.mubr.msk.f32.vlgmr.msra.gmra.mrb[22].mxu1 %vm560_vm5, %v1617_v2  ;;  %v11254_v2 = vld [vmem:[%s12351_s5 + $0x7] ss:$0 sm:$0xff] }
 0xd1f   :  { %10240 = vmatpush3.bf16.msra.mxu1 %v11176_v63  ;;  %9454 = vmatprep.mubr.msk.f32.mxu1 %vm10655_vm4, %v10653_v21 }
 0xd20   :  { %10241 = vmatprep.subr.bf16.mxu1 %v10654_v44 }
 0xd23   :  { %10243 = vmatpush3.bf16.msra.mxu1 %v11186_v12 }
 0xd24   :  { %10250 = vmatprep.subr.bf16.mxu1 %v10654_v44 }
 0xd26   :  { %9455 = vmatmul.mubr.msk.f32.vlgmr.msra.gmra.mrb[24].mxu1 %vm183_vm3, %v10867_v59 }
 0xd27   :  { %10252 = vmatpush3.bf16.msra.mxu1 %v11198_v20  ;;  %9476 = vmatprep.mubr.msk.f32.mxu1 %vm10655_vm4, %v10653_v21 }
 0xd28   :  { %10253 = vmatprep.subr.bf16.mxu1 %v10654_v44 }
 0xd2b   :  { %10255 = vmatpush3.bf16.msra.mxu1 %v11210_v27 }
 0xd2c   :  { %9489 = vmatprep.subr.mxu1 %v10653_v21 }
 0xd2e   :  { %9477 = vmatmul.mubr.msk.f32.vlgmr.msra.gmra.mrb[26].mxu1 %vm183_vm3, %v10867_v59 }
 0xd2f   :  { %9491 = vmatprep.mubr.msk.f32.mxu1 %vm10655_vm4, %v10653_v21 }
 0xdf1   :  { %v1687_v38 = vpop.f32.mrb[22].mxu1 }
 0xdf2   :  { %v9440_v40 = vpop.f32.mrb[23].mxu1  ;;  %9444 = vmatmul.mubr.msk.f32.vlgmr.msra.gmra.mrb[14].mxu0 %vm560_vm5, %v1687_v38 }
 0xdf3   :  { %10246 = vmatpush3.bf16.msra.mxu0 %v11227_v33  ;;  %9465 = vmatprep.mubr.msk.f32.mxu0 %vm10655_vm4, %v10653_v21 }
 0xdf4   :  { %10247 = vmatprep.subr.bf16.mxu0 %v10654_v44 }
 0xdf7   :  { %10249 = vmatpush3.bf16.msra.mxu0 %v11237_v41 }
 0xdf8   :  { %9479 = vmatprep.subr.mxu0 %v10653_v21 }
 0xdf9   :  { %v1846_v45 = vpop.f32.mrb[24].mxu1 }
 0xdfa   :  { %v9456_v46 = vpop.f32.mrb[25].mxu1  ;;  %9466 = vmatmul.mubr.msk.f32.vlgmr.msra.gmra.mrb[16].mxu0 %vm183_vm3, %v10867_v59  ;;  %v11259_v59 = vld [vmem:[%s12351_s5 + $0x3] ss:$0 sm:$0xff] }
 0xdfb   :  { %9481 = vmatprep.mubr.msk.f32.mxu0 %vm10655_vm4, %v10653_v21  ;;  %v1847_v16 = vadd.f32 %v11259_v59, %v1846_v45 }
 0xe01   :  { %v2012_v48 = vpop.f32.mrb[26].mxu1 }
 0xe02   :  { %v9478_v51 = vpop.f32.mrb[27].mxu1 }
 0xec5   :  { %v1762_v54 = vpop.f32.mrb[14].mxu0 }
 0xec6   :  { %v11249_v55 = vadd.f32 %v1762_v54, %v11143_v15  ;;  %v9445_v57 = vpop.f32.mrb[15].mxu0  ;;  %v11265_v15 = vld [vmem:[%s12351_s5 + $0xb] ss:$0 sm:$0xff] }
 0xec7   :  { %v2013_v22 = vadd.f32 %v11265_v15, %v2012_v48  ;;  %v270_v48 = vsel %vm183_vm3, %v10814_v32, 0.0 }
 0xecd   :  { %v1929_v9 = vpop.f32.mrb[16].mxu0 }
 0xece   :  { %v1930_v10 = vadd.f32 %v11254_v2, %v1929_v9  ;;  %v9467_v13 = vpop.f32.mrb[17].mxu0 }
 0xed0   :  { %9480 = vmatpush3.xpose.msk.msra.mxu0 %vm560_vm5, %v1930_v10 }
 0xed1   :  { %9484 = vmatprep.subr.mxu0 %v10653_v21 }
 0xed3   :  { %9482 = vmatmul.mubr.msk.f32.vlgmr.msra.gmra.mrb[18].mxu0 %vm560_vm5, %v1847_v16 }
 0xed4   :  { %9485 = vmatpush3.msra.mxu0 %v2013_v22  ;;  %9486 = vmatprep.mubr.msk.f32.mxu0 %vm10655_vm4, %v10653_v21 }
 0xed5   :  { %10256 = vmatprep.subr.bf16.mxu0 %v10654_v44 }
 0xfa6   :  { %v2088_v23 = vpop.f32.mrb[18].mxu0 }
 0xfa7   :  { %v2092_v28 = vmul.f32 0.35355338, %v2088_v23  ;;  %v9483_v30 = vpop.f32.mrb[19].mxu0  ;;  %v11291_v23 = vld [vmem:[%s12352_s6 + $0x18] sm:$0xff] }
 0xfa8   :  { %9490 = vmatpush3.msra.mxu1 %v11291_v23 }
 0xfa9   :  { %v2093_v35 = vsel %vm560_vm5, %v2092_v28, -inf  ;;  %10262 = vmatprep.subr.bf16.mxu1 %v10654_v44 }
 0xfaa   :  { %2094 = vmax.xlane.f32.xlu1 %v2093_v35 }
0x1037   :  { %v2095_v37 = vpop.xlane.xlu1 %2094 }
0x1038   :  { %v2096_v38 = vsub.f32 %v2092_v28, %v2095_v37 }
0x103a   :  { %v2097_v40 = vmul.f32 1.442695, %v2096_v38 }
0x103c   :  { %10558 = vpow2.f32 %v2097_v40 }
0x1046   :  { %v10559_v45 = vpop.eup %10558 }
0x1047   :  { %v2099_v46 = vsel %vm560_vm5, %v10559_v45, 0.0 }
0x1048   :  { %2100 = vadd.xlane.f32.xlu1 %v2099_v46 }
0x104c   :  { %271 = vadd.xlane.f32.xlu1 %v270_v48 }
0x10d5   :  { %v2101_v51 = vpop.xlane.xlu1 %2100 }
0x10d6   :  { %10560 = vrcp.f32 %v2101_v51 }
0x10d9   :  { %v272_v54 = vpop.xlane.xlu1 %271 }
0x10da   :  { %v275_v57 = vmul.f32 0.03125, %v272_v54 }
0x10dc   :  { %v277_v9 = vsub.f32 %v10814_v32, %v275_v57 }
0x10de   :  { %v279_v10 = vmul.f32 %v277_v9, %v277_v9 }
0x10e0   :  { %v10561_v13 = vpop.eup %10560  ;;  %v283_v16 = vsel %vm183_vm3, %v279_v10, 0.0 }
0x10e1   :  { %v2103_v22 = vmul.f32 %v10561_v13, %v10559_v45  ;;  %284 = vadd.xlane.f32.xlu0 %v283_v16 }
0x10e3   :  { %9487 = vmatmul.mubr.msk.f32.vlgmr.msra.gmra.mrb[20].mxu0 %vm560_vm5, %v2103_v22 }
0x10e4   :  { %10258 = vmatpush3.bf16.msra.mxu0 %v10828_v43  ;;  %9502 = vmatprep.mubr.msk.f32.mxu0 %vm10655_vm4, %v10653_v21 }
0x10e5   :  { %10259 = vmatprep.subr.bf16.mxu0 %v10654_v44 }
0x10e8   :  { %10261 = vmatpush3.bf16.msra.mxu0 %v10839_v47 }
0x10e9   :  { %10268 = vmatprep.subr.bf16.mxu0 %v10654_v44 }
0x116e   :  { %v285_v28 = vpop.xlane.xlu0 %284 }
0x116f   :  { %v287_v43 = vmul.f32 0.03125, %v285_v28 }
0x1171   :  { %v289_v30 = vadd.f32 1e-05, %v287_v43 }
0x1173   :  { %10562 = vrsqrt.f32 %v289_v30 }
0x117d   :  { %v10563_v35 = vpop.eup %10562 }
0x117e   :  { %v293_v37 = vmul.f32 %v10563_v35, %v277_v9 }
0x1180   :  { %v301_v38 = vmul.f32 %v10850_v52, %v293_v37 }
0x1182   :  { %v11297_v47 = vadd.f32 %v10861_v56, %v301_v38 }
0x1184   :  { %9503 = vmatmul.mubr.msk.f32.vlgmr.msra.gmra.mrb[22].mxu0 %vm183_vm3, %v11297_v47 }
0x1185   :  { %10270 = vmatpush3.bf16.msra.mxu0 %v10890_v1  ;;  %9524 = vmatprep.mubr.msk.f32.mxu0 %vm10655_vm4, %v10653_v21 }
0x1186   :  { %10271 = vmatprep.subr.bf16.mxu0 %v10654_v44 }
0x1189   :  { %10273 = vmatpush3.bf16.msra.mxu0 %v10902_v4 }
0x118a   :  { %10274 = vmatprep.subr.bf16.mxu0 %v10654_v44 }
0x118c   :  { %9525 = vmatmul.mubr.msk.f32.vlgmr.msra.gmra.mrb[24].mxu0 %vm183_vm3, %v11297_v47 }
0x118d   :  { %10276 = vmatpush3.bf16.msra.mxu0 %v10931_v14  ;;  %9545 = vmatprep.mubr.msk.f32.mxu0 %vm10655_vm4, %v10653_v21 }
0x118e   :  { %10277 = vmatprep.subr.bf16.mxu0 %v10654_v44 }
0x1191   :  { %10279 = vmatpush3.bf16.msra.mxu0 %v10948_v19 }
0x1192   :  { %10286 = vmatprep.subr.bf16.mxu0 %v10654_v44 }
0x1194   :  { %9546 = vmatmul.mubr.msk.f32.vlgmr.msra.gmra.mrb[26].mxu0 %vm183_vm3, %v11297_v47 }
0x1195   :  { %10288 = vmatpush3.bf16.msra.mxu0 %v10961_v26  ;;  %9567 = vmatprep.mubr.msk.f32.mxu0 %vm10655_vm4, %v10653_v21 }
0x1196   :  { %10289 = vmatprep.subr.bf16.mxu0 %v10654_v44 }
0x1199   :  { %10291 = vmatpush3.bf16.msra.mxu0 %v10974_v29 }
0x119a   :  { %9580 = vmatprep.subr.mxu0 %v10653_v21 }
0x119c   :  { %9568 = vmatmul.mubr.msk.f32.vlgmr.msra.gmra.mrb[28].mxu0 %vm183_vm3, %v11297_v47 }
0x119d   :  { %9581 = vmatpush3.msra.mxu0 %v11043_v25  ;;  %9582 = vmatprep.mubr.msk.f32.mxu0 %vm10655_vm4, %v10653_v21 }
0x119e   :  { %10292 = vmatprep.subr.bf16.mxu0 %v10654_v44 }
0x11b6   :  { %v2173_v52 = vpop.f32.mrb[20].mxu0 }
0x11b7   :  { %v9488_v56 = vpop.f32.mrb[21].mxu0  ;;  %9492 = vmatmul.mubr.msk.f32.vlgmr.msra.gmra.mrb[28].mxu1 %vm560_vm5, %v2173_v52 }
0x11b8   :  { %10264 = vmatpush3.bf16.msra.mxu1 %v10864_v58  ;;  %9513 = vmatprep.mubr.msk.f32.mxu1 %vm10655_vm4, %v10653_v21 }
0x11b9   :  { %10265 = vmatprep.subr.bf16.mxu1 %v10654_v44 }
0x11bc   :  { %10267 = vmatpush3.bf16.msra.mxu1 %v10878_v62 }
0x11bd   :  { %9527 = vmatprep.subr.mxu1 %v10653_v21 }
0x11bf   :  { %9514 = vmatmul.mubr.msk.f32.vlgmr.msra.gmra.mrb[30].mxu1 %vm183_vm3, %v11297_v47 }
0x11c0   :  { %9529 = vmatprep.mubr.msk.f32.mxu1 %vm10655_vm4, %v10653_v21 }
0x1257   :  { %v2330_v1 = vpop.f32.mrb[22].mxu0 }
0x1258   :  { %v9504_v4 = vpop.f32.mrb[23].mxu0  ;;  %v2331_v54 = vadd.f32 %v10927_v11, %v2330_v1 }
0x125f   :  { %v2470_v14 = vpop.f32.mrb[24].mxu0 }
0x1260   :  { %v9526_v19 = vpop.f32.mrb[25].mxu0  ;;  %v2471_v57 = vadd.f32 %v10945_v18, %v2470_v14 }
0x1267   :  { %v2701_v58 = vpop.f32.mrb[26].mxu0 }
0x1268   :  { %v9547_v26 = vpop.f32.mrb[27].mxu0  ;;  %v2702_v56 = vadd.f32 %v11022_v3, %v2701_v58 }
0x126f   :  { %v2841_v29 = vpop.f32.mrb[28].mxu0 }
0x1270   :  { %v9569_v25 = vpop.f32.mrb[29].mxu0 }
0x128a   :  { %v2248_v40 = vpop.f32.mrb[28].mxu1 }
0x128b   :  { %v11341_v45 = vadd.f32 %v2248_v40, %v11249_v55  ;;  %v9493_v62 = vpop.f32.mrb[29].mxu1 }
0x1292   :  { %v2400_v46 = vpop.f32.mrb[30].mxu1 }
0x1293   :  { %v2401_v48 = vadd.f32 %v10916_v7, %v2400_v46  ;;  %v9515_v51 = vpop.f32.mrb[31].mxu1 }
0x1295   :  { %9528 = vmatpush3.xpose.msk.msra.mxu1 %vm560_vm5, %v2401_v48 }
0x1296   :  { %9532 = vmatprep.subr.mxu1 %v10653_v21 }
0x1298   :  { %9530 = vmatmul.mubr.msk.f32.vlgmr.msra.gmra.mrb[32].mxu1 %vm560_vm5, %v2331_v54 }
0x1299   :  { %9533 = vmatpush3.msra.mxu1 %v2471_v57  ;;  %9534 = vmatprep.mubr.msk.f32.mxu1 %vm10655_vm4, %v10653_v21 }
0x129a   :  { %10280 = vmatprep.subr.bf16.mxu1 %v10654_v44 }
0x136b   :  { %v2546_v55 = vpop.f32.mrb[32].mxu1 }
0x136c   :  { %v2550_v9 = vmul.f32 0.35355338, %v2546_v55  ;;  %v9531_v7 = vpop.f32.mrb[33].mxu1 }
0x136e   :  { %v2551_v10 = vsel %vm560_vm5, %v2550_v9, -inf }
0x136f   :  { %2552 = vmax.xlane.f32.xlu1 %v2551_v10 }
0x13fc   :  { %v2553_v13 = vpop.xlane.xlu1 %2552 }
0x13fd   :  { %v2554_v11 = vsub.f32 %v2550_v9, %v2553_v13 }
0x13ff   :  { %v2555_v16 = vmul.f32 1.442695, %v2554_v11 }
0x1401   :  { %10564 = vpow2.f32 %v2555_v16 }
0x140b   :  { %v10565_v22 = vpop.eup %10564 }
0x140c   :  { %v2557_v18 = vsel %vm560_vm5, %v10565_v22, 0.0 }
0x140d   :  { %2558 = vadd.xlane.f32.xlu0 %v2557_v18 }
0x149a   :  { %v2559_v28 = vpop.xlane.xlu0 %2558 }
0x149b   :  { %10566 = vrcp.f32 %v2559_v28 }
0x14a5   :  { %v10567_v43 = vpop.eup %10566 }
0x14a6   :  { %v2561_v30 = vmul.f32 %v10567_v43, %v10565_v22 }
0x14a8   :  { %9535 = vmatmul.mubr.msk.f32.vlgmr.msra.gmra.mrb[34].mxu1 %vm560_vm5, %v2561_v30 }
0x14a9   :  { %10282 = vmatpush3.bf16.msra.mxu1 %v10993_v53  ;;  %9556 = vmatprep.mubr.msk.f32.mxu1 %vm10655_vm4, %v10653_v21 }
0x14aa   :  { %10283 = vmatprep.subr.bf16.mxu1 %v10654_v44 }
0x14ad   :  { %10285 = vmatpush3.bf16.msra.mxu1 %v11003_v60  ;;  %v2842_v60 = vadd.f32 %v11028_v8, %v2841_v29 }
0x14ae   :  { %9570 = vmatprep.subr.mxu1 %v10653_v21 }
0x14b0   :  { %9557 = vmatmul.mubr.msk.f32.vlgmr.msra.gmra.mrb[36].mxu1 %vm183_vm3, %v11297_v47 }
0x14b1   :  { %9572 = vmatprep.mubr.msk.f32.mxu1 %vm10655_vm4, %v10653_v21 }
0x157b   :  { %v2631_v35 = vpop.f32.mrb[34].mxu1 }
0x157c   :  { %v9536_v37 = vpop.f32.mrb[35].mxu1 }
0x1583   :  { %v2771_v38 = vpop.f32.mrb[36].mxu1 }
0x1584   :  { %v2772_v53 = vadd.f32 %v11017_v0, %v2771_v38  ;;  %v9558_v52 = vpop.f32.mrb[37].mxu1 }
0x1586   :  { %9571 = vmatpush3.xpose.msk.msra.mxu1 %vm560_vm5, %v2772_v53 }
0x1587   :  { %9575 = vmatprep.subr.mxu1 %v10653_v21 }
0x1589   :  { %9573 = vmatmul.mubr.msk.f32.vlgmr.msra.gmra.mrb[38].mxu1 %vm560_vm5, %v2702_v56  ;;  %v8667_v56 = vld [vmem:[%s12353_s7] ss:$0 sm:$0xff] }
0x158a   :  { %9576 = vmatpush3.msra.mxu1 %v2842_v60  ;;  %9577 = vmatprep.mubr.msk.f32.mxu1 %vm10655_vm4, %v10653_v21 }
0x158b   :  { %9585 = vmatprep.subr.mxu1 %v10653_v21 }
0x165c   :  { %v2917_v1 = vpop.f32.mrb[38].mxu1 }
0x165d   :  { %v2921_v4 = vmul.f32 0.35355338, %v2917_v1  ;;  %v9574_v0 = vpop.f32.mrb[39].mxu1 }
0x165f   :  { %v2922_v14 = vsel %vm560_vm5, %v2921_v4, -inf }
0x1660   :  { %2923 = vmax.xlane.f32.xlu1 %v2922_v14 }
0x16ed   :  { %v2924_v19 = vpop.xlane.xlu1 %2923 }
0x16ee   :  { %v2925_v3 = vsub.f32 %v2921_v4, %v2924_v19 }
0x16f0   :  { %v2926_v58 = vmul.f32 1.442695, %v2925_v3 }
0x16f2   :  { %10568 = vpow2.f32 %v2926_v58 }
0x16fc   :  { %v10569_v26 = vpop.eup %10568 }
0x16fd   :  { %v2928_v8 = vsel %vm560_vm5, %v10569_v26, 0.0 }
0x16fe   :  { %2929 = vadd.xlane.f32.xlu0 %v2928_v8 }
0x178b   :  { %v2930_v29 = vpop.xlane.xlu0 %2929 }
0x178c   :  { %10570 = vrcp.f32 %v2930_v29 }
0x1796   :  { %v10571_v25 = vpop.eup %10570 }
0x1797   :  { %v2932_v40 = vmul.f32 %v10571_v25, %v10569_v26 }
0x1799   :  { %9578 = vmatmul.mubr.msk.f32.vlgmr.msra.gmra.mrb[40].mxu1 %vm560_vm5, %v2932_v40 }
0x179a   :  { %9586 = vmatpush3.msra.mxu1 %v11050_v31  ;;  %9587 = vmatprep.mubr.msk.f32.mxu1 %vm10655_vm4, %v10653_v21 }
0x179b   :  { %10298 = vmatprep.subr.bf16.mxu1 %v10654_v44 }
0x179d   :  { %9588 = vmatmul.mubr.msk.f32.vlgmr.msra.gmra.mrb[42].mxu1 %vm560_vm5, %v2631_v35 }
0x179e   :  { %10300 = vmatpush3.bf16.msra.mxu1 %v11062_v36  ;;  %9609 = vmatprep.mubr.msk.f32.mxu1 %vm10655_vm4, %v10653_v21 }
0x179f   :  { %10301 = vmatprep.subr.bf16.mxu1 %v10654_v44 }
0x17a2   :  { %10303 = vmatpush3.bf16.msra.mxu1 %v11073_v39 }
0x17a3   :  { %9623 = vmatprep.subr.mxu1 %v10653_v21 }
0x17a5   :  { %9610 = vmatmul.mubr.msk.f32.vlgmr.msra.gmra.mrb[44].mxu1 %vm183_vm3, %v11297_v47 }
0x17a6   :  { %9625 = vmatprep.mubr.msk.f32.mxu1 %vm10655_vm4, %v10653_v21 }
0x186c   :  { %v3002_v31 = vpop.f32.mrb[40].mxu1 }
0x186d   :  { %v9579_v62 = vpop.f32.mrb[41].mxu1  ;;  %9583 = vmatmul.mubr.msk.f32.vlgmr.msra.gmra.mrb[30].mxu0 %vm560_vm5, %v3002_v31 }
0x186e   :  { %10294 = vmatpush3.bf16.msra.mxu0 %v11090_v42  ;;  %9598 = vmatprep.mubr.msk.f32.mxu0 %vm10655_vm4, %v10653_v21 }
0x186f   :  { %10295 = vmatprep.subr.bf16.mxu0 %v10654_v44 }
0x1870   :  { %v3148_v36 = vpop.f32.mrb[42].mxu1 }
0x1871   :  { %v9589_v39 = vpop.f32.mrb[43].mxu1 }
0x1872   :  { %10297 = vmatpush3.bf16.msra.mxu0 %v11100_v50 }
0x1873   :  { %10304 = vmatprep.subr.bf16.mxu0 %v10654_v44 }
0x1875   :  { %9599 = vmatmul.mubr.msk.f32.vlgmr.msra.gmra.mrb[32].mxu0 %vm183_vm3, %v11297_v47 }
0x1876   :  { %10306 = vmatpush3.bf16.msra.mxu0 %v11112_v61  ;;  %9620 = vmatprep.mubr.msk.f32.mxu0 %vm10655_vm4, %v10653_v21 }
0x1877   :  { %10307 = vmatprep.subr.bf16.mxu0 %v10654_v44 }
0x1878   :  { %v3288_v42 = vpop.f32.mrb[44].mxu1 }
0x1879   :  { %v3289_v46 = vadd.f32 %v11127_v5, %v3288_v42  ;;  %v9611_v48 = vpop.f32.mrb[45].mxu1  ;;  %v8698_v42 = vld [vmem:[%s12354_s8 + $0x1] ss:$0 sm:$0xff] }
0x187a   :  { %10309 = vmatpush3.bf16.msra.mxu0 %v11129_v6 }
0x187b   :  { %9624 = vmatpush3.xpose.msk.msra.mxu1 %vm560_vm5, %v3289_v46  ;;  %9633 = vmatprep.subr.mxu0 %v10653_v21 }
0x187c   :  { %9628 = vmatprep.subr.mxu1 %v10653_v21 }
0x187d   :  { %9621 = vmatmul.mubr.msk.f32.vlgmr.msra.gmra.mrb[34].mxu0 %vm183_vm3, %v11297_v47 }
0x187e   :  { %9634 = vmatpush3.msra.mxu0 %v11166_v49  ;;  %9635 = vmatprep.mubr.msk.f32.mxu0 %vm10655_vm4, %v10653_v21 }
0x187f   :  { %10316 = vmatprep.subr.bf16.mxu0 %v10654_v44 }
0x1940   :  { %v3075_v50 = vpop.f32.mrb[30].mxu0 }
0x1941   :  { %v3149_v61 = vadd.f32 %v3148_v36, %v3075_v50  ;;  %v9584_v5 = vpop.f32.mrb[31].mxu0 }
0x1948   :  { %v3218_v6 = vpop.f32.mrb[32].mxu0 }
0x1949   :  { %v3219_v51 = vadd.f32 %v11148_v17, %v3218_v6  ;;  %v9600_v54 = vpop.f32.mrb[33].mxu0 }
0x194b   :  { %9626 = vmatmul.mubr.msk.f32.vlgmr.msra.gmra.mrb[46].mxu1 %vm560_vm5, %v3219_v51 }
0x194c   :  { %9630 = vmatprep.mubr.msk.f32.mxu1 %vm10655_vm4, %v10653_v21 }
0x1950   :  { %v3358_v57 = vpop.f32.mrb[34].mxu0 }
0x1951   :  { %v3359_v49 = vadd.f32 %v11157_v24, %v3358_v57  ;;  %v9622_v55 = vpop.f32.mrb[35].mxu0 }
0x1953   :  { %9629 = vmatpush3.msra.mxu1 %v3359_v49 }
0x1954   :  { %10310 = vmatprep.subr.bf16.mxu1 %v10654_v44 }
0x1a1e   :  { %v3434_v9 = vpop.f32.mrb[46].mxu1 }
0x1a1f   :  { %v3438_v7 = vmul.f32 0.35355338, %v3434_v9  ;;  %v9627_v10 = vpop.f32.mrb[47].mxu1 }
0x1a21   :  { %v3439_v13 = vsel %vm560_vm5, %v3438_v7, -inf }
0x1a22   :  { %3440 = vmax.xlane.f32.xlu1 %v3439_v13 }
0x1aaf   :  { %v3441_v17 = vpop.xlane.xlu1 %3440 }
0x1ab0   :  { %v3442_v11 = vsub.f32 %v3438_v7, %v3441_v17 }
0x1ab2   :  { %v3443_v16 = vmul.f32 1.442695, %v3442_v11 }
0x1ab4   :  { %10572 = vpow2.f32 %v3443_v16 }
0x1abe   :  { %v10573_v22 = vpop.eup %10572 }
0x1abf   :  { %v3445_v18 = vsel %vm560_vm5, %v10573_v22, 0.0 }
0x1ac0   :  { %3446 = vadd.xlane.f32.xlu0 %v3445_v18  ;;  %v4091_v18 = vld [vmem:[%s12356_s10] sm:$0xff] }
0x1b4d   :  { %v3447_v28 = vpop.xlane.xlu0 %3446 }
0x1b4e   :  { %10574 = vrcp.f32 %v3447_v28 }
0x1b58   :  { %v10575_v24 = vpop.eup %10574 }
0x1b59   :  { %v3449_v43 = vmul.f32 %v10575_v24, %v10573_v22  ;;  %v4093_v24 = vld [vmem:[%s12356_s10 + $0x10] sm:$0xff] }
0x1b5b   :  { %9631 = vmatmul.mubr.msk.f32.vlgmr.msra.gmra.mrb[48].mxu1 %vm560_vm5, %v3449_v43  ;;  %v4094_v43 = vld [vmem:[%s12356_s10 + $0x18] sm:$0xff] }
0x1b5c   :  { %10312 = vmatpush3.bf16.msra.mxu1 %v11176_v63  ;;  %9646 = vmatprep.mubr.msk.f32.mxu1 %vm10655_vm4, %v10653_v21 }
0x1b5d   :  { %10313 = vmatprep.subr.bf16.mxu1 %v10654_v44 }
0x1b60   :  { %10315 = vmatpush3.bf16.msra.mxu1 %v11186_v12 }
0x1b61   :  { %10322 = vmatprep.subr.bf16.mxu1 %v10654_v44 }
0x1b63   :  { %9647 = vmatmul.mubr.msk.f32.vlgmr.msra.gmra.mrb[50].mxu1 %vm183_vm3, %v11297_v47 }
0x1b64   :  { %10324 = vmatpush3.bf16.msra.mxu1 %v11198_v20  ;;  %9668 = vmatprep.mubr.msk.f32.mxu1 %vm10655_vm4, %v10653_v21 }
0x1b65   :  { %10325 = vmatprep.subr.bf16.mxu1 %v10654_v44 }
0x1b68   :  { %10327 = vmatpush3.bf16.msra.mxu1 %v11210_v27 }
0x1b69   :  { %9681 = vmatprep.subr.mxu1 %v10653_v21 }
0x1b6b   :  { %9669 = vmatmul.mubr.msk.f32.vlgmr.msra.gmra.mrb[52].mxu1 %vm183_vm3, %v11297_v47 }
0x1b6c   :  { %9682 = vmatpush3.msra.mxu1 %v11291_v23  ;;  %9683 = vmatprep.mubr.msk.f32.mxu1 %vm10655_vm4, %v10653_v21 }
0x1c2e   :  { %v3519_v63 = vpop.f32.mrb[48].mxu1 }
0x1c2f   :  { %v9632_v12 = vpop.f32.mrb[49].mxu1  ;;  %9636 = vmatmul.mubr.msk.f32.vlgmr.msra.gmra.mrb[36].mxu0 %vm560_vm5, %v3519_v63  ;;  %v10332_v63 = vpack.c.bf16 %v4094_v43, %v4093_v24  ;;  %v11606_v24 = vld [vmem:[%s12355_s9 + $0x2] ss:$0 sm:$0xff] }
0x1c30   :  { %10318 = vmatpush3.bf16.msra.mxu0 %v11227_v33  ;;  %9657 = vmatprep.mubr.msk.f32.mxu0 %vm10655_vm4, %v10653_v21  ;;  %v4185_v12 = vld [vmem:[%s12358_s12] sm:$0xff] }
0x1c31   :  { %10319 = vmatprep.subr.bf16.mxu0 %v10654_v44 }
0x1c34   :  { %10321 = vmatpush3.bf16.msra.mxu0 %v11237_v41 }
0x1c35   :  { %9671 = vmatprep.subr.mxu0 %v10653_v21 }
0x1c36   :  { %v3663_v20 = vpop.f32.mrb[50].mxu1 }
0x1c37   :  { %v9648_v27 = vpop.f32.mrb[51].mxu1  ;;  %9658 = vmatmul.mubr.msk.f32.vlgmr.msra.gmra.mrb[38].mxu0 %vm183_vm3, %v11297_v47  ;;  %v3664_v41 = vadd.f32 %v11259_v59, %v3663_v20  ;;  %v4186_v20 = vld [vmem:[%s12358_s12 + $0x8] sm:$0xff] }
0x1c38   :  { %9673 = vmatprep.mubr.msk.f32.mxu0 %vm10655_vm4, %v10653_v21  ;;  %v4187_v27 = vld [vmem:[%s12358_s12 + $0x10] sm:$0xff] }
0x1c3e   :  { %v3803_v23 = vpop.f32.mrb[52].mxu1 }
0x1c3f   :  { %v9670_v30 = vpop.f32.mrb[53].mxu1  ;;  %v3804_v47 = vadd.f32 %v11265_v15, %v3803_v23  ;;  %v10336_v23 = vpack.c.bf16 %v4186_v20, %v4185_v12  ;;  %v8719_v20 = vld [vmem:[%s12381_s23 + $0x210] sm:$0xff] }
0x1c40   :  { %v4188_v30 = vld [vmem:[%s12358_s12 + $0x18] sm:$0xff] }
0x1c41   :  { %10337 = vmatprep.subr.bf16.mxu1 %v10336_v23 }
0x1d02   :  { %v3592_v33 = vpop.f32.mrb[36].mxu0 }
0x1d03   :  { %v3596_v35 = vadd.f32 %v3592_v33, %v3149_v61  ;;  %v9637_v37 = vpop.f32.mrb[37].mxu0  ;;  %v8699_v61 = vld [vmem:[%s12355_s9 + $0x1] ss:$0 sm:$0xff]  ;;  %v10340_v33 = vpack.c.bf16 %v4188_v30, %v4187_v27  ;;  %v8720_v27 = vld [vmem:[%s12381_s23 + $0x218] sm:$0xff]  ;;  %v11641_v30 = vld [vmem:[%s12351_s5 + $0x14] ss:$0 sm:$0xff] }
0x1d04   :  { %v4190_v37 = vld [vmem:[%s12358_s12 + $0x28] sm:$0xff] }
0x1d0a   :  { %v3733_v38 = vpop.f32.mrb[38].mxu0 }
0x1d0b   :  { %v3734_v53 = vadd.f32 %v11254_v2, %v3733_v38  ;;  %v9659_v52 = vpop.f32.mrb[39].mxu0  ;;  %v2260_v2 = vadd.f32 %v8667_v56, %v11341_v45 }
0x1d0d   :  { %9672 = vmatpush3.xpose.msk.msra.mxu0 %vm560_vm5, %v3734_v53  ;;  %v11468_v59 = vadd.f32 %v2260_v2, %v10816_v34 }
0x1d0e   :  { %9676 = vmatprep.subr.mxu0 %v10653_v21 }
0x1d0f   :  { %v4049_v0 = vsel %vm183_vm3, %v11468_v59, 0.0 }
0x1d10   :  { %9674 = vmatmul.mubr.msk.f32.vlgmr.msra.gmra.mrb[40].mxu0 %vm560_vm5, %v3664_v41 }
0x1d11   :  { %9677 = vmatpush3.msra.mxu0 %v3804_v47  ;;  %9678 = vmatprep.mubr.msk.f32.mxu0 %vm10655_vm4, %v10653_v21 }
0x1de3   :  { %v3879_v60 = vpop.f32.mrb[40].mxu0 }
0x1de4   :  { %v3883_v1 = vmul.f32 0.35355338, %v3879_v60  ;;  %v9675_v4 = vpop.f32.mrb[41].mxu0 }
0x1de5   :  { %v4192_v4 = vld [vmem:[%s12358_s12 + $0x38] sm:$0xff] }
0x1de6   :  { %v3884_v15 = vsel %vm560_vm5, %v3883_v1, -inf }
0x1de7   :  { %3885 = vmax.xlane.f32.xlu1 %v3884_v15 }
0x1deb   :  { %4050 = vadd.xlane.f32.xlu1 %v4049_v0  ;;  %v8700_v0 = vld [vmem:[%s12357_s11] ss:$0 sm:$0xff] }
0x1e74   :  { %v3886_v14 = vpop.xlane.xlu1 %3885 }
0x1e75   :  { %v3887_v19 = vsub.f32 %v3883_v1, %v3886_v14  ;;  %v4191_v1 = vld [vmem:[%s12358_s12 + $0x30] sm:$0xff] }
0x1e76   :  { %v10348_v15 = vpack.c.bf16 %v4192_v4, %v4191_v1 }
0x1e77   :  { %v3888_v3 = vmul.f32 1.442695, %v3887_v19 }
0x1e78   :  { %v4051_v58 = vpop.xlane.xlu1 %4050 }
0x1e79   :  { %10576 = vpow2.f32 %v3888_v3  ;;  %v4055_v26 = vmul.f32 0.03125, %v4051_v58 }
0x1e7b   :  { %v4057_v45 = vsub.f32 %v11468_v59, %v4055_v26 }
0x1e7d   :  { %v4059_v8 = vmul.f32 %v4057_v45, %v4057_v45 }
0x1e7f   :  { %v4061_v29 = vsel %vm183_vm3, %v4059_v8, 0.0  ;;  %v8703_v8 = vld [vmem:[%s12359_s13] ss:$0 sm:$0xff] }
0x1e80   :  { %4062 = vadd.xlane.f32.xlu1 %v4061_v29 }
0x1e83   :  { %v10577_v34 = vpop.eup %10576 }
0x1e84   :  { %v3890_v25 = vsel %vm560_vm5, %v10577_v34, 0.0 }
0x1e85   :  { %3891 = vadd.xlane.f32.xlu0 %v3890_v25 }
0x1f0d   :  { %v4063_v40 = vpop.xlane.xlu1 %4062 }
0x1f0e   :  { %v4067_v31 = vmul.f32 0.03125, %v4063_v40 }
0x1f10   :  { %v4069_v62 = vadd.f32 1e-05, %v4067_v31 }
0x1f12   :  { %10578 = vrsqrt.f32 %v4069_v62  ;;  %v3892_v36 = vpop.xlane.xlu0 %3891 }
0x1f13   :  { %10580 = vrcp.f32 %v3892_v36 }
0x1f1c   :  { %v10579_v39 = vpop.eup %10578 }
0x1f1d   :  { %v10581_v46 = vpop.eup %10580  ;;  %v4073_v48 = vmul.f32 %v10579_v39, %v4057_v45 }
0x1f1e   :  { %v3894_v50 = vmul.f32 %v10581_v46, %v10577_v34 }
0x1f1f   :  { %v4081_v5 = vmul.f32 %v8698_v42, %v4073_v48 }
0x1f20   :  { %9679 = vmatmul.mubr.msk.f32.vlgmr.msra.gmra.mrb[42].mxu0 %vm560_vm5, %v3894_v50  ;;  %v8710_v50 = vld [vmem:[%s12381_s23 + $0x180] sm:$0xff] }
0x1f21   :  { %v4089_v6 = vadd.f32 %v8699_v61, %v4081_v5  ;;  %v8724_v5 = vld [vmem:[%s12381_s23 + $0x280] sm:$0xff] }
0x1f23   :  { %9694 = vmatprep.mubr.msk.f32.mxu0 %vm183_vm3, %v4089_v6  ;;  %v8725_v6 = vld [vmem:[%s12381_s23 + $0x288] sm:$0xff] }
0x1ff3   :  { %v3964_v51 = vpop.f32.mrb[42].mxu0 }
0x1ff4   :  { %v9680_v54 = vpop.f32.mrb[43].mxu0  ;;  %9684 = vmatmul.mubr.msk.f32.vlgmr.msra.gmra.mrb[54].mxu1 %vm560_vm5, %v3964_v51  ;;  %v11566_v51 = vpack.c.bf16 %v8725_v6, %v8724_v5 }
0x1ff5   :  { %10339 = vmatpush3.bf16.msra.mxu1 %v10336_v23  ;;  %v8712_v54 = vld [vmem:[%s12381_s23 + $0x190] sm:$0xff]  ;;  %v11625_v23 = vpack.c.bf16 %v8720_v27, %v8719_v20 }
0x1ff6   :  { %10341 = vmatprep.subr.bf16.mxu1 %v10340_v33  ;;  %v11742_v20 = vld [vmem:[%s12351_s5 + $0x11] ss:$0 sm:$0xff] }
0x1ff9   :  { %10343 = vmatpush3.bf16.msra.mxu1 %v10340_v33 }
0x20c7   :  { %v4037_v57 = vpop.f32.mrb[54].mxu1 }
0x20c8   :  { %v4041_v49 = vadd.f32 %v4037_v57, %v3596_v35  ;;  %v9685_v55 = vpop.f32.mrb[55].mxu1  ;;  %v4189_v35 = vld [vmem:[%s12358_s12 + $0x20] sm:$0xff]  ;;  %v8713_v57 = vld [vmem:[%s12381_s23 + $0x198] sm:$0xff] }
0x20c9   :  { %v10344_v38 = vpack.c.bf16 %v4190_v37, %v4189_v35  ;;  %v8726_v55 = vld [vmem:[%s12381_s23 + $0x290] sm:$0xff] }
0x20ca   :  { %v4042_v9 = vadd.f32 %v8667_v56, %v4041_v49  ;;  %v11577_v49 = vpack.c.bf16 %v8713_v57, %v8712_v54 }
0x20cb   :  { %10345 = vmatprep.subr.bf16.mxu1 %v10344_v38 }
0x20cc   :  { %v11486_v7 = vadd.f32 %v4042_v9, %v10814_v32  ;;  %v4092_v32 = vld [vmem:[%s12356_s10 + $0x8] sm:$0xff]  ;;  %10347 = vmatpush3.bf16.msra.mxu1 %v10344_v38  ;;  %v8727_v9 = vld [vmem:[%s12381_s23 + $0x298] sm:$0xff] }
0x20cd   :  { %v10328_v28 = vpack.c.bf16 %v4092_v32, %v4091_v18  ;;  %10349 = vmatprep.subr.bf16.mxu1 %v10348_v15  ;;  %v8717_v32 = vld [vmem:[%s12381_s23 + $0x200] sm:$0xff] }
0x20ce   :  { %v4052_v10 = vsel %vm183_vm3, %v11486_v7, 0.0 }
0x20cf   :  { %4053 = vadd.xlane.f32.xlu0 %v4052_v10  ;;  %10329 = vmatprep.subr.bf16.mxu0 %v10328_v28  ;;  %v11586_v10 = vpack.c.bf16 %v8727_v9, %v8726_v55  ;;  %v8742_v55 = vld [vmem:[%s12381_s23 + $0x220] sm:$0xff]  ;;  %v8743_v9 = vld [vmem:[%s12381_s23 + $0x228] sm:$0xff] }
0x20d0   :  { %10331 = vmatpush3.bf16.msra.mxu0 %v10328_v28  ;;  %10351 = vmatpush3.bf16.msra.mxu1 %v10348_v15  ;;  %v8718_v28 = vld [vmem:[%s12381_s23 + $0x208] sm:$0xff] }
0x20d1   :  { %10333 = vmatprep.subr.bf16.mxu0 %v10332_v63  ;;  %10364 = vmatprep.subr.bf16.mxu1 %v10654_v44 }
0x20d4   :  { %10335 = vmatpush3.bf16.msra.mxu0 %v10332_v63  ;;  %v11609_v63 = vpack.c.bf16 %v8718_v28, %v8717_v32 }
0x20d5   :  { %10352 = vmatprep.subr.bf16.mxu0 %v10654_v44 }
0x215c   :  { %v4054_v13 = vpop.xlane.xlu0 %4053 }
0x215d   :  { %v4056_v17 = vmul.f32 0.03125, %v4054_v13 }
0x215f   :  { %v4058_v11 = vsub.f32 %v11486_v7, %v4056_v17 }
0x2161   :  { %v4060_v16 = vmul.f32 %v4058_v11, %v4058_v11 }
0x2163   :  { %v4064_v22 = vsel %vm183_vm3, %v4060_v16, 0.0 }
0x2164   :  { %4065 = vadd.xlane.f32.xlu0 %v4064_v22  ;;  %v11595_v22 = vld [vmem:[%s12354_s8 + $0x2] ss:$0 sm:$0xff] }
0x21f1   :  { %v4066_v53 = vpop.xlane.xlu0 %4065 }
0x21f2   :  { %v4068_v52 = vmul.f32 0.03125, %v4066_v53 }
0x21f4   :  { %v4070_v41 = vadd.f32 1e-05, %v4068_v52  ;;  %v11648_v52 = vld [vmem:[%s12351_s5 + $0x10] ss:$0 sm:$0xff] }
0x21f6   :  { %10582 = vrsqrt.f32 %v4070_v41 }
0x2200   :  { %v10583_v47 = vpop.eup %10582 }
0x2201   :  { %v4074_v56 = vmul.f32 %v10583_v47, %v4058_v11  ;;  %v8735_v47 = vld [vmem:[%s12381_s23 + $0x1a0] sm:$0xff] }
0x2203   :  { %v4082_v2 = vmul.f32 %v8698_v42, %v4074_v56  ;;  %v8736_v56 = vld [vmem:[%s12381_s23 + $0x1a8] sm:$0xff] }
0x2204   :  { %v11663_v4 = vpack.c.bf16 %v8736_v56, %v8735_v47 }
0x2205   :  { %v4090_v60 = vadd.f32 %v8699_v61, %v4082_v2  ;;  %v11659_v2 = vld [vmem:[%s12351_s5 + $0xc] ss:$0 sm:$0xff] }
0x2207   :  { %9695 = vmatmul.mubr.msk.f32.vlgmr.msra.gmra.mrb[44].mxu0 %vm183_vm3, %v4090_v60 }
0x2208   :  { %9724 = vmatprep.mubr.msk.f32.mxu0 %vm10655_vm4, %v10653_v21 }
0x22da   :  { %v9696_v14 = vpop.f32.mrb[44].mxu0 }
0x22db   :  { %v4180_v19 = vadd.f32 %v9696_v14, %v8700_v0  ;;  %v4174_v3 = vpop.f32.mrb[45].mxu0  ;;  %v8738_v14 = vld [vmem:[%s12381_s23 + $0x1b8] sm:$0xff] }
0x22dc   :  { %v4175_v58 = vadd.f32 %v8700_v0, %v4174_v3  ;;  %v8737_v0 = vld [vmem:[%s12381_s23 + $0x1b0] sm:$0xff]  ;;  %v8749_v3 = vld [vmem:[%s12381_s23 + $0x2a0] sm:$0xff] }
0x22dd   :  { %v4184_v45 = vmax.f32 %v4180_v19, 0.0  ;;  %v11675_v19 = vpack.c.bf16 %v8738_v14, %v8737_v0 }
0x22de   :  { %v4183_v26 = vmax.f32 %v4175_v58, 0.0  ;;  %v8750_v58 = vld [vmem:[%s12381_s23 + $0x2a8] sm:$0xff] }
0x22e0   :  { %9713 = vmatprep.mubr.msk.f32.mxu1 %vm90_vm0, %v4183_v26  ;;  %v11687_v26 = vpack.c.bf16 %v8750_v58, %v8749_v3 }
0x22e1   :  { %9714 = vmatmul.mubr.msk.f32.vlgmr.msra.gmra.mrb[56].mxu1 %vm90_vm0, %v4184_v45  ;;  %v8751_v45 = vld [vmem:[%s12381_s23 + $0x2b0] sm:$0xff] }
0x22e2   :  { %9746 = vmatprep.mubr.msk.f32.mxu1 %vm10655_vm4, %v10653_v21  ;;  %10366 = vmatpush3.bf16.msra.mxu1 %v11566_v51 }
0x22e3   :  { %10367 = vmatprep.subr.bf16.mxu1 %v10654_v44 }
0x22e6   :  { %10369 = vmatpush3.bf16.msra.mxu1 %v11586_v10 }
0x22e7   :  { %9754 = vmatprep.subr.mxu1 %v10653_v21 }
0x23b4   :  { %v9715_v29 = vpop.f32.mrb[56].mxu1 }
0x23b5   :  { %v11543_v34 = vadd.f32 %v9715_v29, %v8703_v8  ;;  %v4272_v25 = vpop.f32.mrb[57].mxu1 }
0x23b6   :  { %v4273_v40 = vadd.f32 %v8703_v8, %v4272_v25  ;;  %v8752_v8 = vld [vmem:[%s12381_s23 + $0x2b8] sm:$0xff] }
0x23b7   :  { %v11699_v29 = vpack.c.bf16 %v8752_v8, %v8751_v45  ;;  %v11768_v45 = vld [vmem:[%s12352_s6 + $0x28] sm:$0xff] }
0x23b8   :  { %v11546_v31 = vadd.f32 %v4273_v40, %v11468_v59  ;;  %v8711_v59 = vld [vmem:[%s12381_s23 + $0x188] sm:$0xff] }
0x23b9   :  { %v11558_v61 = vpack.c.bf16 %v8711_v59, %v8710_v50 }
0x23ba   :  { %v4287_v62 = vsel %vm183_vm3, %v11546_v31, 0.0 }
0x23bb   :  { %4288 = vadd.xlane.f32.xlu1 %v4287_v62  ;;  %10354 = vmatpush3.bf16.msra.mxu0 %v11558_v61 }
0x23bc   :  { %10355 = vmatprep.subr.bf16.mxu0 %v10654_v44 }
0x23bf   :  { %10357 = vmatpush3.bf16.msra.mxu0 %v11577_v49 }
0x23c0   :  { %10358 = vmatprep.subr.bf16.mxu0 %v10654_v44 }
0x2448   :  { %v4289_v36 = vpop.xlane.xlu1 %4288 }
0x2449   :  { %v4293_v39 = vmul.f32 0.03125, %v4289_v36 }
0x244b   :  { %v4295_v42 = vsub.f32 %v11546_v31, %v4293_v39 }
0x244d   :  { %v4297_v46 = vmul.f32 %v4295_v42, %v4295_v42 }
0x244f   :  { %v4299_v48 = vsel %vm183_vm3, %v4297_v46, 0.0 }
0x2450   :  { %4300 = vadd.xlane.f32.xlu0 %v4299_v48 }
0x24dd   :  { %v4301_v13 = vpop.xlane.xlu0 %4300 }
0x24de   :  { %v4305_v17 = vmul.f32 0.03125, %v4301_v13 }
0x24e0   :  { %v4307_v11 = vadd.f32 1e-05, %v4305_v17  ;;  %v11718_v17 = vpack.c.bf16 %v8743_v9, %v8742_v55 }
0x24e2   :  { %10584 = vrsqrt.f32 %v4307_v11 }
0x24ec   :  { %v10585_v16 = vpop.eup %10584 }
0x24ed   :  { %v4311_v18 = vmul.f32 %v10585_v16, %v4295_v42  ;;  %v8744_v16 = vld [vmem:[%s12381_s23 + $0x230] sm:$0xff] }
0x24ef   :  { %v4319_v43 = vmul.f32 %v11595_v22, %v4311_v18  ;;  %v8745_v18 = vld [vmem:[%s12381_s23 + $0x238] sm:$0xff] }
0x24f0   :  { %v11728_v32 = vpack.c.bf16 %v8745_v18, %v8744_v16  ;;  %v8777_v16 = vld [vmem:[%s12381_s23 + $0x2c8] sm:$0xff] }
0x24f1   :  { %v11612_v12 = vadd.f32 %v11606_v24, %v4319_v43 }
0x24f3   :  { %9725 = vmatmul.mubr.msk.f32.vlgmr.msra.gmra.mrb[46].mxu0 %vm183_vm3, %v11612_v12  ;;  %9747 = vmatmul.mubr.msk.f32.vlgmr.msra.gmra.mrb[58].mxu1 %vm183_vm3, %v11612_v12 }
0x24f4   :  { %10360 = vmatpush3.bf16.msra.mxu0 %v11609_v63  ;;  %9735 = vmatprep.mubr.msk.f32.mxu0 %vm10655_vm4, %v10653_v21 }
0x24f5   :  { %10361 = vmatprep.subr.bf16.mxu0 %v10654_v44  ;;  %9756 = vmatprep.mubr.msk.f32.mxu1 %vm10655_vm4, %v10653_v21 }
0x24f8   :  { %10363 = vmatpush3.bf16.msra.mxu0 %v11625_v23 }
0x24f9   :  { %9749 = vmatprep.subr.mxu0 %v10653_v21 }
0x24fb   :  { %9736 = vmatmul.mubr.msk.f32.vlgmr.msra.gmra.mrb[48].mxu0 %vm183_vm3, %v11612_v12 }
0x24fc   :  { %9751 = vmatprep.mubr.msk.f32.mxu0 %vm10655_vm4, %v10653_v21 }
0x25c6   :  { %v4411_v33 = vpop.f32.mrb[46].mxu0  ;;  %v4577_v35 = vpop.f32.mrb[58].mxu1 }
0x25c7   :  { %v4578_v37 = vadd.f32 %v11641_v30, %v4577_v35  ;;  %v9726_v38 = vpop.f32.mrb[47].mxu0  ;;  %v9748_v53 = vpop.f32.mrb[59].mxu1  ;;  %v4412_v15 = vadd.f32 %v11659_v2, %v4411_v33  ;;  %v11747_v33 = vld [vmem:[%s12351_s5 + $0xd] ss:$0 sm:$0xff] }
0x25c8   :  { %v11753_v38 = vld [vmem:[%s12351_s5 + $0x15] ss:$0 sm:$0xff] }
0x25c9   :  { %9755 = vmatpush3.msra.mxu1 %v4578_v37 }
0x25ca   :  { %10376 = vmatprep.subr.bf16.mxu1 %v10654_v44 }
0x25ce   :  { %v4494_v41 = vpop.f32.mrb[48].mxu0 }
0x25cf   :  { %v4495_v60 = vadd.f32 %v11648_v52, %v4494_v41  ;;  %v9737_v1 = vpop.f32.mrb[49].mxu0 }
0x25d1   :  { %9750 = vmatpush3.xpose.msk.msra.mxu0 %vm560_vm5, %v4495_v60 }
0x25d2   :  { %10370 = vmatprep.subr.bf16.mxu0 %v10654_v44 }
0x25d4   :  { %9752 = vmatmul.mubr.msk.f32.vlgmr.msra.gmra.mrb[50].mxu0 %vm560_vm5, %v4412_v15 }
0x25d5   :  { %10372 = vmatpush3.bf16.msra.mxu0 %v11663_v4  ;;  %9767 = vmatprep.mubr.msk.f32.mxu0 %vm10655_vm4, %v10653_v21 }
0x25d6   :  { %10373 = vmatprep.subr.bf16.mxu0 %v10654_v44 }
0x25d9   :  { %10375 = vmatpush3.bf16.msra.mxu0 %v11675_v19 }
0x25da   :  { %10382 = vmatprep.subr.bf16.mxu0 %v10654_v44 }
0x25dc   :  { %9768 = vmatmul.mubr.msk.f32.vlgmr.msra.gmra.mrb[52].mxu0 %vm183_vm3, %v11612_v12 }
0x25dd   :  { %10384 = vmatpush3.bf16.msra.mxu0 %v11687_v26  ;;  %9789 = vmatprep.mubr.msk.f32.mxu0 %vm10655_vm4, %v10653_v21 }
0x25de   :  { %10385 = vmatprep.subr.bf16.mxu0 %v10654_v44 }
0x25e1   :  { %10387 = vmatpush3.bf16.msra.mxu0 %v11699_v29 }
0x25e2   :  { %9802 = vmatprep.subr.mxu0 %v10653_v21 }
0x25e4   :  { %9790 = vmatmul.mubr.msk.f32.vlgmr.msra.gmra.mrb[54].mxu0 %vm183_vm3, %v11612_v12 }
0x25e5   :  { %9804 = vmatprep.mubr.msk.f32.mxu0 %vm10655_vm4, %v10653_v21  ;;  %9803 = vmatpush3.msra.mxu0 %v11768_v45 }
0x25e6   :  { %10388 = vmatprep.subr.bf16.mxu0 %v10654_v44 }
0x26a7   :  { %v4653_v25 = vpop.f32.mrb[50].mxu0 }
0x26a8   :  { %v4657_v40 = vmul.f32 0.35355338, %v4653_v25  ;;  %v9753_v62 = vpop.f32.mrb[51].mxu0 }
0x26a9   :  { %v11775_v62 = vld [vmem:[%s12352_s6 + $0x20] sm:$0xff] }
0x26aa   :  { %v4658_v36 = vsel %vm560_vm5, %v4657_v40, -inf }
0x26ab   :  { %4659 = vmax.xlane.f32.xlu1 %v4658_v36  ;;  %v8769_v36 = vld [vmem:[%s12381_s23 + $0x240] sm:$0xff] }
0x26af   :  { %v4823_v39 = vpop.f32.mrb[52].mxu0 }
0x26b0   :  { %v9769_v42 = vpop.f32.mrb[53].mxu0  ;;  %v4824_v53 = vadd.f32 %v11747_v33, %v4823_v39  ;;  %v8770_v39 = vld [vmem:[%s12381_s23 + $0x248] sm:$0xff] }
0x26b1   :  { %v11787_v42 = vpack.c.bf16 %v8770_v39, %v8769_v36 }
0x26b7   :  { %v4989_v46 = vpop.f32.mrb[54].mxu0 }
0x26b8   :  { %v9791_v48 = vpop.f32.mrb[55].mxu0  ;;  %v4990_v41 = vadd.f32 %v11753_v38, %v4989_v46  ;;  %v8771_v46 = vld [vmem:[%s12381_s23 + $0x250] sm:$0xff] }
0x26b9   :  { %v8772_v48 = vld [vmem:[%s12381_s23 + $0x258] sm:$0xff] }
0x2738   :  { %v4660_v50 = vpop.xlane.xlu1 %4659 }
0x2739   :  { %v4661_v59 = vsub.f32 %v4657_v40, %v4660_v50  ;;  %v11798_v50 = vpack.c.bf16 %v8772_v48, %v8771_v46 }
0x273b   :  { %v4662_v5 = vmul.f32 1.442695, %v4661_v59  ;;  %v8762_v59 = vld [vmem:[%s12381_s23 + $0x1c0] sm:$0xff] }
0x273d   :  { %10586 = vpow2.f32 %v4662_v5  ;;  %v8763_v5 = vld [vmem:[%s12381_s23 + $0x1c8] sm:$0xff] }
0x2747   :  { %v10587_v6 = vpop.eup %10586 }
0x2748   :  { %v4664_v54 = vsel %vm560_vm5, %v10587_v6, 0.0 }
0x2749   :  { %4665 = vadd.xlane.f32.xlu0 %v4664_v54  ;;  %v8764_v54 = vld [vmem:[%s12381_s23 + $0x1d0] sm:$0xff] }
0x27d6   :  { %v4666_v57 = vpop.xlane.xlu0 %4665 }
0x27d7   :  { %10588 = vrcp.f32 %v4666_v57  ;;  %v8765_v57 = vld [vmem:[%s12381_s23 + $0x1d8] sm:$0xff] }
0x27e1   :  { %v10589_v13 = vpop.eup %10588 }
0x27e2   :  { %v4668_v11 = vmul.f32 %v10589_v13, %v10587_v6  ;;  %v11815_v6 = vpack.c.bf16 %v8763_v5, %v8762_v59  ;;  %v11825_v13 = vpack.c.bf16 %v8765_v57, %v8764_v54 }
0x27e4   :  { %9757 = vmatmul.mubr.msk.f32.vlgmr.msra.gmra.mrb[60].mxu1 %vm560_vm5, %v4668_v11  ;;  %v8776_v11 = vld [vmem:[%s12381_s23 + $0x2c0] sm:$0xff] }
0x27e5   :  { %10378 = vmatpush3.bf16.msra.mxu1 %v11718_v17  ;;  %9778 = vmatprep.mubr.msk.f32.mxu1 %vm10655_vm4, %v10653_v21 }
0x27e6   :  { %10379 = vmatprep.subr.bf16.mxu1 %v10654_v44 }
0x27e9   :  { %10381 = vmatpush3.bf16.msra.mxu1 %v11728_v32 }
0x27ea   :  { %9792 = vmatprep.subr.mxu1 %v10653_v21 }
0x27ec   :  { %9779 = vmatmul.mubr.msk.f32.vlgmr.msra.gmra.mrb[62].mxu1 %vm183_vm3, %v11612_v12 }
0x27ed   :  { %9794 = vmatprep.mubr.msk.f32.mxu1 %vm10655_vm4, %v10653_v21 }
0x28b7   :  { %v4738_v28 = vpop.f32.mrb[60].mxu1 }
0x28b8   :  { %v9758_v43 = vpop.f32.mrb[61].mxu1 }
0x28b9   :  { %v11837_v43 = vpack.c.bf16 %v8777_v16, %v8776_v11  ;;  %v11891_v11 = vld [vmem:[%s12352_s6 + $0x30] sm:$0xff] }
0x28bf   :  { %v4906_v27 = vpop.f32.mrb[62].mxu1 }
0x28c0   :  { %v4907_v35 = vadd.f32 %v11742_v20, %v4906_v27  ;;  %v9780_v37 = vpop.f32.mrb[63].mxu1  ;;  %v8778_v27 = vld [vmem:[%s12381_s23 + $0x2d0] sm:$0xff] }
0x28c1   :  { %v11852_v37 = vld [vmem:[%s12351_s5 + $0x12] ss:$0 sm:$0xff] }
0x28c2   :  { %9793 = vmatpush3.xpose.msk.msra.mxu1 %vm560_vm5, %v4907_v35  ;;  %v8779_v35 = vld [vmem:[%s12381_s23 + $0x2d8] sm:$0xff] }
0x28c3   :  { %9797 = vmatprep.subr.mxu1 %v10653_v21 }
0x28c5   :  { %9795 = vmatmul.mubr.msk.f32.vlgmr.msra.gmra.mrb[64].mxu1 %vm560_vm5, %v4824_v53  ;;  %v11854_v53 = vpack.c.bf16 %v8779_v35, %v8778_v27 }
0x28c6   :  { %9798 = vmatpush3.msra.mxu1 %v4990_v41  ;;  %9799 = vmatprep.mubr.msk.f32.mxu1 %vm10655_vm4, %v10653_v21 }
0x28c7   :  { %9807 = vmatprep.subr.mxu1 %v10653_v21 }
0x2998   :  { %v5065_v47 = vpop.f32.mrb[64].mxu1 }
0x2999   :  { %v5069_v56 = vmul.f32 0.35355338, %v5065_v47  ;;  %v9796_v60 = vpop.f32.mrb[65].mxu1 }
0x299b   :  { %v5070_v1 = vsel %vm560_vm5, %v5069_v56, -inf }
0x299c   :  { %5071 = vmax.xlane.f32.xlu1 %v5070_v1 }
0x2a29   :  { %v5072_v15 = vpop.xlane.xlu1 %5071 }
0x2a2a   :  { %v5073_v0 = vsub.f32 %v5069_v56, %v5072_v15 }
0x2a2c   :  { %v5074_v14 = vmul.f32 1.442695, %v5073_v0  ;;  %v11873_v0 = vld [vmem:[%s12351_s5 + $0xe] ss:$0 sm:$0xff] }
0x2a2e   :  { %10590 = vpow2.f32 %v5074_v14 }
0x2a38   :  { %v10591_v3 = vpop.eup %10590 }
0x2a39   :  { %v5076_v58 = vsel %vm560_vm5, %v10591_v3, 0.0 }
0x2a3a   :  { %5077 = vadd.xlane.f32.xlu0 %v5076_v58 }
0x2ac7   :  { %v5078_v8 = vpop.xlane.xlu0 %5077 }
0x2ac8   :  { %10592 = vrcp.f32 %v5078_v8  ;;  %v11882_v8 = vld [vmem:[%s12351_s5 + $0x16] ss:$0 sm:$0xff] }
0x2ad2   :  { %v10593_v25 = vpop.eup %10592 }
0x2ad3   :  { %v5080_v40 = vmul.f32 %v10593_v25, %v10591_v3 }
0x2ad5   :  { %9800 = vmatmul.mubr.msk.f32.vlgmr.msra.gmra.mrb[66].mxu1 %vm560_vm5, %v5080_v40 }
0x2ad6   :  { %9808 = vmatpush3.msra.mxu1 %v11775_v62  ;;  %9809 = vmatprep.mubr.msk.f32.mxu1 %vm10655_vm4, %v10653_v21 }
0x2ad7   :  { %10394 = vmatprep.subr.bf16.mxu1 %v10654_v44 }
0x2ad9   :  { %9810 = vmatmul.mubr.msk.f32.vlgmr.msra.gmra.mrb[68].mxu1 %vm560_vm5, %v4738_v28 }
0x2ada   :  { %10396 = vmatpush3.bf16.msra.mxu1 %v11787_v42  ;;  %9831 = vmatprep.mubr.msk.f32.mxu1 %vm10655_vm4, %v10653_v21 }
0x2adb   :  { %10397 = vmatprep.subr.bf16.mxu1 %v10654_v44 }
0x2ade   :  { %10399 = vmatpush3.bf16.msra.mxu1 %v11798_v50 }
0x2adf   :  { %9845 = vmatprep.subr.mxu1 %v10653_v21 }
0x2ae1   :  { %9832 = vmatmul.mubr.msk.f32.vlgmr.msra.gmra.mrb[70].mxu1 %vm183_vm3, %v11612_v12 }
0x2ae2   :  { %9847 = vmatprep.mubr.msk.f32.mxu1 %vm10655_vm4, %v10653_v21 }
0x2ba8   :  { %v5150_v55 = vpop.f32.mrb[66].mxu1 }
0x2ba9   :  { %v9801_v9 = vpop.f32.mrb[67].mxu1  ;;  %9805 = vmatmul.mubr.msk.f32.vlgmr.msra.gmra.mrb[56].mxu0 %vm560_vm5, %v5150_v55 }
0x2baa   :  { %10390 = vmatpush3.bf16.msra.mxu0 %v11815_v6  ;;  %9820 = vmatprep.mubr.msk.f32.mxu0 %vm10655_vm4, %v10653_v21 }
0x2bab   :  { %10391 = vmatprep.subr.bf16.mxu0 %v10654_v44 }
0x2bac   :  { %v5298_v18 = vpop.f32.mrb[68].mxu1 }
0x2bad   :  { %v9811_v28 = vpop.f32.mrb[69].mxu1 }
0x2bae   :  { %10393 = vmatpush3.bf16.msra.mxu0 %v11825_v13  ;;  %v8789_v28 = vld [vmem:[%s12381_s23 + $0x1e8] sm:$0xff] }
0x2baf   :  { %10400 = vmatprep.subr.bf16.mxu0 %v10654_v44 }
0x2bb1   :  { %9821 = vmatmul.mubr.msk.f32.vlgmr.msra.gmra.mrb[58].mxu0 %vm183_vm3, %v11612_v12 }
0x2bb2   :  { %10402 = vmatpush3.bf16.msra.mxu0 %v11837_v43  ;;  %9842 = vmatprep.mubr.msk.f32.mxu0 %vm10655_vm4, %v10653_v21 }
0x2bb3   :  { %10403 = vmatprep.subr.bf16.mxu0 %v10654_v44 }
0x2bb4   :  { %v5464_v41 = vpop.f32.mrb[70].mxu1 }
0x2bb5   :  { %v5465_v47 = vadd.f32 %v11852_v37, %v5464_v41  ;;  %v9833_v56 = vpop.f32.mrb[71].mxu1 }
0x2bb6   :  { %10405 = vmatpush3.bf16.msra.mxu0 %v11854_v53  ;;  %v8791_v56 = vld [vmem:[%s12381_s23 + $0x1f8] sm:$0xff] }
0x2bb7   :  { %9846 = vmatpush3.xpose.msk.msra.mxu1 %vm560_vm5, %v5465_v47  ;;  %9855 = vmatprep.subr.mxu0 %v10653_v21  ;;  %v8790_v47 = vld [vmem:[%s12381_s23 + $0x1f0] sm:$0xff] }
0x2bb8   :  { %9850 = vmatprep.subr.mxu1 %v10653_v21 }
0x2bb9   :  { %9843 = vmatmul.mubr.msk.f32.vlgmr.msra.gmra.mrb[60].mxu0 %vm183_vm3, %v11612_v12 }
0x2bba   :  { %9857 = vmatprep.mubr.msk.f32.mxu0 %vm10655_vm4, %v10653_v21  ;;  %9856 = vmatpush3.msra.mxu0 %v11891_v11 }
0x2bbb   :  { %10412 = vmatprep.subr.bf16.mxu0 %v10654_v44 }
0x2c7c   :  { %v5225_v60 = vpop.f32.mrb[56].mxu0 }
0x2c7d   :  { %v11868_v1 = vadd.f32 %v5298_v18, %v5225_v60  ;;  %v9806_v15 = vpop.f32.mrb[57].mxu0  ;;  %v8788_v18 = vld [vmem:[%s12381_s23 + $0x1e0] sm:$0xff]  ;;  %v11911_v60 = vpack.c.bf16 %v8791_v56, %v8790_v47  ;;  %v11979_v47 = vld [vmem:[%s12351_s5 + $0x13] ss:$0 sm:$0xff] }
0x2c7e   :  { %v11901_v35 = vpack.c.bf16 %v8789_v28, %v8788_v18  ;;  %v8802_v15 = vld [vmem:[%s12381_s23 + $0x2e0] sm:$0xff] }
0x2c84   :  { %v5381_v14 = vpop.f32.mrb[58].mxu0 }
0x2c85   :  { %v5382_v3 = vadd.f32 %v11873_v0, %v5381_v14  ;;  %v9822_v58 = vpop.f32.mrb[59].mxu0  ;;  %v8803_v14 = vld [vmem:[%s12381_s23 + $0x2e8] sm:$0xff] }
0x2c86   :  { %v8804_v58 = vld [vmem:[%s12381_s23 + $0x2f0] sm:$0xff] }
0x2c87   :  { %9848 = vmatmul.mubr.msk.f32.vlgmr.msra.gmra.mrb[72].mxu1 %vm560_vm5, %v5382_v3  ;;  %v11923_v3 = vpack.c.bf16 %v8803_v14, %v8802_v15 }
0x2c88   :  { %9852 = vmatprep.mubr.msk.f32.mxu1 %vm10655_vm4, %v10653_v21 }
0x2c8c   :  { %v5547_v25 = vpop.f32.mrb[60].mxu0 }
0x2c8d   :  { %v5548_v40 = vadd.f32 %v11882_v8, %v5547_v25  ;;  %v9844_v36 = vpop.f32.mrb[61].mxu0  ;;  %v8805_v25 = vld [vmem:[%s12381_s23 + $0x2f8] sm:$0xff] }
0x2c8e   :  { %v8795_v36 = vld [vmem:[%s12381_s23 + $0x260] sm:$0xff] }
0x2c8f   :  { %9851 = vmatpush3.msra.mxu1 %v5548_v40  ;;  %v11935_v40 = vpack.c.bf16 %v8805_v25, %v8804_v58 }
0x2c90   :  { %10406 = vmatprep.subr.bf16.mxu1 %v10654_v44 }
0x2d5a   :  { %v5623_v39 = vpop.f32.mrb[72].mxu1 }
0x2d5b   :  { %v5627_v46 = vmul.f32 0.35355338, %v5623_v39  ;;  %v9849_v48 = vpop.f32.mrb[73].mxu1  ;;  %v8796_v39 = vld [vmem:[%s12381_s23 + $0x268] sm:$0xff] }
0x2d5c   :  { %v8797_v48 = vld [vmem:[%s12381_s23 + $0x270] sm:$0xff] }
0x2d5d   :  { %v5628_v59 = vsel %vm560_vm5, %v5627_v46, -inf }
0x2d5e   :  { %5629 = vmax.xlane.f32.xlu1 %v5628_v59  ;;  %v8798_v59 = vld [vmem:[%s12381_s23 + $0x278] sm:$0xff] }
0x2deb   :  { %v5630_v5 = vpop.xlane.xlu1 %5629 }
0x2dec   :  { %v5631_v54 = vsub.f32 %v5627_v46, %v5630_v5  ;;  %v11952_v46 = vpack.c.bf16 %v8796_v39, %v8795_v36 }
0x2dee   :  { %v5632_v57 = vmul.f32 1.442695, %v5631_v54 }
0x2df0   :  { %10594 = vpow2.f32 %v5632_v57  ;;  %v11962_v57 = vpack.c.bf16 %v8798_v59, %v8797_v48  ;;  %v12002_v59 = vadd.f32 %v11543_v34, %v11486_v7 }
0x2dfa   :  { %v10595_v55 = vpop.eup %10594 }
0x2dfb   :  { %v5634_v9 = vsel %vm560_vm5, %v10595_v55, 0.0 }
0x2dfc   :  { %5635 = vadd.xlane.f32.xlu0 %v5634_v9 }
0x2e89   :  { %v5636_v16 = vpop.xlane.xlu0 %5635 }
0x2e8a   :  { %10596 = vrcp.f32 %v5636_v16 }
0x2e94   :  { %v10597_v27 = vpop.eup %10596 }
0x2e95   :  { %v5638_v41 = vmul.f32 %v10597_v27, %v10595_v55 }
0x2e97   :  { %9853 = vmatmul.mubr.msk.f32.vlgmr.msra.gmra.mrb[74].mxu1 %vm560_vm5, %v5638_v41 }
0x2e98   :  { %10408 = vmatpush3.bf16.msra.mxu1 %v11901_v35  ;;  %9868 = vmatprep.mubr.msk.f32.mxu1 %vm10655_vm4, %v10653_v21 }
0x2e99   :  { %10409 = vmatprep.subr.bf16.mxu1 %v10654_v44 }
0x2e9c   :  { %10411 = vmatpush3.bf16.msra.mxu1 %v11911_v60 }
0x2e9d   :  { %10418 = vmatprep.subr.bf16.mxu1 %v10654_v44 }
0x2e9f   :  { %9869 = vmatmul.mubr.msk.f32.vlgmr.msra.gmra.mrb[76].mxu1 %vm183_vm3, %v11612_v12 }
0x2ea0   :  { %10420 = vmatpush3.bf16.msra.mxu1 %v11923_v3  ;;  %9890 = vmatprep.mubr.msk.f32.mxu1 %vm10655_vm4, %v10653_v21 }
0x2ea1   :  { %10421 = vmatprep.subr.bf16.mxu1 %v10654_v44 }
0x2ea4   :  { %10423 = vmatpush3.bf16.msra.mxu1 %v11935_v40 }
0x2ea5   :  { %9903 = vmatprep.subr.mxu1 %v10653_v21 }
0x2ea7   :  { %9891 = vmatmul.mubr.msk.f32.vlgmr.msra.gmra.mrb[78].mxu1 %vm183_vm3, %v11612_v12 }
0x2ea8   :  { %9905 = vmatprep.mubr.msk.f32.mxu1 %vm10655_vm4, %v10653_v21 }
0x2f6a   :  { %v5708_v5 = vpop.f32.mrb[74].mxu1 }
0x2f6b   :  { %v9854_v54 = vpop.f32.mrb[75].mxu1  ;;  %9858 = vmatmul.mubr.msk.f32.vlgmr.msra.gmra.mrb[62].mxu0 %vm560_vm5, %v5708_v5 }
0x2f6c   :  { %10414 = vmatpush3.bf16.msra.mxu0 %v11952_v46  ;;  %9879 = vmatprep.mubr.msk.f32.mxu0 %vm10655_vm4, %v10653_v21  ;;  %v4290_v54 = vsel %vm183_vm3, %v12002_v59, 0.0 }
0x2f6d   :  { %10415 = vmatprep.subr.bf16.mxu0 %v10654_v44 }
0x2f70   :  { %10417 = vmatpush3.bf16.msra.mxu0 %v11962_v57 }
0x2f71   :  { %9893 = vmatprep.subr.mxu0 %v10653_v21 }
0x2f72   :  { %v5867_v55 = vpop.f32.mrb[76].mxu1 }
0x2f73   :  { %v9870_v9 = vpop.f32.mrb[77].mxu1  ;;  %9880 = vmatmul.mubr.msk.f32.vlgmr.msra.gmra.mrb[64].mxu0 %vm183_vm3, %v11612_v12  ;;  %v11984_v12 = vld [vmem:[%s12351_s5 + $0xf] ss:$0 sm:$0xff] }
0x2f74   :  { %9895 = vmatprep.mubr.msk.f32.mxu0 %vm10655_vm4, %v10653_v21  ;;  %v5868_v58 = vadd.f32 %v11984_v12, %v5867_v55 }
0x2f7a   :  { %v6033_v16 = vpop.f32.mrb[78].mxu1 }
0x2f7b   :  { %v9892_v18 = vpop.f32.mrb[79].mxu1 }
0x303e   :  { %v5783_v28 = vpop.f32.mrb[62].mxu0 }
0x303f   :  { %v11974_v27 = vadd.f32 %v5783_v28, %v11868_v1  ;;  %v9859_v41 = vpop.f32.mrb[63].mxu0  ;;  %v11990_v1 = vld [vmem:[%s12351_s5 + $0x17] ss:$0 sm:$0xff] }
0x3040   :  { %v6034_v25 = vadd.f32 %v11990_v1, %v6033_v16 }
0x3046   :  { %v5950_v56 = vpop.f32.mrb[64].mxu0 }
0x3047   :  { %v5951_v15 = vadd.f32 %v11979_v47, %v5950_v56  ;;  %v9881_v14 = vpop.f32.mrb[65].mxu0 }
0x3048   :  { %v12013_v14 = vld [vmem:[%s12352_s6 + $0x38] sm:$0xff] }
0x3049   :  { %9894 = vmatpush3.xpose.msk.msra.mxu0 %vm560_vm5, %v5951_v15  ;;  %9904 = vmatpush3.msra.mxu1 %v12013_v14 }
0x304a   :  { %9898 = vmatprep.subr.mxu0 %v10653_v21  ;;  %10430 = vmatprep.subr.bf16.mxu1 %v10654_v44 }
0x304c   :  { %9896 = vmatmul.mubr.msk.f32.vlgmr.msra.gmra.mrb[66].mxu0 %vm560_vm5, %v5868_v58 }
0x304d   :  { %9899 = vmatpush3.msra.mxu0 %v6034_v25  ;;  %9900 = vmatprep.mubr.msk.f32.mxu0 %vm10655_vm4, %v10653_v21 }
0x304e   :  { %10424 = vmatprep.subr.bf16.mxu0 %v10654_v44 }
0x311f   :  { %v6109_v36 = vpop.f32.mrb[66].mxu0 }
0x3120   :  { %v6113_v39 = vmul.f32 0.35355338, %v6109_v36  ;;  %v9897_v48 = vpop.f32.mrb[67].mxu0 }
0x3122   :  { %v6114_v5 = vsel %vm560_vm5, %v6113_v39, -inf }
0x3123   :  { %6115 = vmax.xlane.f32.xlu1 %v6114_v5 }
0x3127   :  { %4291 = vadd.xlane.f32.xlu1 %v4290_v54 }
0x31b0   :  { %v6116_v55 = vpop.xlane.xlu1 %6115 }
0x31b1   :  { %v6117_v9 = vsub.f32 %v6113_v39, %v6116_v55 }
0x31b3   :  { %v6118_v16 = vmul.f32 1.442695, %v6117_v9 }
0x31b4   :  { %v4292_v18 = vpop.xlane.xlu1 %4291 }
0x31b5   :  { %10598 = vpow2.f32 %v6118_v16  ;;  %v4294_v28 = vmul.f32 0.03125, %v4292_v18 }
0x31b7   :  { %v4296_v41 = vsub.f32 %v12002_v59, %v4294_v28 }
0x31b9   :  { %v4298_v7 = vmul.f32 %v4296_v41, %v4296_v41 }
0x31bb   :  { %v4302_v34 = vsel %vm183_vm3, %v4298_v7, 0.0 }
0x31bf   :  { %v10599_v56 = vpop.eup %10598 }
0x31c0   :  { %v6120_v15 = vsel %vm560_vm5, %v10599_v56, 0.0 }
0x31c1   :  { %6121 = vadd.xlane.f32.xlu0 %v6120_v15 }
0x31c5   :  { %4303 = vadd.xlane.f32.xlu0 %v4302_v34 }
0x324e   :  { %v6122_v58 = vpop.xlane.xlu0 %6121 }
0x324f   :  { %10600 = vrcp.f32 %v6122_v58 }
0x3252   :  { %v4304_v25 = vpop.xlane.xlu0 %4303 }
0x3253   :  { %v4306_v36 = vmul.f32 0.03125, %v4304_v25 }
0x3255   :  { %v4308_v39 = vadd.f32 1e-05, %v4306_v36 }
0x3257   :  { %10602 = vrsqrt.f32 %v4308_v39 }
0x3259   :  { %v10601_v48 = vpop.eup %10600 }
0x325a   :  { %v6124_v5 = vmul.f32 %v10601_v48, %v10599_v56 }
0x325c   :  { %9901 = vmatmul.mubr.msk.f32.vlgmr.msra.gmra.mrb[68].mxu0 %vm560_vm5, %v6124_v5 }
0x325d   :  { %10426 = vmatpush3.bf16.msra.mxu0 %v11558_v61  ;;  %9916 = vmatprep.mubr.msk.f32.mxu0 %vm10655_vm4, %v10653_v21 }
0x325e   :  { %10427 = vmatprep.subr.bf16.mxu0 %v10654_v44 }
0x3261   :  { %v10603_v54 = vpop.eup %10602  ;;  %10429 = vmatpush3.bf16.msra.mxu0 %v11577_v49 }
0x3262   :  { %v4312_v55 = vmul.f32 %v10603_v54, %v4296_v41  ;;  %10436 = vmatprep.subr.bf16.mxu0 %v10654_v44 }
0x3264   :  { %v4320_v9 = vmul.f32 %v11595_v22, %v4312_v55 }
0x3266   :  { %v12026_v16 = vadd.f32 %v11606_v24, %v4320_v9 }
0x3268   :  { %9917 = vmatmul.mubr.msk.f32.vlgmr.msra.gmra.mrb[70].mxu0 %vm183_vm3, %v12026_v16 }
0x3269   :  { %10438 = vmatpush3.bf16.msra.mxu0 %v11566_v51  ;;  %9938 = vmatprep.mubr.msk.f32.mxu0 %vm10655_vm4, %v10653_v21 }
0x326a   :  { %10439 = vmatprep.subr.bf16.mxu0 %v10654_v44 }
0x326d   :  { %10441 = vmatpush3.bf16.msra.mxu0 %v11586_v10 }
0x326e   :  { %10442 = vmatprep.subr.bf16.mxu0 %v10654_v44 }
0x3270   :  { %9939 = vmatmul.mubr.msk.f32.vlgmr.msra.gmra.mrb[72].mxu0 %vm183_vm3, %v12026_v16 }
0x3271   :  { %10444 = vmatpush3.bf16.msra.mxu0 %v11663_v4  ;;  %9959 = vmatprep.mubr.msk.f32.mxu0 %vm10655_vm4, %v10653_v21 }
0x3272   :  { %10445 = vmatprep.subr.bf16.mxu0 %v10654_v44 }
0x3275   :  { %10447 = vmatpush3.bf16.msra.mxu0 %v11675_v19 }
0x3276   :  { %10454 = vmatprep.subr.bf16.mxu0 %v10654_v44 }
0x3278   :  { %9960 = vmatmul.mubr.msk.f32.vlgmr.msra.gmra.mrb[74].mxu0 %vm183_vm3, %v12026_v16 }
0x3279   :  { %10456 = vmatpush3.bf16.msra.mxu0 %v11687_v26  ;;  %9981 = vmatprep.mubr.msk.f32.mxu0 %vm10655_vm4, %v10653_v21 }
0x327a   :  { %10457 = vmatprep.subr.bf16.mxu0 %v10654_v44 }
0x327d   :  { %10459 = vmatpush3.bf16.msra.mxu0 %v11699_v29 }
0x327e   :  { %9994 = vmatprep.subr.mxu0 %v10653_v21 }
0x3280   :  { %9982 = vmatmul.mubr.msk.f32.vlgmr.msra.gmra.mrb[76].mxu0 %vm183_vm3, %v12026_v16 }
0x3281   :  { %9995 = vmatpush3.msra.mxu0 %v11768_v45  ;;  %9996 = vmatprep.mubr.msk.f32.mxu0 %vm10655_vm4, %v10653_v21 }
0x3282   :  { %10460 = vmatprep.subr.bf16.mxu0 %v10654_v44 }
0x332f   :  { %v6194_v61 = vpop.f32.mrb[68].mxu0 }
0x3330   :  { %v9902_v51 = vpop.f32.mrb[69].mxu0  ;;  %9906 = vmatmul.mubr.msk.f32.vlgmr.msra.gmra.mrb[80].mxu1 %vm560_vm5, %v6194_v61 }
0x3331   :  { %10432 = vmatpush3.bf16.msra.mxu1 %v11609_v63  ;;  %9927 = vmatprep.mubr.msk.f32.mxu1 %vm10655_vm4, %v10653_v21 }
0x3332   :  { %10433 = vmatprep.subr.bf16.mxu1 %v10654_v44 }
0x3335   :  { %10435 = vmatpush3.bf16.msra.mxu1 %v11625_v23 }
0x3336   :  { %9941 = vmatprep.subr.mxu1 %v10653_v21 }
0x3338   :  { %9928 = vmatmul.mubr.msk.f32.vlgmr.msra.gmra.mrb[82].mxu1 %vm183_vm3, %v12026_v16 }
0x3339   :  { %9943 = vmatprep.mubr.msk.f32.mxu1 %vm10655_vm4, %v10653_v21 }
0x333b   :  { %v6352_v49 = vpop.f32.mrb[70].mxu0 }
0x333c   :  { %v9918_v10 = vpop.f32.mrb[71].mxu0  ;;  %v6353_v56 = vadd.f32 %v11659_v2, %v6352_v49 }
0x3343   :  { %v6492_v22 = vpop.f32.mrb[72].mxu0 }
0x3344   :  { %v9940_v24 = vpop.f32.mrb[73].mxu0  ;;  %v6493_v15 = vadd.f32 %v11641_v30, %v6492_v22 }
0x334b   :  { %v6723_v63 = vpop.f32.mrb[74].mxu0 }
0x334c   :  { %v9961_v4 = vpop.f32.mrb[75].mxu0  ;;  %v6724_v51 = vadd.f32 %v11747_v33, %v6723_v63 }
0x3353   :  { %v6863_v19 = vpop.f32.mrb[76].mxu0 }
0x3354   :  { %v9983_v26 = vpop.f32.mrb[77].mxu0 }
0x3403   :  { %v6269_v29 = vpop.f32.mrb[80].mxu1 }
0x3404   :  { %v12070_v45 = vadd.f32 %v6269_v29, %v11974_v27  ;;  %v9907_v23 = vpop.f32.mrb[81].mxu1 }
0x340b   :  { %v6422_v18 = vpop.f32.mrb[82].mxu1 }
0x340c   :  { %v6423_v28 = vadd.f32 %v11648_v52, %v6422_v18  ;;  %v9929_v41 = vpop.f32.mrb[83].mxu1 }
0x340e   :  { %9942 = vmatpush3.xpose.msk.msra.mxu1 %vm560_vm5, %v6423_v28 }
0x340f   :  { %9946 = vmatprep.subr.mxu1 %v10653_v21 }
0x3411   :  { %9944 = vmatmul.mubr.msk.f32.vlgmr.msra.gmra.mrb[84].mxu1 %vm560_vm5, %v6353_v56 }
0x3412   :  { %9947 = vmatpush3.msra.mxu1 %v6493_v15  ;;  %9948 = vmatprep.mubr.msk.f32.mxu1 %vm10655_vm4, %v10653_v21 }
0x3413   :  { %10448 = vmatprep.subr.bf16.mxu1 %v10654_v44 }
0x34e4   :  { %v6568_v27 = vpop.f32.mrb[84].mxu1 }
0x34e5   :  { %v6572_v7 = vmul.f32 0.35355338, %v6568_v27  ;;  %v9945_v52 = vpop.f32.mrb[85].mxu1 }
0x34e7   :  { %v6573_v34 = vsel %vm560_vm5, %v6572_v7, -inf }
0x34e8   :  { %6574 = vmax.xlane.f32.xlu1 %v6573_v34 }
0x3575   :  { %v6575_v58 = vpop.xlane.xlu1 %6574 }
0x3576   :  { %v6576_v2 = vsub.f32 %v6572_v7, %v6575_v58 }
0x3578   :  { %v6577_v25 = vmul.f32 1.442695, %v6576_v2 }
0x357a   :  { %10604 = vpow2.f32 %v6577_v25 }
0x3584   :  { %v10605_v36 = vpop.eup %10604 }
0x3585   :  { %v6579_v30 = vsel %vm560_vm5, %v10605_v36, 0.0 }
0x3586   :  { %6580 = vadd.xlane.f32.xlu0 %v6579_v30 }
0x3613   :  { %v6581_v39 = vpop.xlane.xlu0 %6580 }
0x3614   :  { %10606 = vrcp.f32 %v6581_v39 }
0x361e   :  { %v10607_v48 = vpop.eup %10606 }
0x361f   :  { %v6583_v5 = vmul.f32 %v10607_v48, %v10605_v36 }
0x3621   :  { %9949 = vmatmul.mubr.msk.f32.vlgmr.msra.gmra.mrb[86].mxu1 %vm560_vm5, %v6583_v5 }
0x3622   :  { %10450 = vmatpush3.bf16.msra.mxu1 %v11718_v17  ;;  %9970 = vmatprep.mubr.msk.f32.mxu1 %vm10655_vm4, %v10653_v21 }
0x3623   :  { %10451 = vmatprep.subr.bf16.mxu1 %v10654_v44 }
0x3626   :  { %10453 = vmatpush3.bf16.msra.mxu1 %v11728_v32  ;;  %v6864_v32 = vadd.f32 %v11753_v38, %v6863_v19 }
0x3627   :  { %9984 = vmatprep.subr.mxu1 %v10653_v21 }
0x3629   :  { %9971 = vmatmul.mubr.msk.f32.vlgmr.msra.gmra.mrb[88].mxu1 %vm183_vm3, %v12026_v16 }
0x362a   :  { %9986 = vmatprep.mubr.msk.f32.mxu1 %vm10655_vm4, %v10653_v21 }
0x36f4   :  { %v6653_v54 = vpop.f32.mrb[86].mxu1 }
0x36f5   :  { %v9950_v55 = vpop.f32.mrb[87].mxu1 }
0x36fc   :  { %v6793_v9 = vpop.f32.mrb[88].mxu1 }
0x36fd   :  { %v6794_v17 = vadd.f32 %v11742_v20, %v6793_v9  ;;  %v9972_v61 = vpop.f32.mrb[89].mxu1 }
0x36ff   :  { %9985 = vmatpush3.xpose.msk.msra.mxu1 %vm560_vm5, %v6794_v17 }
0x3700   :  { %9989 = vmatprep.subr.mxu1 %v10653_v21 }
0x3702   :  { %9987 = vmatmul.mubr.msk.f32.vlgmr.msra.gmra.mrb[90].mxu1 %vm560_vm5, %v6724_v51  ;;  %v8815_v51 = vld [vmem:[%s12353_s7 + $0x1] ss:$0 sm:$0xff] }
0x3703   :  { %9990 = vmatpush3.msra.mxu1 %v6864_v32  ;;  %9991 = vmatprep.mubr.msk.f32.mxu1 %vm10655_vm4, %v10653_v21 }
0x3704   :  { %9999 = vmatprep.subr.mxu1 %v10653_v21 }
0x37d5   :  { %v6939_v49 = vpop.f32.mrb[90].mxu1 }
0x37d6   :  { %v6943_v10 = vmul.f32 0.35355338, %v6939_v49  ;;  %v9988_v20 = vpop.f32.mrb[91].mxu1 }
0x37d8   :  { %v6944_v22 = vsel %vm560_vm5, %v6943_v10, -inf }
0x37d9   :  { %6945 = vmax.xlane.f32.xlu1 %v6944_v22 }
0x3866   :  { %v6946_v24 = vpop.xlane.xlu1 %6945 }
0x3867   :  { %v6947_v33 = vsub.f32 %v6943_v10, %v6946_v24 }
0x3869   :  { %v6948_v63 = vmul.f32 1.442695, %v6947_v33 }
0x386b   :  { %10608 = vpow2.f32 %v6948_v63 }
0x3875   :  { %v10609_v4 = vpop.eup %10608 }
0x3876   :  { %v6950_v38 = vsel %vm560_vm5, %v10609_v4, 0.0 }
0x3877   :  { %6951 = vadd.xlane.f32.xlu0 %v6950_v38 }
0x3904   :  { %v6952_v19 = vpop.xlane.xlu0 %6951 }
0x3905   :  { %10610 = vrcp.f32 %v6952_v19 }
0x390f   :  { %v10611_v26 = vpop.eup %10610 }
0x3910   :  { %v6954_v29 = vmul.f32 %v10611_v26, %v10609_v4 }
0x3912   :  { %9992 = vmatmul.mubr.msk.f32.vlgmr.msra.gmra.mrb[92].mxu1 %vm560_vm5, %v6954_v29 }
0x3913   :  { %10000 = vmatpush3.msra.mxu1 %v11775_v62  ;;  %10001 = vmatprep.mubr.msk.f32.mxu1 %vm10655_vm4, %v10653_v21 }
0x3914   :  { %10466 = vmatprep.subr.bf16.mxu1 %v10654_v44 }
0x3916   :  { %10002 = vmatmul.mubr.msk.f32.vlgmr.msra.gmra.mrb[94].mxu1 %vm560_vm5, %v6653_v54 }
0x3917   :  { %10468 = vmatpush3.bf16.msra.mxu1 %v11787_v42  ;;  %10023 = vmatprep.mubr.msk.f32.mxu1 %vm10655_vm4, %v10653_v21 }
0x3918   :  { %10469 = vmatprep.subr.bf16.mxu1 %v10654_v44 }
0x391b   :  { %10471 = vmatpush3.bf16.msra.mxu1 %v11798_v50 }
0x391c   :  { %10037 = vmatprep.subr.mxu1 %v10653_v21 }
0x391e   :  { %10024 = vmatmul.mubr.msk.f32.vlgmr.msra.gmra.mrb[96].mxu1 %vm183_vm3, %v12026_v16 }
0x391f   :  { %10039 = vmatprep.mubr.msk.f32.mxu1 %vm10655_vm4, %v10653_v21 }
0x39e5   :  { %v7024_v62 = vpop.f32.mrb[92].mxu1 }
0x39e6   :  { %v9993_v23 = vpop.f32.mrb[93].mxu1  ;;  %9997 = vmatmul.mubr.msk.f32.vlgmr.msra.gmra.mrb[78].mxu0 %vm560_vm5, %v7024_v62 }
0x39e7   :  { %10462 = vmatpush3.bf16.msra.mxu0 %v11815_v6  ;;  %10012 = vmatprep.mubr.msk.f32.mxu0 %vm10655_vm4, %v10653_v21 }
0x39e8   :  { %10463 = vmatprep.subr.bf16.mxu0 %v10654_v44 }
0x39e9   :  { %v7170_v42 = vpop.f32.mrb[94].mxu1 }
0x39ea   :  { %v10003_v50 = vpop.f32.mrb[95].mxu1 }
0x39eb   :  { %10465 = vmatpush3.bf16.msra.mxu0 %v11825_v13 }
0x39ec   :  { %10472 = vmatprep.subr.bf16.mxu0 %v10654_v44 }
0x39ee   :  { %10013 = vmatmul.mubr.msk.f32.vlgmr.msra.gmra.mrb[80].mxu0 %vm183_vm3, %v12026_v16 }
0x39ef   :  { %10474 = vmatpush3.bf16.msra.mxu0 %v11837_v43  ;;  %10034 = vmatprep.mubr.msk.f32.mxu0 %vm10655_vm4, %v10653_v21 }
0x39f0   :  { %10475 = vmatprep.subr.bf16.mxu0 %v10654_v44 }
0x39f1   :  { %v7310_v6 = vpop.f32.mrb[96].mxu1 }
0x39f2   :  { %v7311_v18 = vadd.f32 %v11852_v37, %v7310_v6  ;;  %v10025_v28 = vpop.f32.mrb[97].mxu1  ;;  %v8846_v6 = vld [vmem:[%s12354_s8 + $0x3] ss:$0 sm:$0xff] }
0x39f3   :  { %10477 = vmatpush3.bf16.msra.mxu0 %v11854_v53 }
0x39f4   :  { %10038 = vmatpush3.xpose.msk.msra.mxu1 %vm560_vm5, %v7311_v18  ;;  %10047 = vmatprep.subr.mxu0 %v10653_v21 }
0x39f5   :  { %10042 = vmatprep.subr.mxu1 %v10653_v21 }
0x39f6   :  { %10035 = vmatmul.mubr.msk.f32.vlgmr.msra.gmra.mrb[82].mxu0 %vm183_vm3, %v12026_v16 }
0x39f7   :  { %10048 = vmatpush3.msra.mxu0 %v11891_v11  ;;  %10049 = vmatprep.mubr.msk.f32.mxu0 %vm10655_vm4, %v10653_v21 }
0x39f8   :  { %10484 = vmatprep.subr.bf16.mxu0 %v10654_v44 }
0x3ab9   :  { %v7097_v13 = vpop.f32.mrb[78].mxu0 }
0x3aba   :  { %v7171_v43 = vadd.f32 %v7170_v42, %v7097_v13  ;;  %v9998_v37 = vpop.f32.mrb[79].mxu0 }
0x3ac1   :  { %v7240_v53 = vpop.f32.mrb[80].mxu0 }
0x3ac2   :  { %v7241_v41 = vadd.f32 %v11873_v0, %v7240_v53  ;;  %v10014_v56 = vpop.f32.mrb[81].mxu0 }
0x3ac4   :  { %10040 = vmatmul.mubr.msk.f32.vlgmr.msra.gmra.mrb[98].mxu1 %vm560_vm5, %v7241_v41 }
0x3ac5   :  { %10044 = vmatprep.mubr.msk.f32.mxu1 %vm10655_vm4, %v10653_v21 }
0x3ac9   :  { %v7380_v15 = vpop.f32.mrb[82].mxu0 }
0x3aca   :  { %v7381_v11 = vadd.f32 %v11882_v8, %v7380_v15  ;;  %v10036_v27 = vpop.f32.mrb[83].mxu0 }
0x3acc   :  { %10043 = vmatpush3.msra.mxu1 %v7381_v11 }
0x3acd   :  { %10478 = vmatprep.subr.bf16.mxu1 %v10654_v44 }
0x3b97   :  { %v7456_v7 = vpop.f32.mrb[98].mxu1 }
0x3b98   :  { %v7460_v52 = vmul.f32 0.35355338, %v7456_v7  ;;  %v10041_v34 = vpop.f32.mrb[99].mxu1 }
0x3b9a   :  { %v7461_v58 = vsel %vm560_vm5, %v7460_v52, -inf }
0x3b9b   :  { %7462 = vmax.xlane.f32.xlu1 %v7461_v58 }
0x3c28   :  { %v7463_v0 = vpop.xlane.xlu1 %7462 }
0x3c29   :  { %v7464_v2 = vsub.f32 %v7460_v52, %v7463_v0 }
0x3c2b   :  { %v7465_v25 = vmul.f32 1.442695, %v7464_v2 }
0x3c2d   :  { %10612 = vpow2.f32 %v7465_v25 }
0x3c37   :  { %v10613_v36 = vpop.eup %10612 }
0x3c38   :  { %v7467_v30 = vsel %vm560_vm5, %v10613_v36, 0.0 }
0x3c39   :  { %7468 = vadd.xlane.f32.xlu0 %v7467_v30  ;;  %v8848_v30 = vld [vmem:[%s12356_s10 + $0x20] sm:$0xff] }
0x3cc6   :  { %v7469_v39 = vpop.xlane.xlu0 %7468 }
0x3cc7   :  { %10614 = vrcp.f32 %v7469_v39 }
0x3cd1   :  { %v10615_v8 = vpop.eup %10614 }
0x3cd2   :  { %v7471_v48 = vmul.f32 %v10615_v8, %v10613_v36  ;;  %v8850_v8 = vld [vmem:[%s12356_s10 + $0x30] sm:$0xff] }
0x3cd4   :  { %10045 = vmatmul.mubr.msk.f32.vlgmr.msra.gmra.mrb[100].mxu1 %vm560_vm5, %v7471_v48  ;;  %v8851_v48 = vld [vmem:[%s12356_s10 + $0x38] sm:$0xff] }
0x3cd5   :  { %10480 = vmatpush3.bf16.msra.mxu1 %v11901_v35  ;;  %10060 = vmatprep.mubr.msk.f32.mxu1 %vm10655_vm4, %v10653_v21 }
0x3cd6   :  { %10481 = vmatprep.subr.bf16.mxu1 %v10654_v44 }
0x3cd9   :  { %10483 = vmatpush3.bf16.msra.mxu1 %v11911_v60 }
0x3cda   :  { %10490 = vmatprep.subr.bf16.mxu1 %v10654_v44 }
0x3cdc   :  { %10061 = vmatmul.mubr.msk.f32.vlgmr.msra.gmra.mrb[102].mxu1 %vm183_vm3, %v12026_v16 }
0x3cdd   :  { %10492 = vmatpush3.bf16.msra.mxu1 %v11923_v3  ;;  %10082 = vmatprep.mubr.msk.f32.mxu1 %vm10655_vm4, %v10653_v21 }
0x3cde   :  { %10493 = vmatprep.subr.bf16.mxu1 %v10654_v44 }
0x3ce1   :  { %10495 = vmatpush3.bf16.msra.mxu1 %v11935_v40 }
0x3ce2   :  { %10095 = vmatprep.subr.mxu1 %v10653_v21 }
0x3ce4   :  { %10083 = vmatmul.mubr.msk.f32.vlgmr.msra.gmra.mrb[104].mxu1 %vm183_vm3, %v12026_v16 }
0x3ce5   :  { %10096 = vmatpush3.msra.mxu1 %v12013_v14  ;;  %10097 = vmatprep.mubr.msk.f32.mxu1 %vm10655_vm4, %v10653_v21 }
0x3da7   :  { %v7541_v35 = vpop.f32.mrb[100].mxu1 }
0x3da8   :  { %v10046_v60 = vpop.f32.mrb[101].mxu1  ;;  %10050 = vmatmul.mubr.msk.f32.vlgmr.msra.gmra.mrb[84].mxu0 %vm560_vm5, %v7541_v35  ;;  %v10500_v35 = vpack.c.bf16 %v8851_v48, %v8850_v8 }
0x3da9   :  { %10486 = vmatpush3.bf16.msra.mxu0 %v11952_v46  ;;  %10071 = vmatprep.mubr.msk.f32.mxu0 %vm10655_vm4, %v10653_v21  ;;  %v8856_v60 = vld [vmem:[%s12358_s12 + $0x40] sm:$0xff] }
0x3daa   :  { %10487 = vmatprep.subr.bf16.mxu0 %v10654_v44 }
0x3dad   :  { %10489 = vmatpush3.bf16.msra.mxu0 %v11962_v57 }
0x3dae   :  { %10085 = vmatprep.subr.mxu0 %v10653_v21 }
0x3daf   :  { %v7685_v3 = vpop.f32.mrb[102].mxu1 }
0x3db0   :  { %v10062_v40 = vpop.f32.mrb[103].mxu1  ;;  %10072 = vmatmul.mubr.msk.f32.vlgmr.msra.gmra.mrb[86].mxu0 %vm183_vm3, %v12026_v16  ;;  %v7686_v57 = vadd.f32 %v11984_v12, %v7685_v3  ;;  %v8857_v3 = vld [vmem:[%s12358_s12 + $0x48] sm:$0xff] }
0x3db1   :  { %10087 = vmatprep.mubr.msk.f32.mxu0 %vm10655_vm4, %v10653_v21  ;;  %v8858_v40 = vld [vmem:[%s12358_s12 + $0x50] sm:$0xff] }
0x3db7   :  { %v7825_v14 = vpop.f32.mrb[104].mxu1 }
0x3db8   :  { %v10084_v5 = vpop.f32.mrb[105].mxu1  ;;  %v7826_v16 = vadd.f32 %v11990_v1, %v7825_v14  ;;  %v10504_v14 = vpack.c.bf16 %v8857_v3, %v8856_v60 }
0x3db9   :  { %v8859_v5 = vld [vmem:[%s12358_s12 + $0x58] sm:$0xff] }
0x3dba   :  { %10505 = vmatprep.subr.bf16.mxu1 %v10504_v14 }
0x3e7b   :  { %v7614_v46 = vpop.f32.mrb[84].mxu0 }
0x3e7c   :  { %v7618_v54 = vadd.f32 %v7614_v46, %v7171_v43  ;;  %v10051_v55 = vpop.f32.mrb[85].mxu0  ;;  %v8847_v43 = vld [vmem:[%s12355_s9 + $0x3] ss:$0 sm:$0xff]  ;;  %v10508_v46 = vpack.c.bf16 %v8859_v5, %v8858_v40 }
0x3e7d   :  { %v8861_v55 = vld [vmem:[%s12358_s12 + $0x68] sm:$0xff] }
0x3e83   :  { %v7755_v9 = vpop.f32.mrb[86].mxu0 }
0x3e84   :  { %v7756_v17 = vadd.f32 %v11979_v47, %v7755_v9  ;;  %v10073_v61 = vpop.f32.mrb[87].mxu0  ;;  %v6282_v47 = vadd.f32 %v8815_v51, %v12070_v45 }
0x3e86   :  { %10086 = vmatpush3.xpose.msk.msra.mxu0 %vm560_vm5, %v7756_v17  ;;  %v12197_v12 = vadd.f32 %v6282_v47, %v11546_v31 }
0x3e87   :  { %10090 = vmatprep.subr.mxu0 %v10653_v21 }
0x3e88   :  { %v8071_v20 = vsel %vm183_vm3, %v12197_v12, 0.0 }
0x3e89   :  { %10088 = vmatmul.mubr.msk.f32.vlgmr.msra.gmra.mrb[88].mxu0 %vm560_vm5, %v7686_v57 }
0x3e8a   :  { %10091 = vmatpush3.msra.mxu0 %v7826_v16  ;;  %10092 = vmatprep.mubr.msk.f32.mxu0 %vm10655_vm4, %v10653_v21 }
0x3f5c   :  { %v7901_v32 = vpop.f32.mrb[88].mxu0 }
0x3f5d   :  { %v7905_v49 = vmul.f32 0.35355338, %v7901_v32  ;;  %v10089_v10 = vpop.f32.mrb[89].mxu0 }
0x3f5e   :  { %v8863_v10 = vld [vmem:[%s12358_s12 + $0x78] sm:$0xff] }
0x3f5f   :  { %v7906_v1 = vsel %vm560_vm5, %v7905_v49, -inf }
0x3f60   :  { %7907 = vmax.xlane.f32.xlu1 %v7906_v1 }
0x3f64   :  { %8072 = vadd.xlane.f32.xlu1 %v8071_v20  ;;  %v8853_v20 = vld [vmem:[%s12357_s11 + $0x1] ss:$0 sm:$0xff] }
0x3fed   :  { %v7908_v22 = vpop.xlane.xlu1 %7907 }
0x3fee   :  { %v7909_v24 = vsub.f32 %v7905_v49, %v7908_v22  ;;  %v8862_v49 = vld [vmem:[%s12358_s12 + $0x70] sm:$0xff] }
0x3fef   :  { %v10516_v1 = vpack.c.bf16 %v8863_v10, %v8862_v49 }
0x3ff0   :  { %v7910_v33 = vmul.f32 1.442695, %v7909_v24 }
0x3ff1   :  { %v8073_v63 = vpop.xlane.xlu1 %8072 }
0x3ff2   :  { %10616 = vpow2.f32 %v7910_v33  ;;  %v8077_v4 = vmul.f32 0.03125, %v8073_v63 }
0x3ff4   :  { %v8079_v45 = vsub.f32 %v12197_v12, %v8077_v4 }
0x3ff6   :  { %v8081_v38 = vmul.f32 %v8079_v45, %v8079_v45 }
0x3ff8   :  { %v8083_v19 = vsel %vm183_vm3, %v8081_v38, 0.0  ;;  %v8865_v38 = vld [vmem:[%s12359_s13 + $0x1] ss:$0 sm:$0xff] }
0x3ff9   :  { %8084 = vadd.xlane.f32.xlu1 %v8083_v19 }
0x3ffc   :  { %v10617_v31 = vpop.eup %10616 }
0x3ffd   :  { %v7912_v26 = vsel %vm560_vm5, %v10617_v31, 0.0 }
0x3ffe   :  { %7913 = vadd.xlane.f32.xlu0 %v7912_v26 }
0x4086   :  { %v8085_v29 = vpop.xlane.xlu1 %8084 }
0x4087   :  { %v8089_v62 = vmul.f32 0.03125, %v8085_v29 }
0x4089   :  { %v8091_v23 = vadd.f32 1e-05, %v8089_v62 }
0x408b   :  { %10618 = vrsqrt.f32 %v8091_v23  ;;  %v7914_v42 = vpop.xlane.xlu0 %7913 }
0x408c   :  { %10620 = vrcp.f32 %v7914_v42 }
0x4095   :  { %v10619_v50 = vpop.eup %10618 }
0x4096   :  { %v10621_v18 = vpop.eup %10620  ;;  %v8095_v28 = vmul.f32 %v10619_v50, %v8079_v45 }
0x4097   :  { %v7916_v13 = vmul.f32 %v10621_v18, %v10617_v31 }
0x4098   :  { %v8103_v37 = vmul.f32 %v8846_v6, %v8095_v28 }
0x4099   :  { %10093 = vmatmul.mubr.msk.f32.vlgmr.msra.gmra.mrb[90].mxu0 %vm560_vm5, %v7916_v13 }
0x409a   :  { %v8111_v53 = vadd.f32 %v8847_v43, %v8103_v37 }
0x409c   :  { %10108 = vmatprep.mubr.msk.f32.mxu0 %vm183_vm3, %v8111_v53 }
0x416c   :  { %v7986_v41 = vpop.f32.mrb[90].mxu0 }
0x416d   :  { %v10094_v56 = vpop.f32.mrb[91].mxu0  ;;  %10098 = vmatmul.mubr.msk.f32.vlgmr.msra.gmra.mrb[106].mxu1 %vm560_vm5, %v7986_v41 }
0x416e   :  { %10507 = vmatpush3.bf16.msra.mxu1 %v10504_v14 }
0x416f   :  { %10509 = vmatprep.subr.bf16.mxu1 %v10508_v46 }
0x4172   :  { %10511 = vmatpush3.bf16.msra.mxu1 %v10508_v46 }
0x4240   :  { %v8059_v15 = vpop.f32.mrb[106].mxu1 }
0x4241   :  { %v8063_v11 = vadd.f32 %v8059_v15, %v7618_v54  ;;  %v10099_v27 = vpop.f32.mrb[107].mxu1  ;;  %v8860_v54 = vld [vmem:[%s12358_s12 + $0x60] sm:$0xff] }
0x4242   :  { %v10512_v9 = vpack.c.bf16 %v8861_v55, %v8860_v54  ;;  %v8374_v27 = vld [vmem:[%s12362_s16 + $0x10] sm:$0xff] }
0x4243   :  { %v8064_v7 = vadd.f32 %v8815_v51, %v8063_v11  ;;  %v8373_v11 = vld [vmem:[%s12362_s16 + $0x8] sm:$0xff] }
0x4244   :  { %10513 = vmatprep.subr.bf16.mxu1 %v10512_v9 }
0x4245   :  { %v12215_v52 = vadd.f32 %v8064_v7, %v12002_v59  ;;  %v8849_v59 = vld [vmem:[%s12356_s10 + $0x28] sm:$0xff]  ;;  %10515 = vmatpush3.bf16.msra.mxu1 %v10512_v9 }
0x4246   :  { %v10496_v39 = vpack.c.bf16 %v8849_v59, %v8848_v30  ;;  %10517 = vmatprep.subr.bf16.mxu1 %v10516_v1 }
0x4247   :  { %v8074_v34 = vsel %vm183_vm3, %v12215_v52, 0.0 }
0x4248   :  { %8075 = vadd.xlane.f32.xlu0 %v8074_v34  ;;  %10497 = vmatprep.subr.bf16.mxu0 %v10496_v39 }
0x4249   :  { %10499 = vmatpush3.bf16.msra.mxu0 %v10496_v39  ;;  %10519 = vmatpush3.bf16.msra.mxu1 %v10516_v1  ;;  %v8868_v39 = vld [vmem:[%s12360_s14] ss:$0 sm:$0xff] }
0x424a   :  { %10501 = vmatprep.subr.bf16.mxu0 %v10500_v35  ;;  %v8457_v1 = vld [vmem:[%s12364_s18] sm:$0xff] }
0x424d   :  { %10503 = vmatpush3.bf16.msra.mxu0 %v10500_v35  ;;  %v8869_v35 = vld [vmem:[%s12382_s0] ss:$0 sm:$0xff] }
0x424e   :  { %10520 = vmatprep.subr.bf16.mxu0 %v10654_v44 }
0x42d5   :  { %v8076_v58 = vpop.xlane.xlu0 %8075 }
0x42d6   :  { %v8078_v0 = vmul.f32 0.03125, %v8076_v58 }
0x42d8   :  { %v8080_v2 = vsub.f32 %v12215_v52, %v8078_v0 }
0x42da   :  { %v8082_v25 = vmul.f32 %v8080_v2, %v8080_v2 }
0x42dc   :  { %v8086_v36 = vsel %vm183_vm3, %v8082_v25, 0.0 }
0x42dd   :  { %8087 = vadd.xlane.f32.xlu0 %v8086_v36 }
0x436a   :  { %v8088_v17 = vpop.xlane.xlu0 %8087 }
0x436b   :  { %v8090_v61 = vmul.f32 0.03125, %v8088_v17 }
0x436d   :  { %v8092_v57 = vadd.f32 1e-05, %v8090_v61 }
0x436f   :  { %10622 = vrsqrt.f32 %v8092_v57 }
0x4379   :  { %v10623_v16 = vpop.eup %10622 }
0x437a   :  { %v8096_v51 = vmul.f32 %v10623_v16, %v8080_v2 }
0x437c   :  { %v8104_v47 = vmul.f32 %v8846_v6, %v8096_v51 }
0x437e   :  { %v8112_v32 = vadd.f32 %v8847_v43, %v8104_v47 }
0x4380   :  { %10109 = vmatmul.mubr.msk.f32.vlgmr.msra.gmra.mrb[92].mxu0 %vm183_vm3, %v8112_v32 }
0x4381   :  { %10138 = vmatprep.mubr.msk.f32.mxu0 %vm10655_vm4, %v10653_v21 }
0x4453   :  { %v10110_v22 = vpop.f32.mrb[92].mxu0 }
0x4454   :  { %v8204_v24 = vadd.f32 %v10110_v22, %v8853_v20  ;;  %v8198_v33 = vpop.f32.mrb[93].mxu0 }
0x4455   :  { %v8199_v63 = vadd.f32 %v8853_v20, %v8198_v33  ;;  %v8458_v20 = vld [vmem:[%s12364_s18 + $0x8] sm:$0xff] }
0x4456   :  { %v8208_v45 = vmax.f32 %v8204_v24, 0.0 }
0x4457   :  { %v8207_v4 = vmax.f32 %v8199_v63, 0.0  ;;  %v10527_v63 = vpack.c.bf16 %v8458_v20, %v8457_v1 }
0x4459   :  { %10127 = vmatprep.mubr.msk.f32.mxu1 %vm90_vm0, %v8207_v4  ;;  %v8459_v4 = vld [vmem:[%s12364_s18 + $0x10] sm:$0xff] }
0x445a   :  { %10128 = vmatmul.mubr.msk.f32.vlgmr.msra.gmra.mrb[108].mxu1 %vm90_vm0, %v8208_v45  ;;  %v8460_v45 = vld [vmem:[%s12364_s18 + $0x18] sm:$0xff] }
0x452d   :  { %v10129_v19 = vpop.f32.mrb[108].mxu1 }
0x452e   :  { %v8304_v31 = vadd.f32 %v10129_v19, %v8865_v38  ;;  %v8298_v26 = vpop.f32.mrb[109].mxu1  ;;  %v10530_v19 = vpack.c.bf16 %v8460_v45, %v8459_v4 }
0x452f   :  { %v8299_v29 = vadd.f32 %v8865_v38, %v8298_v26  ;;  %v8462_v26 = vld [vmem:[%s12364_s18 + $0x28] sm:$0xff] }
0x4530   :  { %v8308_v62 = vadd.f32 %v8304_v31, %v12215_v52  ;;  %v8375_v52 = vld [vmem:[%s12362_s16 + $0x18] sm:$0xff]  ;;  %v8461_v31 = vld [vmem:[%s12364_s18 + $0x20] sm:$0xff] }
0x4531   :  { %v8307_v23 = vadd.f32 %v8299_v29, %v12197_v12  ;;  %v8372_v12 = vld [vmem:[%s12362_s16] sm:$0xff]  ;;  %v10524_v34 = vpack.c.bf16 %v8375_v52, %v8374_v27  ;;  %v10533_v29 = vpack.c.bf16 %v8462_v26, %v8461_v31 }
0x4532   :  { %v8314_v42 = vsel %vm183_vm3, %v8308_v62, 0.0  ;;  %v10521_v7 = vpack.c.bf16 %v8373_v11, %v8372_v12 }
0x4533   :  { %8315 = vadd.xlane.f32.xlu0 %v8314_v42  ;;  %v8311_v50 = vsel %vm183_vm3, %v8307_v23, 0.0  ;;  %v8870_v42 = vld [vmem:[%s12363_s17] ss:$0 sm:$0xff] }
0x4534   :  { %8312 = vadd.xlane.f32.xlu1 %v8311_v50  ;;  %10522 = vmatpush3.bf16.msra.mxu0 %v10521_v7 }
0x4535   :  { %10523 = vmatprep.subr.bf16.mxu0 %v10654_v44 }
0x4538   :  { %10525 = vmatpush3.bf16.msra.mxu0 %v10524_v34 }
0x4539   :  { %10526 = vmatprep.subr.bf16.mxu0 %v10654_v44 }
0x45c0   :  { %v8316_v6 = vpop.xlane.xlu0 %8315 }
0x45c1   :  { %v8318_v18 = vmul.f32 0.03125, %v8316_v6  ;;  %v8313_v28 = vpop.xlane.xlu1 %8312 }
0x45c2   :  { %v8317_v13 = vmul.f32 0.03125, %v8313_v28 }
0x45c3   :  { %v8320_v43 = vsub.f32 %v8308_v62, %v8318_v18  ;;  %v8464_v62 = vld [vmem:[%s12364_s18 + $0x38] sm:$0xff] }
0x45c4   :  { %v8319_v37 = vsub.f32 %v8307_v23, %v8317_v13 }
0x45c5   :  { %v8322_v53 = vmul.f32 %v8320_v43, %v8320_v43 }
0x45c6   :  { %v8321_v41 = vmul.f32 %v8319_v37, %v8319_v37 }
0x45c7   :  { %v8326_v56 = vsel %vm183_vm3, %v8322_v53, 0.0 }
0x45c8   :  { %8327 = vadd.xlane.f32.xlu0 %v8326_v56  ;;  %v8323_v15 = vsel %vm183_vm3, %v8321_v41, 0.0 }
0x45c9   :  { %8324 = vadd.xlane.f32.xlu1 %v8323_v15 }
0x4655   :  { %v8328_v58 = vpop.xlane.xlu0 %8327 }
0x4656   :  { %v8330_v0 = vmul.f32 0.03125, %v8328_v58  ;;  %v8325_v2 = vpop.xlane.xlu1 %8324 }
0x4657   :  { %v8329_v25 = vmul.f32 0.03125, %v8325_v2 }
0x4658   :  { %v8332_v36 = vadd.f32 1e-05, %v8330_v0 }
0x4659   :  { %v8331_v30 = vadd.f32 1e-05, %v8329_v25 }
0x465a   :  { %10624 = vrsqrt.f32 %v8332_v36 }
0x465b   :  { %10626 = vrsqrt.f32 %v8331_v30 }
0x4664   :  { %v10625_v59 = vpop.eup %10624 }
0x4665   :  { %v10627_v8 = vpop.eup %10626  ;;  %v8336_v48 = vmul.f32 %v10625_v59, %v8320_v43 }
0x4666   :  { %v8335_v60 = vmul.f32 %v10627_v8, %v8319_v37 }
0x4667   :  { %v8344_v3 = vmul.f32 %v8868_v39, %v8336_v48 }
0x4668   :  { %v8343_v40 = vmul.f32 %v8868_v39, %v8335_v60 }
0x4669   :  { %v8352_v14 = vadd.f32 %v8869_v35, %v8344_v3 }
0x466a   :  { %v8351_v5 = vadd.f32 %v8869_v35, %v8343_v40 }
0x466b   :  { %v8362_v46 = vsel %vm183_vm3, %v8352_v14, 0.0 }
0x466c   :  { %v8353_v54 = vsel %vm183_vm3, %v8351_v5, 0.0  ;;  %v8363_v55 = vrot.slane %v8362_v46, 4 }
0x466d   :  { %v8354_v9 = vrot.slane %v8353_v54, 4 }
0x466e   :  { %v8364_v17 = vadd.f32 %v8363_v55, %v8362_v46 }
0x466f   :  { %v8355_v61 = vadd.f32 %v8354_v9, %v8353_v54 }
0x4670   :  { %v8365_v57 = vrot.slane %v8364_v17, 2 }
0x4671   :  { %v8356_v16 = vrot.slane %v8355_v61, 2 }
0x4672   :  { %v8366_v51 = vadd.f32 %v8365_v57, %v8364_v17 }
0x4673   :  { %v8357_v47 = vadd.f32 %v8356_v16, %v8355_v61 }
0x4674   :  { %v8367_v32 = vrot.slane %v8366_v51, 1 }
0x4675   :  { %v8358_v49 = vrot.slane %v8357_v47, 1 }
0x4676   :  { %v8368_v10 = vadd.f32 %v8367_v32, %v8366_v51 }
0x4677   :  { %v8359_v22 = vadd.f32 %v8358_v49, %v8357_v47 }
0x4678   :  { %v8369_v24 = vmul.f32 0.125, %v8368_v10 }
0x4679   :  { %v8361_v33 = vmul.f32 0.125, %v8359_v22 }
0x467b   :  { %v8371_v38 = vsel %vm8370_vm6, %v8361_v33, %v8369_v24 }
0x467c   :  { %10139 = vmatmul.mubr.msk.f32.vlgmr.msra.gmra.mrb[94].mxu0 %vm183_vm3, %v8371_v38 }
0x467d   :  { %10528 = vmatpush3.bf16.msra.mxu0 %v10527_v63  ;;  %10157 = vmatprep.mubr.msk.f32.mxu0 %vm10655_vm4, %v10653_v21  ;;  %v8463_v21 = vld [vmem:[%s12364_s18 + $0x30] sm:$0xff]  ;;  %s10628_s18 = scalar_lea.vmem %s8553_s4, 32 }
0x467e   :  { %10529 = vmatprep.subr.bf16.mxu0 %v10654_v44  ;;  %v10536_v23 = vpack.c.bf16 %v8464_v62, %v8463_v21  ;;  %p10629_p0 = scmp.ne.s32.totalorder %s8553_s4, %s10628_s18  ;;  %p10634_p2 = scmp.lt.s32.totalorder %s10628_s18, %s10628_s18 }
0x4680   :  { %p10635_p3 = por %p10634_p2, %p10633_p1 }
0x4681   :  { %10531 = vmatpush3.bf16.msra.mxu0 %v10530_v19 }
0x4682   :  { %10532 = vmatprep.subr.bf16.mxu0 %v10654_v44  ;;  %p10636_p4 = pnand %p10635_p3, %p10629_p0 }
0x4685   :  { %10534 = vmatpush3.bf16.msra.mxu0 %v10533_v29 }
0x4686   :  { %10535 = vmatprep.subr.bf16.mxu0 %v10654_v44  ;;  %v8872_v44 = vld [vmem:[%s12365_s19] ss:$0 sm:$0xff] }
0x4689   :  { %10537 = vmatpush3.bf16.msra.mxu0 %v10536_v23 }
0x474f   :  { %v8452_v50 = vpop.f32.mrb[94].mxu0 }
0x4750   :  { %v8453_v6 = vadd.f32 %v8870_v42, %v8452_v50  ;;  %v10140_v18 = vpop.f32.mrb[95].mxu0 }
0x4752   :  { %v8456_v28 = vmax.f32 %v8453_v6, 0.0 }
0x4754   :  { %10158 = vmatmul.mubr.msk.f32.vlgmr.msra.gmra.mrb[96].mxu0 %vm90_vm0, %v8456_v28 }
0x4827   :  { %v8541_v13 = vpop.f32.mrb[96].mxu0 }
0x4828   :  { %v8542_v43 = vadd.f32 %v8872_v44, %v8541_v13  ;;  %v10159_v37 = vpop.f32.mrb[97].mxu0 }
0x482a   :  { %8545 = vst [vmem:[#allocation2] sm:$0x3] %v8542_v43 }
0x482b   :  { %10639 = shalt.err (!%p10636_p4)
}
0x482c   :  { %s10640_s30 = scalar_lea.hbm %s12366_s20, 32 }
0x482d   :  { %p10641_p5 = scmp.ne.s32.totalorder %s12366_s20, %s10640_s30  ;;  %p10644_p6 = scmp.lt.u32.totalorder %s10640_s30, %s12366_s20 }
0x482f   :  { %p10646_p7 = pnand %p10644_p6, %p10641_p5 }
0x4831   :  { %10649 = shalt.err (!%p10646_p7)
}
0x4832   :  { %8555 = dma.vmem_to_hbm [thread:$0]  %s8553_s4, 32, %s12366_s20, [#allocation3]  }
0x4833   :  { %10650 = dma.done.wait [#allocation3], 32  }
0x4834   :  { %10651 = vsyncadd [#allocation3], 4294967264 }
0x4835   :  { %8559 = vsyncpa [#allocation3], 1 }

</bundles_post_ra>
